<compile_context>
chip_gen: v7x
topology: tpu7x:2x2x1
jax: 0.10.0
libtpu: 0.0.40
codegen_flags: <defaults>
</compile_context>

<pallas_src>
import functools
import math

import numpy as np
import jax
import jax.numpy as jnp
from jax.experimental import pallas as pl
from jax.experimental.pallas import tpu as pltpu  # noqa: F401  (kept for easy tuning hooks)

BN_EPS = 1e-5
BN_SCALE = 1.0 / math.sqrt(1.0 + BN_EPS)


# ----------------------------------------------------------------------------
# DCT helpers (same as util.get_dct_matrix in the reference repo)
# ----------------------------------------------------------------------------
def get_dct_matrix(N):
    dct_m = np.eye(N)
    for k in range(N):
        for i in range(N):
            w = math.sqrt(2.0 / N)
            if k == 0:
                w = math.sqrt(1.0 / N)
            dct_m[k, i] = w * math.cos(math.pi * (i + 0.5) * k / N)
    idct_m = np.linalg.inv(dct_m)
    return dct_m.astype(np.float32), idct_m.astype(np.float32)


# ----------------------------------------------------------------------------
# Pallas kernel 1: single LSTM step with zero initial state
# ----------------------------------------------------------------------------
def _lstm_kernel(x_ref, w3_ref, b3_ref, h_ref, c_ref):
    """h0 = c0 = 0  =>  only the i / g / o gates matter (f-gate multiplies c0 == 0)."""
    x = x_ref[...]                                                        # [M, IN]
    gi = jax.nn.sigmoid(jnp.dot(x, w3_ref[0], preferred_element_type=jnp.float32) + b3_ref[0])
    gg = jnp.tanh(jnp.dot(x, w3_ref[1], preferred_element_type=jnp.float32) + b3_ref[1])
    go = jax.nn.sigmoid(jnp.dot(x, w3_ref[2], preferred_element_type=jnp.float32) + b3_ref[2])
    c = gi * gg
    h_ref[...] = go * jnp.tanh(c)
    c_ref[...] = c


def pallas_lstm_step(x, w3, b3):
    M = x.shape[0]
    H = w3.shape[-1]
    return pl.pallas_call(
        _lstm_kernel,
        out_shape=(jax.ShapeDtypeStruct((M, H), jnp.float32),
                   jax.ShapeDtypeStruct((M, H), jnp.float32)),
    )(x, w3, b3)


# ----------------------------------------------------------------------------
# Pallas kernel 2: fused convK/convQ + attention + windowed DCTs + GCN + IDCT
# ----------------------------------------------------------------------------
def _make_fused_kernel(*, bs, feat, num_stage, key_len, qry_len, dct_n):
    n_gc = 2 + 2 * num_stage          # gc1, (2 per GC_Block) * num_stage, gc7

    def conv_branch(x, w1_ref, w2_ref):
        """Conv1d(k1, no bias) -> ReLU -> Conv1d(k2, no bias) -> ReLU as shifted matmuls."""
        k1 = w1_ref.shape[0]
        l1 = x.shape[1] - k1 + 1
        y1 = jnp.dot(w1_ref[0], x[:, 0:l1], preferred_element_type=jnp.float32)
        for k in range(1, k1):
            y1 = y1 + jnp.dot(w1_ref[k], x[:, k:k + l1], preferred_element_type=jnp.float32)
        y1 = jnp.maximum(y1, 0.0)
        k2 = w2_ref.shape[0]
        l2 = l1 - k2 + 1
        y2 = jnp.dot(w2_ref[0], y1[:, 0:l2], preferred_element_type=jnp.float32)
        for k in range(1, k2):
            y2 = y2 + jnp.dot(w2_ref[k], y1[:, k:k + l2], preferred_element_type=jnp.float32)
        return jnp.maximum(y2, 0.0)

    def gc_layer(x, w_ref, adj_ref, b_ref, bn_act):
        """GraphConvolution (+ eval-mode BatchNorm + tanh) on the batch-folded node axis."""
        s = jnp.dot(x, w_ref[...], preferred_element_type=jnp.float32)
        y = jnp.dot(adj_ref[...], s, preferred_element_type=jnp.float32) + b_ref[...]
        if bn_act:
            y = jnp.tanh(y * BN_SCALE)
        return y

    def kernel(src_ref, kw1_ref, kw2_ref, qw1_ref, qw2_ref,
               wval_ref, segmask_ref, mgsel_ref, idct_ref, *rest):
        gc_refs = rest[:3 * n_gc]
        out_ref = rest[3 * n_gc]

        T = src_ref.shape[1]
        x_all = src_ref[...]                                            # [bs*feat, T]

        # ---- per-batch conv branches + attention row ----
        att_blocks = []
        for b in range(bs):
            x = x_all[b * feat:(b + 1) * feat, :]                       # [feat, T] (static slice)
            key = conv_branch(x[:, 0:key_len], kw1_ref, kw2_ref)        # [d_model, vn]
            qry = conv_branch(x[:, T - qry_len:T], qw1_ref, qw2_ref)    # [d_model, 1]
            s = jnp.sum(key * qry, axis=0, keepdims=True) + 1e-15       # [1, vn]
            att = s / jnp.sum(s, axis=1, keepdims=True)                 # [1, vn]
            att_blocks.append(jnp.broadcast_to(att, (feat, att.shape[1])))
        att_bvn = jnp.concatenate(att_blocks, axis=0)                   # [bs*feat, vn]
        # column ordering j = k*vn + n  ->  att value depends only on n = j mod vn
        att_full = jnp.concatenate([att_bvn] * dct_n, axis=1)           # [bs*feat, dct_n*vn]

        # ---- batch-shared windowed DCT + attention contraction (3 matmuls total) ----
        big = jnp.dot(x_all, wval_ref[...], preferred_element_type=jnp.float32)   # [bs*feat, dct_n*vn]
        dct_att = jnp.dot(big * att_full, segmask_ref[...],
                          preferred_element_type=jnp.float32)                      # [bs*feat, dct_n]
        gcn_dct = jnp.dot(x_all, mgsel_ref[...], preferred_element_type=jnp.float32)  # [bs*feat, dct_n]
        xin = jnp.concatenate([gcn_dct, dct_att], axis=1)                          # [bs*feat, 2*dct_n]

        # ---- batch-folded GCN stack (block-diagonal adjacency), fully VMEM resident ----
        y = gc_layer(xin, gc_refs[0], gc_refs[1], gc_refs[2], True)
        i = 3
        for _ in range(num_stage):
            y1 = gc_layer(y, gc_refs[i], gc_refs[i + 1], gc_refs[i + 2], True)
            y2 = gc_layer(y1, gc_refs[i + 3], gc_refs[i + 4], gc_refs[i + 5], True)
            y = y2 + y                                                  # GC_Block residual
            i += 6
        y = gc_layer(y, gc_refs[i], gc_refs[i + 1], gc_refs[i + 2], False)

        # GCN residual (only the first dct_n features feed the output) + IDCT.
        out10 = y[:, 0:dct_n] + gcn_dct                                  # [bs*feat, dct_n]
        out_ref[...] = jnp.dot(out10, idct_ref[...], preferred_element_type=jnp.float32)

    return kernel


# ----------------------------------------------------------------------------
# Parameters (PyTorch-layout weights, random init)
# ----------------------------------------------------------------------------
def init_params(key, *, in_features, d_model, dct_n, num_stage, lstm_in=10, lstm_hidden=50):
    keys = iter(jax.random.split(key, 64))

    def nrm(shape, fan_in):
        return jax.random.normal(next(keys), shape, dtype=jnp.float32) / math.sqrt(fan_in)

    p = {}
    # LSTM (b_ih + b_hh combined; valid because the initial hidden state is zero)
    p["lstm_w_ih_t"] = nrm((lstm_in, 4 * lstm_hidden), lstm_hidden)
    p["lstm_b"] = nrm((1, 4 * lstm_hidden), lstm_hidden) + nrm((1, 4 * lstm_hidden), lstm_hidden)
    # convK / convQ (Conv1d weights [out, in, k], no bias)
    for name in ("convK", "convQ"):
        p[f"{name}_w1"] = nrm((d_model, in_features, 6), in_features * 6)
        p[f"{name}_w2"] = nrm((d_model, d_model, 5), d_model * 5)
    # GCN
    gin = dct_n * 2

    def gc(prefix, fin, fout):
        p[f"{prefix}_w"] = nrm((fin, fout), fin)
        p[f"{prefix}_att"] = nrm((in_features, in_features), in_features)
        p[f"{prefix}_b"] = nrm((fout,), fout)

    gc("gc1", gin, d_model)
    for s in range(num_stage):
        gc(f"gcb{s}_1", d_model, d_model)
        gc(f"gcb{s}_2", d_model, d_model)
    gc("gc7", d_model, gin)
    return p


# ----------------------------------------------------------------------------
# RNNAttModel.forward (itera == 1)
# ----------------------------------------------------------------------------
def rnn_att_forward(src, params, *, output_n=25, input_n=10, kernel_size=10,
                    dct_n=10, num_stage=2):
    bs, _, feat = src.shape
    H = 50                                    # LSTM hidden size (fixed by the model)
    T = H
    vl = kernel_size + output_n               # 35
    vn = T - kernel_size - output_n + 1       # 16
    key_len = T - output_n                    # 25

    # ---- LSTM memory module: exactly PyTorch's raw reshape, single step from zero state ----
    lstm_x = src[:, :input_n].reshape(bs * feat, input_n)
    w = params["lstm_w_ih_t"]                 # [input_n, 4H]  (gate order i, f, g, o)
    b = params["lstm_b"]                      # [1, 4H]
    w3 = jnp.stack([w[:, 0:H], w[:, 2 * H:3 * H], w[:, 3 * H:4 * H]], axis=0)   # i, g, o
    b3 = jnp.stack([b[:, 0:H], b[:, 2 * H:3 * H], b[:, 3 * H:4 * H]], axis=0)
    h, c = pallas_lstm_step(lstm_x, w3, b3)
    hidden = (h[None], c[None])               # (h_n, c_n): [1, bs*feat, 50]

    # src_tmp = output_lstm.reshape([bs, 50, -1]) (raw reinterpretation), then per-batch transpose
    src_flat = jnp.transpose(h.reshape(bs, T, feat), (0, 2, 1)).reshape(bs * feat, T)  # [bs*feat, T]

    # ---- precomputed (trace-time constant) DCT / selection / window matrices ----
    dct_m, idct_m = get_dct_matrix(vl)
    dct_m10 = dct_m[:dct_n]                                       # [dct_n, vl]
    idct_T = np.ascontiguousarray(idct_m[:, :dct_n].T)            # [dct_n, vl]
    # idx = range(-kernel_size, 0) + [-1]*output_n  (repeated rows folded into the selection matrix)
    idx_gcn = np.concatenate([np.arange(T - kernel_size, T),
                              np.full(output_n, T - 1)]).astype(np.int64)
    sel = np.zeros((vl, T), np.float32)
    sel[np.arange(vl), idx_gcn] = 1.0
    mgsel_T = np.ascontiguousarray((dct_m10 @ sel).T)             # [T, dct_n]
    # flattened banded "windowed DCT" matrix: column j = k*vn + n maps src -> DCT coeff k of window n
    wval_flat = np.zeros((T, dct_n * vn), np.float32)
    for k in range(dct_n):
        for n in range(vn):
            wval_flat[n:n + vl, k * vn + n] = dct_m10[k]
    # segment-sum mask: sums the vn window columns belonging to each DCT coefficient
    segmask = np.kron(np.eye(dct_n, dtype=np.float32), np.ones((vn, 1), np.float32))  # [dct_n*vn, dct_n]

    # ---- conv weights stacked per tap; /1000 input scale folded into the first conv ----
    kw1 = jnp.transpose(params["convK_w1"], (2, 0, 1)) / 1000.0   # [6, d_model, feat]
    kw2 = jnp.transpose(params["convK_w2"], (2, 0, 1))            # [5, d_model, d_model]
    qw1 = jnp.transpose(params["convQ_w1"], (2, 0, 1)) / 1000.0
    qw2 = jnp.transpose(params["convQ_w2"], (2, 0, 1))

    # ---- GCN weights; adjacency expanded block-diagonally over the folded batch ----
    eye_bs = jnp.eye(bs, dtype=jnp.float32)

    def gc_args(prefix):
        return [params[f"{prefix}_w"],
                jnp.kron(eye_bs, params[f"{prefix}_att"]),
                params[f"{prefix}_b"][None, :]]

    gc_flat = gc_args("gc1")
    for s in range(num_stage):
        gc_flat += gc_args(f"gcb{s}_1")
        gc_flat += gc_args(f"gcb{s}_2")
    gc_flat += gc_args("gc7")

    kernel = _make_fused_kernel(bs=bs, feat=feat, num_stage=num_stage, key_len=key_len,
                                qry_len=kernel_size, dct_n=dct_n)
    out_flat = pl.pallas_call(
        kernel,
        out_shape=jax.ShapeDtypeStruct((bs * feat, vl), jnp.float32),
    )(src_flat, kw1, kw2, qw1, qw2,
      jnp.asarray(wval_flat), jnp.asarray(segmask), jnp.asarray(mgsel_T), jnp.asarray(idct_T),
      *gc_flat)

    out_gcn = jnp.transpose(out_flat.reshape(bs, feat, vl), (0, 2, 1))   # [bs, 35, feat]
    outputs = out_gcn[:, :, None, :]                                     # [bs, 35, itera=1, feat]
    # TODO(synk): itera > 1 autoregressive refinement loop not implemented (forward default itera=1).
    return outputs, hidden


# ----------------------------------------------------------------------------
# Demo
# ----------------------------------------------------------------------------
if __name__ == "__main__":
    # kernel_size=10 / input_n=10 / output_n=25 are hard-wired by the model (LSTM hidden=50,
    # LSTM input=10), so only bs / in_features / d_model / num_stage are shrunk.
    bs, seq_len, in_features = 2, 12, 16
    d_model, num_stage, dct_n = 64, 2, 10

    key = jax.random.PRNGKey(0)
    k_src, k_par = jax.random.split(key)
    src = jax.random.normal(k_src, (bs, seq_len, in_features), dtype=jnp.float32)
    params = init_params(k_par, in_features=in_features, d_model=d_model,
                         dct_n=dct_n, num_stage=num_stage)

    fwd = jax.jit(functools.partial(rnn_att_forward, output_n=25, input_n=10,
                                    kernel_size=10, dct_n=dct_n, num_stage=num_stage))
    outputs, hidden = fwd(src, params)
    jax.block_until_ready(outputs)
    jax.block_until_ready(hidden)

    assert outputs.shape == (bs, 35, 1, in_features)
    assert hidden[0].shape == (1, bs * in_features, 50)
    assert hidden[1].shape == (1, bs * in_features, 50)
    assert bool(jnp.all(jnp.isfinite(outputs)))
    print("KERNEL_OK")
</pallas_src>

<mosaic_0001>
module attributes {stable_mosaic.version = 11 : i64} {
  func.func @_lstm_kernel(%arg0: memref<32x10xf32, #tpu.memory_space<vmem>>, %arg1: memref<3x10x50xf32, #tpu.memory_space<vmem>>, %arg2: memref<3x1x50xf32, #tpu.memory_space<vmem>>, %arg3: memref<32x50xf32, #tpu.memory_space<vmem>>, %arg4: memref<32x50xf32, #tpu.memory_space<vmem>>) attributes {dimension_semantics = [], scalar_prefetch = 0 : i64, scratch_operands = 0 : i64, tpu.core_type = #tpu.core_type<tc>} {
    %c0 = arith.constant 0 : index
    %c0_0 = arith.constant 0 : index
    %0 = vector.load %arg0[%c0, %c0_0] : memref<32x10xf32, #tpu.memory_space<vmem>>, vector<32x10xf32>
    %c0_1 = arith.constant 0 : index
    %c0_2 = arith.constant 0 : index
    %c0_3 = arith.constant 0 : index
    %1 = vector.load %arg1[%c0_1, %c0_2, %c0_3] : memref<3x10x50xf32, #tpu.memory_space<vmem>>, vector<1x10x50xf32>
    %2 = vector.shape_cast %1 : vector<1x10x50xf32> to vector<10x50xf32>
    %cst = arith.constant dense<0.000000e+00> : vector<32x50xf32>
    %3 = tpu.matmul %0, %2, %cst {dimension_numbers = #tpu.dot_dimension_numbers<[1], [0], [0], [1], [0, 0, 1, 1], [], []>} : vector<32x10xf32>, vector<10x50xf32>, vector<32x50xf32> -> vector<32x50xf32>
    %c0_4 = arith.constant 0 : index
    %c0_5 = arith.constant 0 : index
    %c0_6 = arith.constant 0 : index
    %4 = vector.load %arg2[%c0_4, %c0_5, %c0_6] : memref<3x1x50xf32, #tpu.memory_space<vmem>>, vector<1x1x50xf32>
    %5 = vector.shape_cast %4 : vector<1x1x50xf32> to vector<1x50xf32>
    %6 = vector.broadcast %5 : vector<1x50xf32> to vector<32x50xf32>
    %7 = arith.addf %3, %6 : vector<32x50xf32>
    %8 = arith.negf %7 : vector<32x50xf32>
    %9 = math.exp %8 : vector<32x50xf32>
    %cst_7 = arith.constant 1.000000e+00 : f32
    %10 = vector.broadcast %cst_7 : f32 to vector<32x50xf32>
    %11 = arith.addf %10, %9 : vector<32x50xf32>
    %12 = arith.divf %10, %11 : vector<32x50xf32>
    %c1 = arith.constant 1 : index
    %c0_8 = arith.constant 0 : index
    %c0_9 = arith.constant 0 : index
    %13 = vector.load %arg1[%c1, %c0_8, %c0_9] : memref<3x10x50xf32, #tpu.memory_space<vmem>>, vector<1x10x50xf32>
    %14 = vector.shape_cast %13 : vector<1x10x50xf32> to vector<10x50xf32>
    %cst_10 = arith.constant dense<0.000000e+00> : vector<32x50xf32>
    %15 = tpu.matmul %0, %14, %cst_10 {dimension_numbers = #tpu.dot_dimension_numbers<[1], [0], [0], [1], [0, 0, 1, 1], [], []>} : vector<32x10xf32>, vector<10x50xf32>, vector<32x50xf32> -> vector<32x50xf32>
    %c1_11 = arith.constant 1 : index
    %c0_12 = arith.constant 0 : index
    %c0_13 = arith.constant 0 : index
    %16 = vector.load %arg2[%c1_11, %c0_12, %c0_13] : memref<3x1x50xf32, #tpu.memory_space<vmem>>, vector<1x1x50xf32>
    %17 = vector.shape_cast %16 : vector<1x1x50xf32> to vector<1x50xf32>
    %18 = vector.broadcast %17 : vector<1x50xf32> to vector<32x50xf32>
    %19 = arith.addf %15, %18 : vector<32x50xf32>
    %20 = math.tanh %19 : vector<32x50xf32>
    %c2 = arith.constant 2 : index
    %c0_14 = arith.constant 0 : index
    %c0_15 = arith.constant 0 : index
    %21 = vector.load %arg1[%c2, %c0_14, %c0_15] : memref<3x10x50xf32, #tpu.memory_space<vmem>>, vector<1x10x50xf32>
    %22 = vector.shape_cast %21 : vector<1x10x50xf32> to vector<10x50xf32>
    %cst_16 = arith.constant dense<0.000000e+00> : vector<32x50xf32>
    %23 = tpu.matmul %0, %22, %cst_16 {dimension_numbers = #tpu.dot_dimension_numbers<[1], [0], [0], [1], [0, 0, 1, 1], [], []>} : vector<32x10xf32>, vector<10x50xf32>, vector<32x50xf32> -> vector<32x50xf32>
    %c2_17 = arith.constant 2 : index
    %c0_18 = arith.constant 0 : index
    %c0_19 = arith.constant 0 : index
    %24 = vector.load %arg2[%c2_17, %c0_18, %c0_19] : memref<3x1x50xf32, #tpu.memory_space<vmem>>, vector<1x1x50xf32>
    %25 = vector.shape_cast %24 : vector<1x1x50xf32> to vector<1x50xf32>
    %26 = vector.broadcast %25 : vector<1x50xf32> to vector<32x50xf32>
    %27 = arith.addf %23, %26 : vector<32x50xf32>
    %28 = arith.negf %27 : vector<32x50xf32>
    %29 = math.exp %28 : vector<32x50xf32>
    %cst_20 = arith.constant 1.000000e+00 : f32
    %30 = vector.broadcast %cst_20 : f32 to vector<32x50xf32>
    %31 = arith.addf %30, %29 : vector<32x50xf32>
    %32 = arith.divf %30, %31 : vector<32x50xf32>
    %33 = arith.mulf %12, %20 : vector<32x50xf32>
    %34 = math.tanh %33 : vector<32x50xf32>
    %35 = arith.mulf %32, %34 : vector<32x50xf32>
    %c0_21 = arith.constant 0 : index
    %c0_22 = arith.constant 0 : index
    %36 = vector.load %arg3[%c0_21, %c0_22] : memref<32x50xf32, #tpu.memory_space<vmem>>, vector<32x50xf32>
    tpu.vector_store %arg3[%c0_21, %c0_22], %35 {strides = array<i32>} : memref<32x50xf32, #tpu.memory_space<vmem>>, vector<32x50xf32>,
    %c0_23 = arith.constant 0 : index
    %c0_24 = arith.constant 0 : index
    %37 = vector.load %arg4[%c0_23, %c0_24] : memref<32x50xf32, #tpu.memory_space<vmem>>, vector<32x50xf32>
    tpu.vector_store %arg4[%c0_23, %c0_24], %33 {strides = array<i32>} : memref<32x50xf32, #tpu.memory_space<vmem>>, vector<32x50xf32>,
    return
  }
}

module attributes {stable_mosaic.version = 11 : i64} {
  func.func @kernel(%arg0: memref<32x50xf32, #tpu.memory_space<vmem>>, %arg1: memref<6x64x16xf32, #tpu.memory_space<vmem>>, %arg2: memref<5x64x64xf32, #tpu.memory_space<vmem>>, %arg3: memref<6x64x16xf32, #tpu.memory_space<vmem>>, %arg4: memref<5x64x64xf32, #tpu.memory_space<vmem>>, %arg5: memref<50x160xf32, #tpu.memory_space<vmem>>, %arg6: memref<160x10xf32, #tpu.memory_space<vmem>>, %arg7: memref<50x10xf32, #tpu.memory_space<vmem>>, %arg8: memref<10x35xf32, #tpu.memory_space<vmem>>, %arg9: memref<20x64xf32, #tpu.memory_space<vmem>>, %arg10: memref<32x32xf32, #tpu.memory_space<vmem>>, %arg11: memref<1x64xf32, #tpu.memory_space<vmem>>, %arg12: memref<64x64xf32, #tpu.memory_space<vmem>>, %arg13: memref<32x32xf32, #tpu.memory_space<vmem>>, %arg14: memref<1x64xf32, #tpu.memory_space<vmem>>, %arg15: memref<64x64xf32, #tpu.memory_space<vmem>>, %arg16: memref<32x32xf32, #tpu.memory_space<vmem>>, %arg17: memref<1x64xf32, #tpu.memory_space<vmem>>, %arg18: memref<64x64xf32, #tpu.memory_space<vmem>>, %arg19: memref<32x32xf32, #tpu.memory_space<vmem>>, %arg20: memref<1x64xf32, #tpu.memory_space<vmem>>, %arg21: memref<64x64xf32, #tpu.memory_space<vmem>>, %arg22: memref<32x32xf32, #tpu.memory_space<vmem>>, %arg23: memref<1x64xf32, #tpu.memory_space<vmem>>, %arg24: memref<64x20xf32, #tpu.memory_space<vmem>>, %arg25: memref<32x32xf32, #tpu.memory_space<vmem>>, %arg26: memref<1x20xf32, #tpu.memory_space<vmem>>, %arg27: memref<32x35xf32, #tpu.memory_space<vmem>>) attributes {dimension_semantics = [], scalar_prefetch = 0 : i64, scratch_operands = 0 : i64, tpu.core_type = #tpu.core_type<tc>} {
    %c0 = arith.constant 0 : index
    %c0_0 = arith.constant 0 : index
    %0 = vector.load %arg0[%c0, %c0_0] : memref<32x50xf32, #tpu.memory_space<vmem>>, vector<32x50xf32>
    %1 = vector.extract_strided_slice %0 {offsets = [0, 0], sizes = [16, 50], strides = [1, 1]} : vector<32x50xf32> to vector<16x50xf32>
    %2 = vector.extract_strided_slice %1 {offsets = [0, 0], sizes = [16, 25], strides = [1, 1]} : vector<16x50xf32> to vector<16x25xf32>
    %c0_1 = arith.constant 0 : index
    %c0_2 = arith.constant 0 : index
    %c0_3 = arith.constant 0 : index
    %3 = vector.load %arg1[%c0_1, %c0_2, %c0_3] : memref<6x64x16xf32, #tpu.memory_space<vmem>>, vector<1x64x16xf32>
    %4 = vector.shape_cast %3 : vector<1x64x16xf32> to vector<64x16xf32>
    %5 = vector.extract_strided_slice %2 {offsets = [0, 0], sizes = [16, 20], strides = [1, 1]} : vector<16x25xf32> to vector<16x20xf32>
    %cst = arith.constant dense<0.000000e+00> : vector<64x20xf32>
    %6 = tpu.matmul %4, %5, %cst {dimension_numbers = #tpu.dot_dimension_numbers<[1], [0], [0], [1], [0, 0, 1, 1], [], []>} : vector<64x16xf32>, vector<16x20xf32>, vector<64x20xf32> -> vector<64x20xf32>
    %c1 = arith.constant 1 : index
    %c0_4 = arith.constant 0 : index
    %c0_5 = arith.constant 0 : index
    %7 = vector.load %arg1[%c1, %c0_4, %c0_5] : memref<6x64x16xf32, #tpu.memory_space<vmem>>, vector<1x64x16xf32>
    %8 = vector.shape_cast %7 : vector<1x64x16xf32> to vector<64x16xf32>
    %9 = vector.extract_strided_slice %2 {offsets = [0, 1], sizes = [16, 20], strides = [1, 1]} : vector<16x25xf32> to vector<16x20xf32>
    %cst_6 = arith.constant dense<0.000000e+00> : vector<64x20xf32>
    %10 = tpu.matmul %8, %9, %cst_6 {dimension_numbers = #tpu.dot_dimension_numbers<[1], [0], [0], [1], [0, 0, 1, 1], [], []>} : vector<64x16xf32>, vector<16x20xf32>, vector<64x20xf32> -> vector<64x20xf32>
    %11 = arith.addf %6, %10 : vector<64x20xf32>
    %c2 = arith.constant 2 : index
    %c0_7 = arith.constant 0 : index
    %c0_8 = arith.constant 0 : index
    %12 = vector.load %arg1[%c2, %c0_7, %c0_8] : memref<6x64x16xf32, #tpu.memory_space<vmem>>, vector<1x64x16xf32>
    %13 = vector.shape_cast %12 : vector<1x64x16xf32> to vector<64x16xf32>
    %14 = vector.extract_strided_slice %2 {offsets = [0, 2], sizes = [16, 20], strides = [1, 1]} : vector<16x25xf32> to vector<16x20xf32>
    %cst_9 = arith.constant dense<0.000000e+00> : vector<64x20xf32>
    %15 = tpu.matmul %13, %14, %cst_9 {dimension_numbers = #tpu.dot_dimension_numbers<[1], [0], [0], [1], [0, 0, 1, 1], [], []>} : vector<64x16xf32>, vector<16x20xf32>, vector<64x20xf32> -> vector<64x20xf32>
    %16 = arith.addf %11, %15 : vector<64x20xf32>
    %c3 = arith.constant 3 : index
    %c0_10 = arith.constant 0 : index
    %c0_11 = arith.constant 0 : index
    %17 = vector.load %arg1[%c3, %c0_10, %c0_11] : memref<6x64x16xf32, #tpu.memory_space<vmem>>, vector<1x64x16xf32>
    %18 = vector.shape_cast %17 : vector<1x64x16xf32> to vector<64x16xf32>
    %19 = vector.extract_strided_slice %2 {offsets = [0, 3], sizes = [16, 20], strides = [1, 1]} : vector<16x25xf32> to vector<16x20xf32>
    %cst_12 = arith.constant dense<0.000000e+00> : vector<64x20xf32>
    %20 = tpu.matmul %18, %19, %cst_12 {dimension_numbers = #tpu.dot_dimension_numbers<[1], [0], [0], [1], [0, 0, 1, 1], [], []>} : vector<64x16xf32>, vector<16x20xf32>, vector<64x20xf32> -> vector<64x20xf32>
    %21 = arith.addf %16, %20 : vector<64x20xf32>
    %c4 = arith.constant 4 : index
    %c0_13 = arith.constant 0 : index
    %c0_14 = arith.constant 0 : index
    %22 = vector.load %arg1[%c4, %c0_13, %c0_14] : memref<6x64x16xf32, #tpu.memory_space<vmem>>, vector<1x64x16xf32>
    %23 = vector.shape_cast %22 : vector<1x64x16xf32> to vector<64x16xf32>
    %24 = vector.extract_strided_slice %2 {offsets = [0, 4], sizes = [16, 20], strides = [1, 1]} : vector<16x25xf32> to vector<16x20xf32>
    %cst_15 = arith.constant dense<0.000000e+00> : vector<64x20xf32>
    %25 = tpu.matmul %23, %24, %cst_15 {dimension_numbers = #tpu.dot_dimension_numbers<[1], [0], [0], [1], [0, 0, 1, 1], [], []>} : vector<64x16xf32>, vector<16x20xf32>, vector<64x20xf32> -> vector<64x20xf32>
    %26 = arith.addf %21, %25 : vector<64x20xf32>
    %c5 = arith.constant 5 : index
    %c0_16 = arith.constant 0 : index
    %c0_17 = arith.constant 0 : index
    %27 = vector.load %arg1[%c5, %c0_16, %c0_17] : memref<6x64x16xf32, #tpu.memory_space<vmem>>, vector<1x64x16xf32>
    %28 = vector.shape_cast %27 : vector<1x64x16xf32> to vector<64x16xf32>
    %29 = vector.extract_strided_slice %2 {offsets = [0, 5], sizes = [16, 20], strides = [1, 1]} : vector<16x25xf32> to vector<16x20xf32>
    %cst_18 = arith.constant dense<0.000000e+00> : vector<64x20xf32>
    %30 = tpu.matmul %28, %29, %cst_18 {dimension_numbers = #tpu.dot_dimension_numbers<[1], [0], [0], [1], [0, 0, 1, 1], [], []>} : vector<64x16xf32>, vector<16x20xf32>, vector<64x20xf32> -> vector<64x20xf32>
    %31 = arith.addf %26, %30 : vector<64x20xf32>
    %cst_19 = arith.constant 0.000000e+00 : f32
    %32 = vector.broadcast %cst_19 : f32 to vector<64x20xf32>
    %33 = arith.maximumf %31, %32 : vector<64x20xf32>
    %c0_20 = arith.constant 0 : index
    %c0_21 = arith.constant 0 : index
    %c0_22 = arith.constant 0 : index
    %34 = vector.load %arg2[%c0_20, %c0_21, %c0_22] : memref<5x64x64xf32, #tpu.memory_space<vmem>>, vector<1x64x64xf32>
    %35 = vector.shape_cast %34 : vector<1x64x64xf32> to vector<64x64xf32>
    %36 = vector.extract_strided_slice %33 {offsets = [0, 0], sizes = [64, 16], strides = [1, 1]} : vector<64x20xf32> to vector<64x16xf32>
    %cst_23 = arith.constant dense<0.000000e+00> : vector<64x16xf32>
    %37 = tpu.matmul %35, %36, %cst_23 {dimension_numbers = #tpu.dot_dimension_numbers<[1], [0], [0], [1], [0, 0, 1, 1], [], []>} : vector<64x64xf32>, vector<64x16xf32>, vector<64x16xf32> -> vector<64x16xf32>
    %c1_24 = arith.constant 1 : index
    %c0_25 = arith.constant 0 : index
    %c0_26 = arith.constant 0 : index
    %38 = vector.load %arg2[%c1_24, %c0_25, %c0_26] : memref<5x64x64xf32, #tpu.memory_space<vmem>>, vector<1x64x64xf32>
    %39 = vector.shape_cast %38 : vector<1x64x64xf32> to vector<64x64xf32>
    %40 = vector.extract_strided_slice %33 {offsets = [0, 1], sizes = [64, 16], strides = [1, 1]} : vector<64x20xf32> to vector<64x16xf32>
    %cst_27 = arith.constant dense<0.000000e+00> : vector<64x16xf32>
    %41 = tpu.matmul %39, %40, %cst_27 {dimension_numbers = #tpu.dot_dimension_numbers<[1], [0], [0], [1], [0, 0, 1, 1], [], []>} : vector<64x64xf32>, vector<64x16xf32>, vector<64x16xf32> -> vector<64x16xf32>
    %42 = arith.addf %37, %41 : vector<64x16xf32>
    %c2_28 = arith.constant 2 : index
    %c0_29 = arith.constant 0 : index
    %c0_30 = arith.constant 0 : index
    %43 = vector.load %arg2[%c2_28, %c0_29, %c0_30] : memref<5x64x64xf32, #tpu.memory_space<vmem>>, vector<1x64x64xf32>
    %44 = vector.shape_cast %43 : vector<1x64x64xf32> to vector<64x64xf32>
    %45 = vector.extract_strided_slice %33 {offsets = [0, 2], sizes = [64, 16], strides = [1, 1]} : vector<64x20xf32> to vector<64x16xf32>
    %cst_31 = arith.constant dense<0.000000e+00> : vector<64x16xf32>
    %46 = tpu.matmul %44, %45, %cst_31 {dimension_numbers = #tpu.dot_dimension_numbers<[1], [0], [0], [1], [0, 0, 1, 1], [], []>} : vector<64x64xf32>, vector<64x16xf32>, vector<64x16xf32> -> vector<64x16xf32>
    %47 = arith.addf %42, %46 : vector<64x16xf32>
    %c3_32 = arith.constant 3 : index
    %c0_33 = arith.constant 0 : index
    %c0_34 = arith.constant 0 : index
    %48 = vector.load %arg2[%c3_32, %c0_33, %c0_34] : memref<5x64x64xf32, #tpu.memory_space<vmem>>, vector<1x64x64xf32>
    %49 = vector.shape_cast %48 : vector<1x64x64xf32> to vector<64x64xf32>
    %50 = vector.extract_strided_slice %33 {offsets = [0, 3], sizes = [64, 16], strides = [1, 1]} : vector<64x20xf32> to vector<64x16xf32>
    %cst_35 = arith.constant dense<0.000000e+00> : vector<64x16xf32>
    %51 = tpu.matmul %49, %50, %cst_35 {dimension_numbers = #tpu.dot_dimension_numbers<[1], [0], [0], [1], [0, 0, 1, 1], [], []>} : vector<64x64xf32>, vector<64x16xf32>, vector<64x16xf32> -> vector<64x16xf32>
    %52 = arith.addf %47, %51 : vector<64x16xf32>
    %c4_36 = arith.constant 4 : index
    %c0_37 = arith.constant 0 : index
    %c0_38 = arith.constant 0 : index
    %53 = vector.load %arg2[%c4_36, %c0_37, %c0_38] : memref<5x64x64xf32, #tpu.memory_space<vmem>>, vector<1x64x64xf32>
    %54 = vector.shape_cast %53 : vector<1x64x64xf32> to vector<64x64xf32>
    %55 = vector.extract_strided_slice %33 {offsets = [0, 4], sizes = [64, 16], strides = [1, 1]} : vector<64x20xf32> to vector<64x16xf32>
    %cst_39 = arith.constant dense<0.000000e+00> : vector<64x16xf32>
    %56 = tpu.matmul %54, %55, %cst_39 {dimension_numbers = #tpu.dot_dimension_numbers<[1], [0], [0], [1], [0, 0, 1, 1], [], []>} : vector<64x64xf32>, vector<64x16xf32>, vector<64x16xf32> -> vector<64x16xf32>
    %57 = arith.addf %52, %56 : vector<64x16xf32>
    %cst_40 = arith.constant 0.000000e+00 : f32
    %58 = vector.broadcast %cst_40 : f32 to vector<64x16xf32>
    %59 = arith.maximumf %57, %58 : vector<64x16xf32>
    %60 = vector.extract_strided_slice %1 {offsets = [0, 40], sizes = [16, 10], strides = [1, 1]} : vector<16x50xf32> to vector<16x10xf32>
    %c0_41 = arith.constant 0 : index
    %c0_42 = arith.constant 0 : index
    %c0_43 = arith.constant 0 : index
    %61 = vector.load %arg3[%c0_41, %c0_42, %c0_43] : memref<6x64x16xf32, #tpu.memory_space<vmem>>, vector<1x64x16xf32>
    %62 = vector.shape_cast %61 : vector<1x64x16xf32> to vector<64x16xf32>
    %63 = vector.extract_strided_slice %60 {offsets = [0, 0], sizes = [16, 5], strides = [1, 1]} : vector<16x10xf32> to vector<16x5xf32>
    %cst_44 = arith.constant dense<0.000000e+00> : vector<64x5xf32>
    %64 = tpu.matmul %62, %63, %cst_44 {dimension_numbers = #tpu.dot_dimension_numbers<[1], [0], [0], [1], [0, 0, 1, 1], [], []>} : vector<64x16xf32>, vector<16x5xf32>, vector<64x5xf32> -> vector<64x5xf32>
    %c1_45 = arith.constant 1 : index
    %c0_46 = arith.constant 0 : index
    %c0_47 = arith.constant 0 : index
    %65 = vector.load %arg3[%c1_45, %c0_46, %c0_47] : memref<6x64x16xf32, #tpu.memory_space<vmem>>, vector<1x64x16xf32>
    %66 = vector.shape_cast %65 : vector<1x64x16xf32> to vector<64x16xf32>
    %67 = vector.extract_strided_slice %60 {offsets = [0, 1], sizes = [16, 5], strides = [1, 1]} : vector<16x10xf32> to vector<16x5xf32>
    %cst_48 = arith.constant dense<0.000000e+00> : vector<64x5xf32>
    %68 = tpu.matmul %66, %67, %cst_48 {dimension_numbers = #tpu.dot_dimension_numbers<[1], [0], [0], [1], [0, 0, 1, 1], [], []>} : vector<64x16xf32>, vector<16x5xf32>, vector<64x5xf32> -> vector<64x5xf32>
    %69 = arith.addf %64, %68 : vector<64x5xf32>
    %c2_49 = arith.constant 2 : index
    %c0_50 = arith.constant 0 : index
    %c0_51 = arith.constant 0 : index
    %70 = vector.load %arg3[%c2_49, %c0_50, %c0_51] : memref<6x64x16xf32, #tpu.memory_space<vmem>>, vector<1x64x16xf32>
    %71 = vector.shape_cast %70 : vector<1x64x16xf32> to vector<64x16xf32>
    %72 = vector.extract_strided_slice %60 {offsets = [0, 2], sizes = [16, 5], strides = [1, 1]} : vector<16x10xf32> to vector<16x5xf32>
    %cst_52 = arith.constant dense<0.000000e+00> : vector<64x5xf32>
    %73 = tpu.matmul %71, %72, %cst_52 {dimension_numbers = #tpu.dot_dimension_numbers<[1], [0], [0], [1], [0, 0, 1, 1], [], []>} : vector<64x16xf32>, vector<16x5xf32>, vector<64x5xf32> -> vector<64x5xf32>
    %74 = arith.addf %69, %73 : vector<64x5xf32>
    %c3_53 = arith.constant 3 : index
    %c0_54 = arith.constant 0 : index
    %c0_55 = arith.constant 0 : index
    %75 = vector.load %arg3[%c3_53, %c0_54, %c0_55] : memref<6x64x16xf32, #tpu.memory_space<vmem>>, vector<1x64x16xf32>
    %76 = vector.shape_cast %75 : vector<1x64x16xf32> to vector<64x16xf32>
    %77 = vector.extract_strided_slice %60 {offsets = [0, 3], sizes = [16, 5], strides = [1, 1]} : vector<16x10xf32> to vector<16x5xf32>
    %cst_56 = arith.constant dense<0.000000e+00> : vector<64x5xf32>
    %78 = tpu.matmul %76, %77, %cst_56 {dimension_numbers = #tpu.dot_dimension_numbers<[1], [0], [0], [1], [0, 0, 1, 1], [], []>} : vector<64x16xf32>, vector<16x5xf32>, vector<64x5xf32> -> vector<64x5xf32>
    %79 = arith.addf %74, %78 : vector<64x5xf32>
    %c4_57 = arith.constant 4 : index
    %c0_58 = arith.constant 0 : index
    %c0_59 = arith.constant 0 : index
    %80 = vector.load %arg3[%c4_57, %c0_58, %c0_59] : memref<6x64x16xf32, #tpu.memory_space<vmem>>, vector<1x64x16xf32>
    %81 = vector.shape_cast %80 : vector<1x64x16xf32> to vector<64x16xf32>
    %82 = vector.extract_strided_slice %60 {offsets = [0, 4], sizes = [16, 5], strides = [1, 1]} : vector<16x10xf32> to vector<16x5xf32>
    %cst_60 = arith.constant dense<0.000000e+00> : vector<64x5xf32>
    %83 = tpu.matmul %81, %82, %cst_60 {dimension_numbers = #tpu.dot_dimension_numbers<[1], [0], [0], [1], [0, 0, 1, 1], [], []>} : vector<64x16xf32>, vector<16x5xf32>, vector<64x5xf32> -> vector<64x5xf32>
    %84 = arith.addf %79, %83 : vector<64x5xf32>
    %c5_61 = arith.constant 5 : index
    %c0_62 = arith.constant 0 : index
    %c0_63 = arith.constant 0 : index
    %85 = vector.load %arg3[%c5_61, %c0_62, %c0_63] : memref<6x64x16xf32, #tpu.memory_space<vmem>>, vector<1x64x16xf32>
    %86 = vector.shape_cast %85 : vector<1x64x16xf32> to vector<64x16xf32>
    %87 = vector.extract_strided_slice %60 {offsets = [0, 5], sizes = [16, 5], strides = [1, 1]} : vector<16x10xf32> to vector<16x5xf32>
    %cst_64 = arith.constant dense<0.000000e+00> : vector<64x5xf32>
    %88 = tpu.matmul %86, %87, %cst_64 {dimension_numbers = #tpu.dot_dimension_numbers<[1], [0], [0], [1], [0, 0, 1, 1], [], []>} : vector<64x16xf32>, vector<16x5xf32>, vector<64x5xf32> -> vector<64x5xf32>
    %89 = arith.addf %84, %88 : vector<64x5xf32>
    %cst_65 = arith.constant 0.000000e+00 : f32
    %90 = vector.broadcast %cst_65 : f32 to vector<64x5xf32>
    %91 = arith.maximumf %89, %90 : vector<64x5xf32>
    %c0_66 = arith.constant 0 : index
    %c0_67 = arith.constant 0 : index
    %c0_68 = arith.constant 0 : index
    %92 = vector.load %arg4[%c0_66, %c0_67, %c0_68] : memref<5x64x64xf32, #tpu.memory_space<vmem>>, vector<1x64x64xf32>
    %93 = vector.shape_cast %92 : vector<1x64x64xf32> to vector<64x64xf32>
    %94 = vector.extract_strided_slice %91 {offsets = [0, 0], sizes = [64, 1], strides = [1, 1]} : vector<64x5xf32> to vector<64x1xf32>
    %cst_69 = arith.constant dense<0.000000e+00> : vector<64x1xf32>
    %95 = tpu.matmul %93, %94, %cst_69 {dimension_numbers = #tpu.dot_dimension_numbers<[1], [0], [0], [1], [0, 0, 1, 1], [], []>} : vector<64x64xf32>, vector<64x1xf32>, vector<64x1xf32> -> vector<64x1xf32>
    %c1_70 = arith.constant 1 : index
    %c0_71 = arith.constant 0 : index
    %c0_72 = arith.constant 0 : index
    %96 = vector.load %arg4[%c1_70, %c0_71, %c0_72] : memref<5x64x64xf32, #tpu.memory_space<vmem>>, vector<1x64x64xf32>
    %97 = vector.shape_cast %96 : vector<1x64x64xf32> to vector<64x64xf32>
    %98 = vector.extract_strided_slice %91 {offsets = [0, 1], sizes = [64, 1], strides = [1, 1]} : vector<64x5xf32> to vector<64x1xf32>
    %cst_73 = arith.constant dense<0.000000e+00> : vector<64x1xf32>
    %99 = tpu.matmul %97, %98, %cst_73 {dimension_numbers = #tpu.dot_dimension_numbers<[1], [0], [0], [1], [0, 0, 1, 1], [], []>} : vector<64x64xf32>, vector<64x1xf32>, vector<64x1xf32> -> vector<64x1xf32>
    %100 = arith.addf %95, %99 : vector<64x1xf32>
    %c2_74 = arith.constant 2 : index
    %c0_75 = arith.constant 0 : index
    %c0_76 = arith.constant 0 : index
    %101 = vector.load %arg4[%c2_74, %c0_75, %c0_76] : memref<5x64x64xf32, #tpu.memory_space<vmem>>, vector<1x64x64xf32>
    %102 = vector.shape_cast %101 : vector<1x64x64xf32> to vector<64x64xf32>
    %103 = vector.extract_strided_slice %91 {offsets = [0, 2], sizes = [64, 1], strides = [1, 1]} : vector<64x5xf32> to vector<64x1xf32>
    %cst_77 = arith.constant dense<0.000000e+00> : vector<64x1xf32>
    %104 = tpu.matmul %102, %103, %cst_77 {dimension_numbers = #tpu.dot_dimension_numbers<[1], [0], [0], [1], [0, 0, 1, 1], [], []>} : vector<64x64xf32>, vector<64x1xf32>, vector<64x1xf32> -> vector<64x1xf32>
    %105 = arith.addf %100, %104 : vector<64x1xf32>
    %c3_78 = arith.constant 3 : index
    %c0_79 = arith.constant 0 : index
    %c0_80 = arith.constant 0 : index
    %106 = vector.load %arg4[%c3_78, %c0_79, %c0_80] : memref<5x64x64xf32, #tpu.memory_space<vmem>>, vector<1x64x64xf32>
    %107 = vector.shape_cast %106 : vector<1x64x64xf32> to vector<64x64xf32>
    %108 = vector.extract_strided_slice %91 {offsets = [0, 3], sizes = [64, 1], strides = [1, 1]} : vector<64x5xf32> to vector<64x1xf32>
    %cst_81 = arith.constant dense<0.000000e+00> : vector<64x1xf32>
    %109 = tpu.matmul %107, %108, %cst_81 {dimension_numbers = #tpu.dot_dimension_numbers<[1], [0], [0], [1], [0, 0, 1, 1], [], []>} : vector<64x64xf32>, vector<64x1xf32>, vector<64x1xf32> -> vector<64x1xf32>
    %110 = arith.addf %105, %109 : vector<64x1xf32>
    %c4_82 = arith.constant 4 : index
    %c0_83 = arith.constant 0 : index
    %c0_84 = arith.constant 0 : index
    %111 = vector.load %arg4[%c4_82, %c0_83, %c0_84] : memref<5x64x64xf32, #tpu.memory_space<vmem>>, vector<1x64x64xf32>
    %112 = vector.shape_cast %111 : vector<1x64x64xf32> to vector<64x64xf32>
    %113 = vector.extract_strided_slice %91 {offsets = [0, 4], sizes = [64, 1], strides = [1, 1]} : vector<64x5xf32> to vector<64x1xf32>
    %cst_85 = arith.constant dense<0.000000e+00> : vector<64x1xf32>
    %114 = tpu.matmul %112, %113, %cst_85 {dimension_numbers = #tpu.dot_dimension_numbers<[1], [0], [0], [1], [0, 0, 1, 1], [], []>} : vector<64x64xf32>, vector<64x1xf32>, vector<64x1xf32> -> vector<64x1xf32>
    %115 = arith.addf %110, %114 : vector<64x1xf32>
    %cst_86 = arith.constant 0.000000e+00 : f32
    %116 = vector.broadcast %cst_86 : f32 to vector<64x1xf32>
    %117 = arith.maximumf %115, %116 : vector<64x1xf32>
    %118 = vector.broadcast %117 : vector<64x1xf32> to vector<64x16xf32>
    %119 = arith.mulf %59, %118 : vector<64x16xf32>
    %cst_87 = arith.constant dense<0.000000e+00> : vector<16xf32>
    %120 = vector.multi_reduction <add>, %119, %cst_87 [0] : vector<64x16xf32> to vector<16xf32>
    %121 = vector.shape_cast %120 : vector<16xf32> to vector<1x16xf32>
    %cst_88 = arith.constant 1.000000e-15 : f32
    %122 = vector.broadcast %cst_88 : f32 to vector<1x16xf32>
    %123 = arith.addf %121, %122 : vector<1x16xf32>
    %cst_89 = arith.constant dense<0.000000e+00> : vector<1xf32>
    %124 = vector.multi_reduction <add>, %123, %cst_89 [1] : vector<1x16xf32> to vector<1xf32>
    %125 = vector.shape_cast %124 : vector<1xf32> to vector<1x1xf32>
    %126 = vector.broadcast %125 : vector<1x1xf32> to vector<1x16xf32>
    %127 = arith.divf %123, %126 : vector<1x16xf32>
    %128 = vector.shape_cast %127 : vector<1x16xf32> to vector<1x16xf32>
    %129 = vector.broadcast %128 : vector<1x16xf32> to vector<16x16xf32>
    %130 = vector.extract_strided_slice %0 {offsets = [16, 0], sizes = [16, 50], strides = [1, 1]} : vector<32x50xf32> to vector<16x50xf32>
    %131 = vector.extract_strided_slice %130 {offsets = [0, 0], sizes = [16, 25], strides = [1, 1]} : vector<16x50xf32> to vector<16x25xf32>
    %c0_90 = arith.constant 0 : index
    %c0_91 = arith.constant 0 : index
    %c0_92 = arith.constant 0 : index
    %132 = vector.load %arg1[%c0_90, %c0_91, %c0_92] : memref<6x64x16xf32, #tpu.memory_space<vmem>>, vector<1x64x16xf32>
    %133 = vector.shape_cast %132 : vector<1x64x16xf32> to vector<64x16xf32>
    %134 = vector.extract_strided_slice %131 {offsets = [0, 0], sizes = [16, 20], strides = [1, 1]} : vector<16x25xf32> to vector<16x20xf32>
    %cst_93 = arith.constant dense<0.000000e+00> : vector<64x20xf32>
    %135 = tpu.matmul %133, %134, %cst_93 {dimension_numbers = #tpu.dot_dimension_numbers<[1], [0], [0], [1], [0, 0, 1, 1], [], []>} : vector<64x16xf32>, vector<16x20xf32>, vector<64x20xf32> -> vector<64x20xf32>
    %c1_94 = arith.constant 1 : index
    %c0_95 = arith.constant 0 : index
    %c0_96 = arith.constant 0 : index
    %136 = vector.load %arg1[%c1_94, %c0_95, %c0_96] : memref<6x64x16xf32, #tpu.memory_space<vmem>>, vector<1x64x16xf32>
    %137 = vector.shape_cast %136 : vector<1x64x16xf32> to vector<64x16xf32>
    %138 = vector.extract_strided_slice %131 {offsets = [0, 1], sizes = [16, 20], strides = [1, 1]} : vector<16x25xf32> to vector<16x20xf32>
    %cst_97 = arith.constant dense<0.000000e+00> : vector<64x20xf32>
    %139 = tpu.matmul %137, %138, %cst_97 {dimension_numbers = #tpu.dot_dimension_numbers<[1], [0], [0], [1], [0, 0, 1, 1], [], []>} : vector<64x16xf32>, vector<16x20xf32>, vector<64x20xf32> -> vector<64x20xf32>
    %140 = arith.addf %135, %139 : vector<64x20xf32>
    %c2_98 = arith.constant 2 : index
    %c0_99 = arith.constant 0 : index
    %c0_100 = arith.constant 0 : index
    %141 = vector.load %arg1[%c2_98, %c0_99, %c0_100] : memref<6x64x16xf32, #tpu.memory_space<vmem>>, vector<1x64x16xf32>
    %142 = vector.shape_cast %141 : vector<1x64x16xf32> to vector<64x16xf32>
    %143 = vector.extract_strided_slice %131 {offsets = [0, 2], sizes = [16, 20], strides = [1, 1]} : vector<16x25xf32> to vector<16x20xf32>
    %cst_101 = arith.constant dense<0.000000e+00> : vector<64x20xf32>
    %144 = tpu.matmul %142, %143, %cst_101 {dimension_numbers = #tpu.dot_dimension_numbers<[1], [0], [0], [1], [0, 0, 1, 1], [], []>} : vector<64x16xf32>, vector<16x20xf32>, vector<64x20xf32> -> vector<64x20xf32>
    %145 = arith.addf %140, %144 : vector<64x20xf32>
    %c3_102 = arith.constant 3 : index
    %c0_103 = arith.constant 0 : index
    %c0_104 = arith.constant 0 : index
    %146 = vector.load %arg1[%c3_102, %c0_103, %c0_104] : memref<6x64x16xf32, #tpu.memory_space<vmem>>, vector<1x64x16xf32>
    %147 = vector.shape_cast %146 : vector<1x64x16xf32> to vector<64x16xf32>
    %148 = vector.extract_strided_slice %131 {offsets = [0, 3], sizes = [16, 20], strides = [1, 1]} : vector<16x25xf32> to vector<16x20xf32>
    %cst_105 = arith.constant dense<0.000000e+00> : vector<64x20xf32>
    %149 = tpu.matmul %147, %148, %cst_105 {dimension_numbers = #tpu.dot_dimension_numbers<[1], [0], [0], [1], [0, 0, 1, 1], [], []>} : vector<64x16xf32>, vector<16x20xf32>, vector<64x20xf32> -> vector<64x20xf32>
    %150 = arith.addf %145, %149 : vector<64x20xf32>
    %c4_106 = arith.constant 4 : index
    %c0_107 = arith.constant 0 : index
    %c0_108 = arith.constant 0 : index
    %151 = vector.load %arg1[%c4_106, %c0_107, %c0_108] : memref<6x64x16xf32, #tpu.memory_space<vmem>>, vector<1x64x16xf32>
    %152 = vector.shape_cast %151 : vector<1x64x16xf32> to vector<64x16xf32>
    %153 = vector.extract_strided_slice %131 {offsets = [0, 4], sizes = [16, 20], strides = [1, 1]} : vector<16x25xf32> to vector<16x20xf32>
    %cst_109 = arith.constant dense<0.000000e+00> : vector<64x20xf32>
    %154 = tpu.matmul %152, %153, %cst_109 {dimension_numbers = #tpu.dot_dimension_numbers<[1], [0], [0], [1], [0, 0, 1, 1], [], []>} : vector<64x16xf32>, vector<16x20xf32>, vector<64x20xf32> -> vector<64x20xf32>
    %155 = arith.addf %150, %154 : vector<64x20xf32>
    %c5_110 = arith.constant 5 : index
    %c0_111 = arith.constant 0 : index
    %c0_112 = arith.constant 0 : index
    %156 = vector.load %arg1[%c5_110, %c0_111, %c0_112] : memref<6x64x16xf32, #tpu.memory_space<vmem>>, vector<1x64x16xf32>
    %157 = vector.shape_cast %156 : vector<1x64x16xf32> to vector<64x16xf32>
    %158 = vector.extract_strided_slice %131 {offsets = [0, 5], sizes = [16, 20], strides = [1, 1]} : vector<16x25xf32> to vector<16x20xf32>
    %cst_113 = arith.constant dense<0.000000e+00> : vector<64x20xf32>
    %159 = tpu.matmul %157, %158, %cst_113 {dimension_numbers = #tpu.dot_dimension_numbers<[1], [0], [0], [1], [0, 0, 1, 1], [], []>} : vector<64x16xf32>, vector<16x20xf32>, vector<64x20xf32> -> vector<64x20xf32>
    %160 = arith.addf %155, %159 : vector<64x20xf32>
    %cst_114 = arith.constant 0.000000e+00 : f32
    %161 = vector.broadcast %cst_114 : f32 to vector<64x20xf32>
    %162 = arith.maximumf %160, %161 : vector<64x20xf32>
    %c0_115 = arith.constant 0 : index
    %c0_116 = arith.constant 0 : index
    %c0_117 = arith.constant 0 : index
    %163 = vector.load %arg2[%c0_115, %c0_116, %c0_117] : memref<5x64x64xf32, #tpu.memory_space<vmem>>, vector<1x64x64xf32>
    %164 = vector.shape_cast %163 : vector<1x64x64xf32> to vector<64x64xf32>
    %165 = vector.extract_strided_slice %162 {offsets = [0, 0], sizes = [64, 16], strides = [1, 1]} : vector<64x20xf32> to vector<64x16xf32>
    %cst_118 = arith.constant dense<0.000000e+00> : vector<64x16xf32>
    %166 = tpu.matmul %164, %165, %cst_118 {dimension_numbers = #tpu.dot_dimension_numbers<[1], [0], [0], [1], [0, 0, 1, 1], [], []>} : vector<64x64xf32>, vector<64x16xf32>, vector<64x16xf32> -> vector<64x16xf32>
    %c1_119 = arith.constant 1 : index
    %c0_120 = arith.constant 0 : index
    %c0_121 = arith.constant 0 : index
    %167 = vector.load %arg2[%c1_119, %c0_120, %c0_121] : memref<5x64x64xf32, #tpu.memory_space<vmem>>, vector<1x64x64xf32>
    %168 = vector.shape_cast %167 : vector<1x64x64xf32> to vector<64x64xf32>
    %169 = vector.extract_strided_slice %162 {offsets = [0, 1], sizes = [64, 16], strides = [1, 1]} : vector<64x20xf32> to vector<64x16xf32>
    %cst_122 = arith.constant dense<0.000000e+00> : vector<64x16xf32>
    %170 = tpu.matmul %168, %169, %cst_122 {dimension_numbers = #tpu.dot_dimension_numbers<[1], [0], [0], [1], [0, 0, 1, 1], [], []>} : vector<64x64xf32>, vector<64x16xf32>, vector<64x16xf32> -> vector<64x16xf32>
    %171 = arith.addf %166, %170 : vector<64x16xf32>
    %c2_123 = arith.constant 2 : index
    %c0_124 = arith.constant 0 : index
    %c0_125 = arith.constant 0 : index
    %172 = vector.load %arg2[%c2_123, %c0_124, %c0_125] : memref<5x64x64xf32, #tpu.memory_space<vmem>>, vector<1x64x64xf32>
    %173 = vector.shape_cast %172 : vector<1x64x64xf32> to vector<64x64xf32>
    %174 = vector.extract_strided_slice %162 {offsets = [0, 2], sizes = [64, 16], strides = [1, 1]} : vector<64x20xf32> to vector<64x16xf32>
    %cst_126 = arith.constant dense<0.000000e+00> : vector<64x16xf32>
    %175 = tpu.matmul %173, %174, %cst_126 {dimension_numbers = #tpu.dot_dimension_numbers<[1], [0], [0], [1], [0, 0, 1, 1], [], []>} : vector<64x64xf32>, vector<64x16xf32>, vector<64x16xf32> -> vector<64x16xf32>
    %176 = arith.addf %171, %175 : vector<64x16xf32>
    %c3_127 = arith.constant 3 : index
    %c0_128 = arith.constant 0 : index
    %c0_129 = arith.constant 0 : index
    %177 = vector.load %arg2[%c3_127, %c0_128, %c0_129] : memref<5x64x64xf32, #tpu.memory_space<vmem>>, vector<1x64x64xf32>
    %178 = vector.shape_cast %177 : vector<1x64x64xf32> to vector<64x64xf32>
    %179 = vector.extract_strided_slice %162 {offsets = [0, 3], sizes = [64, 16], strides = [1, 1]} : vector<64x20xf32> to vector<64x16xf32>
    %cst_130 = arith.constant dense<0.000000e+00> : vector<64x16xf32>
    %180 = tpu.matmul %178, %179, %cst_130 {dimension_numbers = #tpu.dot_dimension_numbers<[1], [0], [0], [1], [0, 0, 1, 1], [], []>} : vector<64x64xf32>, vector<64x16xf32>, vector<64x16xf32> -> vector<64x16xf32>
    %181 = arith.addf %176, %180 : vector<64x16xf32>
    %c4_131 = arith.constant 4 : index
    %c0_132 = arith.constant 0 : index
    %c0_133 = arith.constant 0 : index
    %182 = vector.load %arg2[%c4_131, %c0_132, %c0_133] : memref<5x64x64xf32, #tpu.memory_space<vmem>>, vector<1x64x64xf32>
    %183 = vector.shape_cast %182 : vector<1x64x64xf32> to vector<64x64xf32>
    %184 = vector.extract_strided_slice %162 {offsets = [0, 4], sizes = [64, 16], strides = [1, 1]} : vector<64x20xf32> to vector<64x16xf32>
    %cst_134 = arith.constant dense<0.000000e+00> : vector<64x16xf32>
    %185 = tpu.matmul %183, %184, %cst_134 {dimension_numbers = #tpu.dot_dimension_numbers<[1], [0], [0], [1], [0, 0, 1, 1], [], []>} : vector<64x64xf32>, vector<64x16xf32>, vector<64x16xf32> -> vector<64x16xf32>
    %186 = arith.addf %181, %185 : vector<64x16xf32>
    %cst_135 = arith.constant 0.000000e+00 : f32
    %187 = vector.broadcast %cst_135 : f32 to vector<64x16xf32>
    %188 = arith.maximumf %186, %187 : vector<64x16xf32>
    %189 = vector.extract_strided_slice %130 {offsets = [0, 40], sizes = [16, 10], strides = [1, 1]} : vector<16x50xf32> to vector<16x10xf32>
    %c0_136 = arith.constant 0 : index
    %c0_137 = arith.constant 0 : index
    %c0_138 = arith.constant 0 : index
    %190 = vector.load %arg3[%c0_136, %c0_137, %c0_138] : memref<6x64x16xf32, #tpu.memory_space<vmem>>, vector<1x64x16xf32>
    %191 = vector.shape_cast %190 : vector<1x64x16xf32> to vector<64x16xf32>
    %192 = vector.extract_strided_slice %189 {offsets = [0, 0], sizes = [16, 5], strides = [1, 1]} : vector<16x10xf32> to vector<16x5xf32>
    %cst_139 = arith.constant dense<0.000000e+00> : vector<64x5xf32>
    %193 = tpu.matmul %191, %192, %cst_139 {dimension_numbers = #tpu.dot_dimension_numbers<[1], [0], [0], [1], [0, 0, 1, 1], [], []>} : vector<64x16xf32>, vector<16x5xf32>, vector<64x5xf32> -> vector<64x5xf32>
    %c1_140 = arith.constant 1 : index
    %c0_141 = arith.constant 0 : index
    %c0_142 = arith.constant 0 : index
    %194 = vector.load %arg3[%c1_140, %c0_141, %c0_142] : memref<6x64x16xf32, #tpu.memory_space<vmem>>, vector<1x64x16xf32>
    %195 = vector.shape_cast %194 : vector<1x64x16xf32> to vector<64x16xf32>
    %196 = vector.extract_strided_slice %189 {offsets = [0, 1], sizes = [16, 5], strides = [1, 1]} : vector<16x10xf32> to vector<16x5xf32>
    %cst_143 = arith.constant dense<0.000000e+00> : vector<64x5xf32>
    %197 = tpu.matmul %195, %196, %cst_143 {dimension_numbers = #tpu.dot_dimension_numbers<[1], [0], [0], [1], [0, 0, 1, 1], [], []>} : vector<64x16xf32>, vector<16x5xf32>, vector<64x5xf32> -> vector<64x5xf32>
    %198 = arith.addf %193, %197 : vector<64x5xf32>
    %c2_144 = arith.constant 2 : index
    %c0_145 = arith.constant 0 : index
    %c0_146 = arith.constant 0 : index
    %199 = vector.load %arg3[%c2_144, %c0_145, %c0_146] : memref<6x64x16xf32, #tpu.memory_space<vmem>>, vector<1x64x16xf32>
    %200 = vector.shape_cast %199 : vector<1x64x16xf32> to vector<64x16xf32>
    %201 = vector.extract_strided_slice %189 {offsets = [0, 2], sizes = [16, 5], strides = [1, 1]} : vector<16x10xf32> to vector<16x5xf32>
    %cst_147 = arith.constant dense<0.000000e+00> : vector<64x5xf32>
    %202 = tpu.matmul %200, %201, %cst_147 {dimension_numbers = #tpu.dot_dimension_numbers<[1], [0], [0], [1], [0, 0, 1, 1], [], []>} : vector<64x16xf32>, vector<16x5xf32>, vector<64x5xf32> -> vector<64x5xf32>
    %203 = arith.addf %198, %202 : vector<64x5xf32>
    %c3_148 = arith.constant 3 : index
    %c0_149 = arith.constant 0 : index
    %c0_150 = arith.constant 0 : index
    %204 = vector.load %arg3[%c3_148, %c0_149, %c0_150] : memref<6x64x16xf32, #tpu.memory_space<vmem>>, vector<1x64x16xf32>
    %205 = vector.shape_cast %204 : vector<1x64x16xf32> to vector<64x16xf32>
    %206 = vector.extract_strided_slice %189 {offsets = [0, 3], sizes = [16, 5], strides = [1, 1]} : vector<16x10xf32> to vector<16x5xf32>
    %cst_151 = arith.constant dense<0.000000e+00> : vector<64x5xf32>
    %207 = tpu.matmul %205, %206, %cst_151 {dimension_numbers = #tpu.dot_dimension_numbers<[1], [0], [0], [1], [0, 0, 1, 1], [], []>} : vector<64x16xf32>, vector<16x5xf32>, vector<64x5xf32> -> vector<64x5xf32>
    %208 = arith.addf %203, %207 : vector<64x5xf32>
    %c4_152 = arith.constant 4 : index
    %c0_153 = arith.constant 0 : index
    %c0_154 = arith.constant 0 : index
    %209 = vector.load %arg3[%c4_152, %c0_153, %c0_154] : memref<6x64x16xf32, #tpu.memory_space<vmem>>, vector<1x64x16xf32>
    %210 = vector.shape_cast %209 : vector<1x64x16xf32> to vector<64x16xf32>
    %211 = vector.extract_strided_slice %189 {offsets = [0, 4], sizes = [16, 5], strides = [1, 1]} : vector<16x10xf32> to vector<16x5xf32>
    %cst_155 = arith.constant dense<0.000000e+00> : vector<64x5xf32>
    %212 = tpu.matmul %210, %211, %cst_155 {dimension_numbers = #tpu.dot_dimension_numbers<[1], [0], [0], [1], [0, 0, 1, 1], [], []>} : vector<64x16xf32>, vector<16x5xf32>, vector<64x5xf32> -> vector<64x5xf32>
    %213 = arith.addf %208, %212 : vector<64x5xf32>
    %c5_156 = arith.constant 5 : index
    %c0_157 = arith.constant 0 : index
    %c0_158 = arith.constant 0 : index
    %214 = vector.load %arg3[%c5_156, %c0_157, %c0_158] : memref<6x64x16xf32, #tpu.memory_space<vmem>>, vector<1x64x16xf32>
    %215 = vector.shape_cast %214 : vector<1x64x16xf32> to vector<64x16xf32>
    %216 = vector.extract_strided_slice %189 {offsets = [0, 5], sizes = [16, 5], strides = [1, 1]} : vector<16x10xf32> to vector<16x5xf32>
    %cst_159 = arith.constant dense<0.000000e+00> : vector<64x5xf32>
    %217 = tpu.matmul %215, %216, %cst_159 {dimension_numbers = #tpu.dot_dimension_numbers<[1], [0], [0], [1], [0, 0, 1, 1], [], []>} : vector<64x16xf32>, vector<16x5xf32>, vector<64x5xf32> -> vector<64x5xf32>
    %218 = arith.addf %213, %217 : vector<64x5xf32>
    %cst_160 = arith.constant 0.000000e+00 : f32
    %219 = vector.broadcast %cst_160 : f32 to vector<64x5xf32>
    %220 = arith.maximumf %218, %219 : vector<64x5xf32>
    %c0_161 = arith.constant 0 : index
    %c0_162 = arith.constant 0 : index
    %c0_163 = arith.constant 0 : index
    %221 = vector.load %arg4[%c0_161, %c0_162, %c0_163] : memref<5x64x64xf32, #tpu.memory_space<vmem>>, vector<1x64x64xf32>
    %222 = vector.shape_cast %221 : vector<1x64x64xf32> to vector<64x64xf32>
    %223 = vector.extract_strided_slice %220 {offsets = [0, 0], sizes = [64, 1], strides = [1, 1]} : vector<64x5xf32> to vector<64x1xf32>
    %cst_164 = arith.constant dense<0.000000e+00> : vector<64x1xf32>
    %224 = tpu.matmul %222, %223, %cst_164 {dimension_numbers = #tpu.dot_dimension_numbers<[1], [0], [0], [1], [0, 0, 1, 1], [], []>} : vector<64x64xf32>, vector<64x1xf32>, vector<64x1xf32> -> vector<64x1xf32>
    %c1_165 = arith.constant 1 : index
    %c0_166 = arith.constant 0 : index
    %c0_167 = arith.constant 0 : index
    %225 = vector.load %arg4[%c1_165, %c0_166, %c0_167] : memref<5x64x64xf32, #tpu.memory_space<vmem>>, vector<1x64x64xf32>
    %226 = vector.shape_cast %225 : vector<1x64x64xf32> to vector<64x64xf32>
    %227 = vector.extract_strided_slice %220 {offsets = [0, 1], sizes = [64, 1], strides = [1, 1]} : vector<64x5xf32> to vector<64x1xf32>
    %cst_168 = arith.constant dense<0.000000e+00> : vector<64x1xf32>
    %228 = tpu.matmul %226, %227, %cst_168 {dimension_numbers = #tpu.dot_dimension_numbers<[1], [0], [0], [1], [0, 0, 1, 1], [], []>} : vector<64x64xf32>, vector<64x1xf32>, vector<64x1xf32> -> vector<64x1xf32>
    %229 = arith.addf %224, %228 : vector<64x1xf32>
    %c2_169 = arith.constant 2 : index
    %c0_170 = arith.constant 0 : index
    %c0_171 = arith.constant 0 : index
    %230 = vector.load %arg4[%c2_169, %c0_170, %c0_171] : memref<5x64x64xf32, #tpu.memory_space<vmem>>, vector<1x64x64xf32>
    %231 = vector.shape_cast %230 : vector<1x64x64xf32> to vector<64x64xf32>
    %232 = vector.extract_strided_slice %220 {offsets = [0, 2], sizes = [64, 1], strides = [1, 1]} : vector<64x5xf32> to vector<64x1xf32>
    %cst_172 = arith.constant dense<0.000000e+00> : vector<64x1xf32>
    %233 = tpu.matmul %231, %232, %cst_172 {dimension_numbers = #tpu.dot_dimension_numbers<[1], [0], [0], [1], [0, 0, 1, 1], [], []>} : vector<64x64xf32>, vector<64x1xf32>, vector<64x1xf32> -> vector<64x1xf32>
    %234 = arith.addf %229, %233 : vector<64x1xf32>
    %c3_173 = arith.constant 3 : index
    %c0_174 = arith.constant 0 : index
    %c0_175 = arith.constant 0 : index
    %235 = vector.load %arg4[%c3_173, %c0_174, %c0_175] : memref<5x64x64xf32, #tpu.memory_space<vmem>>, vector<1x64x64xf32>
    %236 = vector.shape_cast %235 : vector<1x64x64xf32> to vector<64x64xf32>
    %237 = vector.extract_strided_slice %220 {offsets = [0, 3], sizes = [64, 1], strides = [1, 1]} : vector<64x5xf32> to vector<64x1xf32>
    %cst_176 = arith.constant dense<0.000000e+00> : vector<64x1xf32>
    %238 = tpu.matmul %236, %237, %cst_176 {dimension_numbers = #tpu.dot_dimension_numbers<[1], [0], [0], [1], [0, 0, 1, 1], [], []>} : vector<64x64xf32>, vector<64x1xf32>, vector<64x1xf32> -> vector<64x1xf32>
    %239 = arith.addf %234, %238 : vector<64x1xf32>
    %c4_177 = arith.constant 4 : index
    %c0_178 = arith.constant 0 : index
    %c0_179 = arith.constant 0 : index
    %240 = vector.load %arg4[%c4_177, %c0_178, %c0_179] : memref<5x64x64xf32, #tpu.memory_space<vmem>>, vector<1x64x64xf32>
    %241 = vector.shape_cast %240 : vector<1x64x64xf32> to vector<64x64xf32>
    %242 = vector.extract_strided_slice %220 {offsets = [0, 4], sizes = [64, 1], strides = [1, 1]} : vector<64x5xf32> to vector<64x1xf32>
    %cst_180 = arith.constant dense<0.000000e+00> : vector<64x1xf32>
    %243 = tpu.matmul %241, %242, %cst_180 {dimension_numbers = #tpu.dot_dimension_numbers<[1], [0], [0], [1], [0, 0, 1, 1], [], []>} : vector<64x64xf32>, vector<64x1xf32>, vector<64x1xf32> -> vector<64x1xf32>
    %244 = arith.addf %239, %243 : vector<64x1xf32>
    %cst_181 = arith.constant 0.000000e+00 : f32
    %245 = vector.broadcast %cst_181 : f32 to vector<64x1xf32>
    %246 = arith.maximumf %244, %245 : vector<64x1xf32>
    %247 = vector.broadcast %246 : vector<64x1xf32> to vector<64x16xf32>
    %248 = arith.mulf %188, %247 : vector<64x16xf32>
    %cst_182 = arith.constant dense<0.000000e+00> : vector<16xf32>
    %249 = vector.multi_reduction <add>, %248, %cst_182 [0] : vector<64x16xf32> to vector<16xf32>
    %250 = vector.shape_cast %249 : vector<16xf32> to vector<1x16xf32>
    %cst_183 = arith.constant 1.000000e-15 : f32
    %251 = vector.broadcast %cst_183 : f32 to vector<1x16xf32>
    %252 = arith.addf %250, %251 : vector<1x16xf32>
    %cst_184 = arith.constant dense<0.000000e+00> : vector<1xf32>
    %253 = vector.multi_reduction <add>, %252, %cst_184 [1] : vector<1x16xf32> to vector<1xf32>
    %254 = vector.shape_cast %253 : vector<1xf32> to vector<1x1xf32>
    %255 = vector.broadcast %254 : vector<1x1xf32> to vector<1x16xf32>
    %256 = arith.divf %252, %255 : vector<1x16xf32>
    %257 = vector.shape_cast %256 : vector<1x16xf32> to vector<1x16xf32>
    %258 = vector.broadcast %257 : vector<1x16xf32> to vector<16x16xf32>
    %259 = tpu.concatenate %129, %258 in 0 : vector<16x16xf32>, vector<16x16xf32> -> vector<32x16xf32>
    %260 = tpu.concatenate %259, %259, %259, %259, %259, %259, %259, %259, %259, %259 in 1 : vector<32x16xf32>, vector<32x16xf32>, vector<32x16xf32>, vector<32x16xf32>, vector<32x16xf32>, vector<32x16xf32>, vector<32x16xf32>, vector<32x16xf32>, vector<32x16xf32>, vector<32x16xf32> -> vector<32x160xf32>
    %c0_185 = arith.constant 0 : index
    %c0_186 = arith.constant 0 : index
    %261 = vector.load %arg5[%c0_185, %c0_186] : memref<50x160xf32, #tpu.memory_space<vmem>>, vector<50x160xf32>
    %cst_187 = arith.constant dense<0.000000e+00> : vector<32x160xf32>
    %262 = tpu.matmul %0, %261, %cst_187 {dimension_numbers = #tpu.dot_dimension_numbers<[1], [0], [0], [1], [0, 0, 1, 1], [], []>} : vector<32x50xf32>, vector<50x160xf32>, vector<32x160xf32> -> vector<32x160xf32>
    %263 = arith.mulf %262, %260 : vector<32x160xf32>
    %c0_188 = arith.constant 0 : index
    %c0_189 = arith.constant 0 : index
    %264 = vector.load %arg6[%c0_188, %c0_189] : memref<160x10xf32, #tpu.memory_space<vmem>>, vector<160x10xf32>
    %cst_190 = arith.constant dense<0.000000e+00> : vector<32x10xf32>
    %265 = tpu.matmul %263, %264, %cst_190 {dimension_numbers = #tpu.dot_dimension_numbers<[1], [0], [0], [1], [0, 0, 1, 1], [], []>} : vector<32x160xf32>, vector<160x10xf32>, vector<32x10xf32> -> vector<32x10xf32>
    %c0_191 = arith.constant 0 : index
    %c0_192 = arith.constant 0 : index
    %266 = vector.load %arg7[%c0_191, %c0_192] : memref<50x10xf32, #tpu.memory_space<vmem>>, vector<50x10xf32>
    %cst_193 = arith.constant dense<0.000000e+00> : vector<32x10xf32>
    %267 = tpu.matmul %0, %266, %cst_193 {dimension_numbers = #tpu.dot_dimension_numbers<[1], [0], [0], [1], [0, 0, 1, 1], [], []>} : vector<32x50xf32>, vector<50x10xf32>, vector<32x10xf32> -> vector<32x10xf32>
    %268 = tpu.concatenate %267, %265 in 1 : vector<32x10xf32>, vector<32x10xf32> -> vector<32x20xf32>
    %c0_194 = arith.constant 0 : index
    %c0_195 = arith.constant 0 : index
    %269 = vector.load %arg9[%c0_194, %c0_195] : memref<20x64xf32, #tpu.memory_space<vmem>>, vector<20x64xf32>
    %cst_196 = arith.constant dense<0.000000e+00> : vector<32x64xf32>
    %270 = tpu.matmul %268, %269, %cst_196 {dimension_numbers = #tpu.dot_dimension_numbers<[1], [0], [0], [1], [0, 0, 1, 1], [], []>} : vector<32x20xf32>, vector<20x64xf32>, vector<32x64xf32> -> vector<32x64xf32>
    %c0_197 = arith.constant 0 : index
    %c0_198 = arith.constant 0 : index
    %271 = vector.load %arg10[%c0_197, %c0_198] : memref<32x32xf32, #tpu.memory_space<vmem>>, vector<32x32xf32>
    %cst_199 = arith.constant dense<0.000000e+00> : vector<32x64xf32>
    %272 = tpu.matmul %271, %270, %cst_199 {dimension_numbers = #tpu.dot_dimension_numbers<[1], [0], [0], [1], [0, 0, 1, 1], [], []>} : vector<32x32xf32>, vector<32x64xf32>, vector<32x64xf32> -> vector<32x64xf32>
    %c0_200 = arith.constant 0 : index
    %c0_201 = arith.constant 0 : index
    %273 = vector.load %arg11[%c0_200, %c0_201] : memref<1x64xf32, #tpu.memory_space<vmem>>, vector<1x64xf32>
    %274 = vector.broadcast %273 : vector<1x64xf32> to vector<32x64xf32>
    %275 = arith.addf %272, %274 : vector<32x64xf32>
    %cst_202 = arith.constant 0.999994993 : f32
    %276 = vector.broadcast %cst_202 : f32 to vector<32x64xf32>
    %277 = arith.mulf %275, %276 : vector<32x64xf32>
    %278 = math.tanh %277 : vector<32x64xf32>
    %c0_203 = arith.constant 0 : index
    %c0_204 = arith.constant 0 : index
    %279 = vector.load %arg12[%c0_203, %c0_204] : memref<64x64xf32, #tpu.memory_space<vmem>>, vector<64x64xf32>
    %cst_205 = arith.constant dense<0.000000e+00> : vector<32x64xf32>
    %280 = tpu.matmul %278, %279, %cst_205 {dimension_numbers = #tpu.dot_dimension_numbers<[1], [0], [0], [1], [0, 0, 1, 1], [], []>} : vector<32x64xf32>, vector<64x64xf32>, vector<32x64xf32> -> vector<32x64xf32>
    %c0_206 = arith.constant 0 : index
    %c0_207 = arith.constant 0 : index
    %281 = vector.load %arg13[%c0_206, %c0_207] : memref<32x32xf32, #tpu.memory_space<vmem>>, vector<32x32xf32>
    %cst_208 = arith.constant dense<0.000000e+00> : vector<32x64xf32>
    %282 = tpu.matmul %281, %280, %cst_208 {dimension_numbers = #tpu.dot_dimension_numbers<[1], [0], [0], [1], [0, 0, 1, 1], [], []>} : vector<32x32xf32>, vector<32x64xf32>, vector<32x64xf32> -> vector<32x64xf32>
    %c0_209 = arith.constant 0 : index
    %c0_210 = arith.constant 0 : index
    %283 = vector.load %arg14[%c0_209, %c0_210] : memref<1x64xf32, #tpu.memory_space<vmem>>, vector<1x64xf32>
    %284 = vector.broadcast %283 : vector<1x64xf32> to vector<32x64xf32>
    %285 = arith.addf %282, %284 : vector<32x64xf32>
    %cst_211 = arith.constant 0.999994993 : f32
    %286 = vector.broadcast %cst_211 : f32 to vector<32x64xf32>
    %287 = arith.mulf %285, %286 : vector<32x64xf32>
    %288 = math.tanh %287 : vector<32x64xf32>
    %c0_212 = arith.constant 0 : index
    %c0_213 = arith.constant 0 : index
    %289 = vector.load %arg15[%c0_212, %c0_213] : memref<64x64xf32, #tpu.memory_space<vmem>>, vector<64x64xf32>
    %cst_214 = arith.constant dense<0.000000e+00> : vector<32x64xf32>
    %290 = tpu.matmul %288, %289, %cst_214 {dimension_numbers = #tpu.dot_dimension_numbers<[1], [0], [0], [1], [0, 0, 1, 1], [], []>} : vector<32x64xf32>, vector<64x64xf32>, vector<32x64xf32> -> vector<32x64xf32>
    %c0_215 = arith.constant 0 : index
    %c0_216 = arith.constant 0 : index
    %291 = vector.load %arg16[%c0_215, %c0_216] : memref<32x32xf32, #tpu.memory_space<vmem>>, vector<32x32xf32>
    %cst_217 = arith.constant dense<0.000000e+00> : vector<32x64xf32>
    %292 = tpu.matmul %291, %290, %cst_217 {dimension_numbers = #tpu.dot_dimension_numbers<[1], [0], [0], [1], [0, 0, 1, 1], [], []>} : vector<32x32xf32>, vector<32x64xf32>, vector<32x64xf32> -> vector<32x64xf32>
    %c0_218 = arith.constant 0 : index
    %c0_219 = arith.constant 0 : index
    %293 = vector.load %arg17[%c0_218, %c0_219] : memref<1x64xf32, #tpu.memory_space<vmem>>, vector<1x64xf32>
    %294 = vector.broadcast %293 : vector<1x64xf32> to vector<32x64xf32>
    %295 = arith.addf %292, %294 : vector<32x64xf32>
    %cst_220 = arith.constant 0.999994993 : f32
    %296 = vector.broadcast %cst_220 : f32 to vector<32x64xf32>
    %297 = arith.mulf %295, %296 : vector<32x64xf32>
    %298 = math.tanh %297 : vector<32x64xf32>
    %299 = arith.addf %298, %278 : vector<32x64xf32>
    %c0_221 = arith.constant 0 : index
    %c0_222 = arith.constant 0 : index
    %300 = vector.load %arg18[%c0_221, %c0_222] : memref<64x64xf32, #tpu.memory_space<vmem>>, vector<64x64xf32>
    %cst_223 = arith.constant dense<0.000000e+00> : vector<32x64xf32>
    %301 = tpu.matmul %299, %300, %cst_223 {dimension_numbers = #tpu.dot_dimension_numbers<[1], [0], [0], [1], [0, 0, 1, 1], [], []>} : vector<32x64xf32>, vector<64x64xf32>, vector<32x64xf32> -> vector<32x64xf32>
    %c0_224 = arith.constant 0 : index
    %c0_225 = arith.constant 0 : index
    %302 = vector.load %arg19[%c0_224, %c0_225] : memref<32x32xf32, #tpu.memory_space<vmem>>, vector<32x32xf32>
    %cst_226 = arith.constant dense<0.000000e+00> : vector<32x64xf32>
    %303 = tpu.matmul %302, %301, %cst_226 {dimension_numbers = #tpu.dot_dimension_numbers<[1], [0], [0], [1], [0, 0, 1, 1], [], []>} : vector<32x32xf32>, vector<32x64xf32>, vector<32x64xf32> -> vector<32x64xf32>
    %c0_227 = arith.constant 0 : index
    %c0_228 = arith.constant 0 : index
    %304 = vector.load %arg20[%c0_227, %c0_228] : memref<1x64xf32, #tpu.memory_space<vmem>>, vector<1x64xf32>
    %305 = vector.broadcast %304 : vector<1x64xf32> to vector<32x64xf32>
    %306 = arith.addf %303, %305 : vector<32x64xf32>
    %cst_229 = arith.constant 0.999994993 : f32
    %307 = vector.broadcast %cst_229 : f32 to vector<32x64xf32>
    %308 = arith.mulf %306, %307 : vector<32x64xf32>
    %309 = math.tanh %308 : vector<32x64xf32>
    %c0_230 = arith.constant 0 : index
    %c0_231 = arith.constant 0 : index
    %310 = vector.load %arg21[%c0_230, %c0_231] : memref<64x64xf32, #tpu.memory_space<vmem>>, vector<64x64xf32>
    %cst_232 = arith.constant dense<0.000000e+00> : vector<32x64xf32>
    %311 = tpu.matmul %309, %310, %cst_232 {dimension_numbers = #tpu.dot_dimension_numbers<[1], [0], [0], [1], [0, 0, 1, 1], [], []>} : vector<32x64xf32>, vector<64x64xf32>, vector<32x64xf32> -> vector<32x64xf32>
    %c0_233 = arith.constant 0 : index
    %c0_234 = arith.constant 0 : index
    %312 = vector.load %arg22[%c0_233, %c0_234] : memref<32x32xf32, #tpu.memory_space<vmem>>, vector<32x32xf32>
    %cst_235 = arith.constant dense<0.000000e+00> : vector<32x64xf32>
    %313 = tpu.matmul %312, %311, %cst_235 {dimension_numbers = #tpu.dot_dimension_numbers<[1], [0], [0], [1], [0, 0, 1, 1], [], []>} : vector<32x32xf32>, vector<32x64xf32>, vector<32x64xf32> -> vector<32x64xf32>
    %c0_236 = arith.constant 0 : index
    %c0_237 = arith.constant 0 : index
    %314 = vector.load %arg23[%c0_236, %c0_237] : memref<1x64xf32, #tpu.memory_space<vmem>>, vector<1x64xf32>
    %315 = vector.broadcast %314 : vector<1x64xf32> to vector<32x64xf32>
    %316 = arith.addf %313, %315 : vector<32x64xf32>
    %cst_238 = arith.constant 0.999994993 : f32
    %317 = vector.broadcast %cst_238 : f32 to vector<32x64xf32>
    %318 = arith.mulf %316, %317 : vector<32x64xf32>
    %319 = math.tanh %318 : vector<32x64xf32>
    %320 = arith.addf %319, %299 : vector<32x64xf32>
    %c0_239 = arith.constant 0 : index
    %c0_240 = arith.constant 0 : index
    %321 = vector.load %arg24[%c0_239, %c0_240] : memref<64x20xf32, #tpu.memory_space<vmem>>, vector<64x20xf32>
    %cst_241 = arith.constant dense<0.000000e+00> : vector<32x20xf32>
    %322 = tpu.matmul %320, %321, %cst_241 {dimension_numbers = #tpu.dot_dimension_numbers<[1], [0], [0], [1], [0, 0, 1, 1], [], []>} : vector<32x64xf32>, vector<64x20xf32>, vector<32x20xf32> -> vector<32x20xf32>
    %c0_242 = arith.constant 0 : index
    %c0_243 = arith.constant 0 : index
    %323 = vector.load %arg25[%c0_242, %c0_243] : memref<32x32xf32, #tpu.memory_space<vmem>>, vector<32x32xf32>
    %cst_244 = arith.constant dense<0.000000e+00> : vector<32x20xf32>
    %324 = tpu.matmul %323, %322, %cst_244 {dimension_numbers = #tpu.dot_dimension_numbers<[1], [0], [0], [1], [0, 0, 1, 1], [], []>} : vector<32x32xf32>, vector<32x20xf32>, vector<32x20xf32> -> vector<32x20xf32>
    %c0_245 = arith.constant 0 : index
    %c0_246 = arith.constant 0 : index
    %325 = vector.load %arg26[%c0_245, %c0_246] : memref<1x20xf32, #tpu.memory_space<vmem>>, vector<1x20xf32>
    %326 = vector.broadcast %325 : vector<1x20xf32> to vector<32x20xf32>
    %327 = arith.addf %324, %326 : vector<32x20xf32>
    %328 = vector.extract_strided_slice %327 {offsets = [0, 0], sizes = [32, 10], strides = [1, 1]} : vector<32x20xf32> to vector<32x10xf32>
    %329 = arith.addf %328, %267 : vector<32x10xf32>
    %c0_247 = arith.constant 0 : index
    %c0_248 = arith.constant 0 : index
    %330 = vector.load %arg8[%c0_247, %c0_248] : memref<10x35xf32, #tpu.memory_space<vmem>>, vector<10x35xf32>
    %cst_249 = arith.constant dense<0.000000e+00> : vector<32x35xf32>
    %331 = tpu.matmul %329, %330, %cst_249 {dimension_numbers = #tpu.dot_dimension_numbers<[1], [0], [0], [1], [0, 0, 1, 1], [], []>} : vector<32x10xf32>, vector<10x35xf32>, vector<32x35xf32> -> vector<32x35xf32>
    %c0_250 = arith.constant 0 : index
    %c0_251 = arith.constant 0 : index
    %332 = vector.load %arg27[%c0_250, %c0_251] : memref<32x35xf32, #tpu.memory_space<vmem>>, vector<32x35xf32>
    tpu.vector_store %arg27[%c0_250, %c0_251], %331 {strides = array<i32>} : memref<32x35xf32, #tpu.memory_space<vmem>>, vector<32x35xf32>,
    return
  }
}

</mosaic_0001>

<bundles_post_ra>
// kernel: rnn_att_forward.2
= control target key start
LH: loop header
LB: loop body
LE: loop exit
PB: predicated region body
PF: predicated region fallthrough
CT: control target
= control target key end

     0   :  { %vm43_vm0 = vcmask 1041408   ;;  %vm599_vm1 = vmmov 1   ;;  %vm30_vm3 = vcmask 80896   ;;  %s731_s0 = inlined_call_operand.vmem [shape: f32[32,10], index: 0, kind: input, shape index: {}]   ;;  %s732_s1 = inlined_call_operand.vmem [shape: f32[3,10,50], index: 1, kind: input, shape index: {}]   ;;  %s733_s2 = inlined_call_operand.vmem [shape: f32[3,1,50], index: 2, kind: input, shape index: {}]   ;;  %s734_s3 = inlined_call_operand.vmem [shape: f32[32,50], index: 3, kind: output, shape index: {0}]   ;;  %s735_s4 = inlined_call_operand.hbm [shape: f32[32,50], index: 4, kind: output, shape index: {1}]  }
   0x1   :  { %v21_v0 = vld [vmem:[%s732_s1] sm:$0xff]  ;;  %v22_v1 = vld [vmem:[%s732_s1 + $0x8] sm:$0x3]  ;;  %vm637_vm2 = vmpackc.low %vm43_vm0, %vm599_vm1 }
   0x2   :  { %v17_v2 = vld [vmem:[%s731_s0] sm:$0xff]  ;;  %v503_v3 = vpack.c.bf16 %v22_v1, %v21_v0  ;;  %v19_v5 = vld [vmem:[%s731_s0 + $0x10] sm:$0xff]  ;;  %v443_v7 = vld [vmem:[%s732_s1 + $0x28] sm:$0x3] }
   0x3   :  { %477 = vmatprep.mubr.msk.f32.mxu0 %vm30_vm3, %v17_v2  ;;  %480 = vmatprep.mubr.msk.f32.mxu1 %vm30_vm3, %v19_v5  ;;  %v442_v6 = vld [vmem:[%s732_s1 + $0x20] sm:$0xff]  ;;  %v433_v9 = vld [vmem:[%s732_s1 + $0x10] sm:$0xff]  ;;  %v434_v10 = vld [vmem:[%s732_s1 + $0x18] sm:$0x3] }
   0x4   :  { %505 = vmatprep.subr.msk.bf16.mxu0 %vm637_vm2, %v503_v3  ;;  %521 = vmatprep.subr.msk.bf16.mxu1 %vm637_vm2, %v503_v3  ;;  %v515_v8 = vpack.c.bf16 %v443_v7, %v442_v6 }
   0x5   :  { %10 = vsyncpa [#allocation3], 0  ;;  %508 = vmatpush3.bf16.msk.msra.mxu0 %vm637_vm2, %v503_v3  ;;  %522 = vmatpush3.bf16.msk.msra.mxu1 %vm637_vm2, %v503_v3  ;;  %v18_v11 = vld [vmem:[%s731_s0 + $0x8] sm:$0xff]  ;;  %v20_v12 = vld [vmem:[%s731_s0 + $0x18] sm:$0xff]  ;;  %v509_v13 = vpack.c.bf16 %v434_v10, %v433_v9  ;;  %vm394_vm4 = vcmask 408576  }
   0x6   :  { %517 = vmatprep.subr.msk.bf16.mxu0 %vm637_vm2, %v515_v8  ;;  %v423_v14 = vld [vmem:[%s733_s2] ss:$0 sm:$0xff]  ;;  %v445_v23 = vld [vmem:[%s733_s2 + $0x2] ss:$0 sm:$0xff]  ;;  %v436_v32 = vld [vmem:[%s733_s2 + $0x1] ss:$0 sm:$0xff] }
   0x7   :  { %511 = vmatprep.subr.msk.bf16.mxu1 %vm637_vm2, %v509_v13  ;;  %s600_s2 = smov [#allocation2]  }
   0x8   :  { %478 = vmatmul.mubr.msk.f32.vlgmr.msra.gmra.mrb[0].mxu0 %vm30_vm3, %v18_v11  ;;  %481 = vmatmul.mubr.msk.f32.vlgmr.msra.gmra.mrb[0].mxu1 %vm30_vm3, %v20_v12  ;;  %s410_s13 = sshll.u32 %s600_s2, 4  ;;  %s411_s13 = int_to_ptr.vmem [resolvable:$true] %s410_s13 }
   0x9   :  { %520 = vmatpush3.bf16.msk.msra.mxu0 %vm637_vm2, %v515_v8  ;;  %514 = vmatpush3.bf16.msk.msra.mxu1 %vm637_vm2, %v509_v13  ;;  %s575_s14 = scalar_lea.vmem %s411_s13, 512  ;;  %p580_p1 = scmp.lt.s32.totalorder %s411_s13, %s411_s13 }
   0xa   :  { %497 = vmatprep.mubr.msk.f32.mxu0 %vm30_vm3, %v17_v2  ;;  %487 = vmatprep.mubr.msk.f32.mxu1 %vm30_vm3, %v17_v2  ;;  %p576_p0 = scmp.ne.s32.totalorder %s411_s13, %s575_s14  ;;  %p581_p2 = scmp.lt.s32.totalorder %s575_s14, %s575_s14 }
   0xc   :  { %498 = vmatmul.mubr.msk.f32.vlgmr.msra.gmra.mrb[2].mxu0 %vm30_vm3, %v18_v11  ;;  %488 = vmatmul.mubr.msk.f32.vlgmr.msra.gmra.mrb[2].mxu1 %vm30_vm3, %v18_v11  ;;  %p582_p3 = por %p581_p2, %p580_p1 }
   0xd   :  { %500 = vmatprep.mubr.msk.f32.mxu0 %vm30_vm3, %v19_v5  ;;  %490 = vmatprep.mubr.msk.f32.mxu1 %vm30_vm3, %v19_v5 }
   0xe   :  { %p583_p4 = pnand %p582_p3, %p576_p0 }
  0x10   :  { %501 = vmatmul.mubr.msk.f32.gmra.mrb[4].mxu0 %vm30_vm3, %v20_v12  ;;  %491 = vmatmul.mubr.msk.f32.gmra.mrb[4].mxu1 %vm30_vm3, %v20_v12 }
  0xdb   :  { %v479_v15 = vpop.f32.mrb[0].mxu0  ;;  %v482_v16 = vpop.f32.mrb[0].mxu1 }
  0xdc   :  { %v119_v17 = vadd.f32 %v479_v15, %v423_v14  ;;  %v129_v18 = vadd.f32 %v482_v16, %v423_v14  ;;  %v113_v19 = vpop.f32.mrb[1].mxu0  ;;  %v123_v20 = vpop.f32.mrb[1].mxu1 }
  0xdd   :  { %v114_v21 = vadd.f32 %v423_v14, %v113_v19  ;;  %v124_v22 = vadd.f32 %v423_v14, %v123_v20 }
  0xde   :  { %v430_v24 = vmul.f32 -1.442695, %v119_v17  ;;  %v432_v25 = vmul.f32 -1.442695, %v129_v18 }
  0xdf   :  { %v429_v26 = vmul.f32 -1.442695, %v114_v21  ;;  %v431_v27 = vmul.f32 -1.442695, %v124_v22  ;;  %v499_v28 = vpop.f32.mrb[2].mxu0  ;;  %v489_v29 = vpop.f32.mrb[2].mxu1 }
  0xe0   :  { %527 = vpow2.f32 %v430_v24  ;;  %v345_v30 = vadd.f32 %v499_v28, %v445_v23  ;;  %v339_v31 = vpop.f32.mrb[3].mxu0  ;;  %v236_v33 = vpop.f32.mrb[3].mxu1  ;;  %v242_v37 = vadd.f32 %v489_v29, %v436_v32 }
  0xe1   :  { %529 = vpow2.f32 %v432_v25  ;;  %v340_v34 = vadd.f32 %v445_v23, %v339_v31  ;;  %v237_v44 = vadd.f32 %v436_v32, %v236_v33 }
  0xe2   :  { %531 = vpow2.f32 %v429_v26  ;;  %v452_v35 = vmul.f32 -1.442695, %v345_v30 }
  0xe3   :  { %533 = vpow2.f32 %v431_v27  ;;  %v451_v36 = vmul.f32 -1.442695, %v340_v34  ;;  %v502_v38 = vpop.f32.mrb[4].mxu0  ;;  %v492_v39 = vpop.f32.mrb[4].mxu1 }
  0xe4   :  { %v355_v40 = vadd.f32 %v502_v38, %v445_v23  ;;  %v349_v41 = vpop.f32.mrb[5].mxu0  ;;  %v246_v42 = vpop.f32.mrb[5].mxu1  ;;  %535 = vpow2.f32 %v452_v35  ;;  %v252_v47 = vadd.f32 %v492_v39, %v436_v32 }
  0xe5   :  { %v350_v43 = vadd.f32 %v445_v23, %v349_v41  ;;  %537 = vpow2.f32 %v451_v36  ;;  %v247_v48 = vadd.f32 %v436_v32, %v246_v42 }
  0xe6   :  { %v454_v45 = vmul.f32 -1.442695, %v355_v40  ;;  %539 = vtanh.f32 %v242_v37 }
  0xe7   :  { %v453_v46 = vmul.f32 -1.442695, %v350_v43 }
  0xe8   :  { %541 = vpow2.f32 %v454_v45 }
  0xe9   :  { %543 = vpow2.f32 %v453_v46 }
  0xea   :  { %v528_v49 = vpop.eup %527  ;;  %545 = vtanh.f32 %v237_v44 }
  0xeb   :  { %v530_v50 = vpop.eup %529  ;;  %v145_v51 = vadd.f32 1.0, %v528_v49  ;;  %547 = vtanh.f32 %v252_v47 }
  0xec   :  { %v532_v52 = vpop.eup %531  ;;  %v147_v53 = vadd.f32 1.0, %v530_v50  ;;  %549 = vtanh.f32 %v247_v48 }
  0xed   :  { %v534_v54 = vpop.eup %533  ;;  %551 = vrcp.f32 %v145_v51  ;;  %v144_v55 = vadd.f32 1.0, %v532_v52 }
  0xee   :  { %553 = vrcp.f32 %v147_v53  ;;  %v146_v56 = vadd.f32 1.0, %v534_v54  ;;  %v536_v57 = vpop.eup %535 }
  0xef   :  { %555 = vrcp.f32 %v144_v55  ;;  %v538_v58 = vpop.eup %537  ;;  %v371_v61 = vadd.f32 1.0, %v536_v57 }
  0xf0   :  { %557 = vrcp.f32 %v146_v56  ;;  %v540_v59 = vpop.eup %539  ;;  %v370_v63 = vadd.f32 1.0, %v538_v58 }
  0xf1   :  { %559 = vrcp.f32 %v371_v61 }
  0xf2   :  { %v542_v60 = vpop.eup %541  ;;  %561 = vrcp.f32 %v370_v63 }
  0xf3   :  { %v544_v62 = vpop.eup %543  ;;  %v373_v1 = vadd.f32 1.0, %v542_v60 }
  0xf4   :  { %v546_v0 = vpop.eup %545  ;;  %v372_v3 = vadd.f32 1.0, %v544_v62 }
  0xf5   :  { %v548_v2 = vpop.eup %547  ;;  %563 = vrcp.f32 %v373_v1 }
  0xf6   :  { %v550_v4 = vpop.eup %549  ;;  %565 = vrcp.f32 %v372_v3 }
  0xf7   :  { %v552_v5 = vpop.eup %551 }
  0xf8   :  { %v554_v6 = vpop.eup %553  ;;  %v383_v7 = vmul.f32 %v552_v5, %v540_v59 }
  0xf9   :  { %v556_v8 = vpop.eup %555  ;;  %v385_v9 = vmul.f32 %v554_v6, %v548_v2 }
  0xfa   :  { %v558_v10 = vpop.eup %557  ;;  %567 = vtanh.f32 %v383_v7  ;;  %400 = vst.msk [vmem:[#allocation2 + $0x8] sm:$0xff] %vm394_vm4, %v383_v7  ;;  %v382_v11 = vmul.f32 %v556_v8, %v546_v0 }
  0xfb   :  { %569 = vtanh.f32 %v385_v9  ;;  %402 = vst.msk [vmem:[#allocation2 + $0x18] sm:$0xff] %vm394_vm4, %v385_v9  ;;  %v384_v12 = vmul.f32 %v558_v10, %v550_v4 }
  0xfc   :  { %571 = vtanh.f32 %v382_v11  ;;  %399 = vst.msk [vmem:[#allocation2] sm:$0xff] %vm394_vm4, %v382_v11 }
  0xfd   :  { %573 = vtanh.f32 %v384_v12  ;;  %401 = vst.msk [vmem:[#allocation2 + $0x10] sm:$0xff] %vm394_vm4, %v384_v12 }
  0xfe   :  { %586 = shalt.err (!%p583_p4)
}
  0xff   :  { %s587_s17 = scalar_lea.hbm %s735_s4, 512 }
 0x100   :  { %p588_p5 = scmp.ne.s32.totalorder %s735_s4, %s587_s17  ;;  %p591_p6 = scmp.lt.u32.totalorder %s587_s17, %s735_s4 }
 0x102   :  { %p593_p7 = pnand %p591_p6, %p588_p5 }
 0x104   :  { %596 = shalt.err (!%p593_p7)
}
 0x105   :  { %s601_s22 = smov 128   ;;  %s602_s23 = smov 8   ;;  %v560_v13 = vpop.eup %559 }
 0x106   :  { %416 = dma.vmem_to_hbm [thread:$0]  %s411_s13, 512, %s735_s4, [#allocation3], %s601_s22, %s601_s22, %s602_s23   ;;  %v562_v14 = vpop.eup %561 }
 0x107   :  { %v564_v15 = vpop.eup %563 }
 0x108   :  { %v566_v16 = vpop.eup %565 }
 0x109   :  { %v568_v17 = vpop.eup %567 }
 0x10a   :  { %v570_v18 = vpop.eup %569  ;;  %v391_v19 = vmul.f32 %v568_v17, %v560_v13 }
 0x10b   :  { %v572_v20 = vpop.eup %571  ;;  %v393_v21 = vmul.f32 %v570_v18, %v564_v15 }
 0x10c   :  { %v574_v22 = vpop.eup %573  ;;  %396 = vst.msk [vmem:[%s734_s3 + $0x8] sm:$0xff] %vm394_vm4, %v391_v19  ;;  %v390_v23 = vmul.f32 %v572_v20, %v562_v14 }
 0x10d   :  { %398 = vst.msk [vmem:[%s734_s3 + $0x18] sm:$0xff] %vm394_vm4, %v393_v21  ;;  %v392_v24 = vmul.f32 %v574_v22, %v566_v16 }
 0x10e   :  { %395 = vst.msk [vmem:[%s734_s3] sm:$0xff] %vm394_vm4, %v390_v23 }
 0x10f   :  { %397 = vst.msk [vmem:[%s734_s3 + $0x10] sm:$0xff] %vm394_vm4, %v392_v24 }
 0x110   :  { %597 = dma.done.wait [#allocation3], 512  }
 0x111   :  { %598 = vsyncadd [#allocation3], 4294966784 }
 0x112   :  { %422 = vsyncpa [#allocation3], 1 }

// kernel: rnn_att_forward.3
= control target key start
LH: loop header
LB: loop body
LE: loop exit
PB: predicated region body
PF: predicated region fallthrough
CT: control target
= control target key end

     0   :  { %s14780_s0 = inlined_call_operand.vmem [shape: f32[32,50], index: 0, kind: input, shape index: {}]   ;;  %s14781_s1 = inlined_call_operand.vmem [shape: f32[6,64,16], index: 1, kind: input, shape index: {}]   ;;  %s14782_s2 = inlined_call_operand.vmem [shape: f32[5,64,64], index: 2, kind: input, shape index: {}]   ;;  %s14783_s3 = inlined_call_operand.vmem [shape: f32[6,64,16], index: 3, kind: input, shape index: {}]   ;;  %s14784_s4 = inlined_call_operand.vmem [shape: f32[5,64,64], index: 4, kind: input, shape index: {}]   ;;  %s14785_s5 = inlined_call_operand.vmem [shape: f32[50,160], index: 5, kind: input, shape index: {}]   ;;  %s14786_s6 = inlined_call_operand.vmem [shape: f32[160,10], index: 6, kind: input, shape index: {}]   ;;  %s14787_s7 = inlined_call_operand.vmem [shape: f32[50,10], index: 7, kind: input, shape index: {}]   ;;  %s14788_s8 = inlined_call_operand.vmem [shape: f32[10,35], index: 8, kind: input, shape index: {}]   ;;  %s14789_s9 = inlined_call_operand.vmem [shape: f32[20,64], index: 9, kind: input, shape index: {}]   ;;  %s14790_s10 = inlined_call_operand.vmem [shape: f32[32,32], index: 10, kind: input, shape index: {}]   ;;  %s14791_s11 = inlined_call_operand.vmem [shape: f32[1,64], index: 11, kind: input, shape index: {}]   ;;  %s14792_s12 = inlined_call_operand.vmem [shape: f32[64,64], index: 12, kind: input, shape index: {}]   ;;  %s14793_s13 = inlined_call_operand.vmem [shape: f32[32,32], index: 13, kind: input, shape index: {}]   ;;  %s14794_s14 = inlined_call_operand.vmem [shape: f32[1,64], index: 14, kind: input, shape index: {}]   ;;  %s14795_s15 = inlined_call_operand.vmem [shape: f32[64,64], index: 15, kind: input, shape index: {}]   ;;  %s14796_s16 = inlined_call_operand.vmem [shape: f32[32,32], index: 16, kind: input, shape index: {}]   ;;  %s14797_s17 = inlined_call_operand.vmem [shape: f32[1,64], index: 17, kind: input, shape index: {}]   ;;  %s14798_s18 = inlined_call_operand.vmem [shape: f32[64,64], index: 18, kind: input, shape index: {}]   ;;  %s14799_s19 = inlined_call_operand.vmem [shape: f32[32,32], index: 19, kind: input, shape index: {}]   ;;  %s14800_s20 = inlined_call_operand.vmem [shape: f32[1,64], index: 20, kind: input, shape index: {}]   ;;  %s14801_s21 = inlined_call_operand.vmem [shape: f32[64,64], index: 21, kind: input, shape index: {}]   ;;  %s14802_s22 = inlined_call_operand.vmem [shape: f32[32,32], index: 22, kind: input, shape index: {}]   ;;  %s14803_s23 = inlined_call_operand.vmem [shape: f32[1,64], index: 23, kind: input, shape index: {}]   ;;  %s14804_s24 = inlined_call_operand.vmem [shape: f32[64,20], index: 24, kind: input, shape index: {}]   ;;  %s14805_s25 = inlined_call_operand.vmem [shape: f32[32,32], index: 25, kind: input, shape index: {}]   ;;  %s14806_s26 = inlined_call_operand.vmem [shape: f32[1,20], index: 26, kind: input, shape index: {}]   ;;  %s14807_s27 = inlined_call_operand.hbm [shape: f32[32,35], index: 27, kind: output, shape index: {}]  }
   0x1   :  { %14835 = sst [smem:[#allocation5_spill]] %s14780_s0 }
   0x2   :  { %14836 = sst [smem:[#allocation6_spill]] %s14781_s1 }
   0x3   :  { %14837 = sst [smem:[#allocation7_spill]] %s14782_s2 }
   0x4   :  { %14838 = sst [smem:[#allocation8_spill]] %s14783_s3 }
   0x5   :  { %14839 = sst [smem:[#allocation9_spill]] %s14784_s4 }
   0x6   :  { %14840 = sst [smem:[#allocation10_spill]] %s14785_s5 }
   0x7   :  { %14841 = sst [smem:[#allocation11_spill]] %s14786_s6 }
   0x8   :  { %14842 = sst [smem:[#allocation12_spill]] %s14787_s7 }
   0x9   :  { %14843 = sst [smem:[#allocation13_spill]] %s14788_s8 }
   0xa   :  { %14844 = sst [smem:[#allocation14_spill]] %s14789_s9 }
   0xb   :  { %14845 = sst [smem:[#allocation15_spill]] %s14790_s10 }
   0xc   :  { %14846 = sst [smem:[#allocation16_spill]] %s14791_s11 }
   0xd   :  { %14847 = sst [smem:[#allocation17_spill]] %s14807_s27 }
   0xe   :  { %s14848_s8 = sld [smem:[#allocation5_spill]]  ;;  %s14849_s0 = sld [smem:[#allocation6_spill]]  ;;  %vm116_vm0 = vcmask 130048  }
  0x14   :  { %v87_v0 = vld [vmem:[%s14848_s8] sm:$0xff]  ;;  %v88_v1 = vld [vmem:[%s14848_s8 + $0x8] sm:$0xff] }
  0x15   :  { %v8301_v2 = vld [vmem:[%s14849_s0 + $0x40] sm:$0xff]  ;;  %v12519_v3 = vpack.i.bf16 %v88_v1, %v87_v0 }
  0x16   :  { %9568 = vmatprep.mubr.msk.f32.mxu0 %vm116_vm0, %v8301_v2 }
  0x17   :  { %32 = vsyncpa [#allocation3], 0  ;;  %s14832_s10 = smov 127   ;;  %s14828_s29 = smov 125   ;;  %v10748_v8 = vpack.c.bf16 %v88_v1, %v87_v0  ;;  %v8302_v12 = vld [vmem:[%s14849_s0 + $0x48] sm:$0xff]  ;;  %v8303_v13 = vld [vmem:[%s14849_s0 + $0x50] sm:$0xff] }
  0x18   :  { %11667 = vrot.lane.b32.xlu0 %v12519_v3, %s14832_s10  ;;  %11677 = vrot.lane.b32.xlu1 %v12519_v3, %s14828_s29  ;;  %s14830_s1 = smov 126   ;;  %s14826_s6 = smov 124   ;;  %v8304_v15 = vld [vmem:[%s14849_s0 + $0x58] sm:$0xff]  ;;  %v8305_v16 = vld [vmem:[%s14849_s0 + $0x60] sm:$0xff]  ;;  %vm1040_vm1 = vcmask 523264   ;;  %vm6511_vm2 = vcmask 1041408  }
  0x19   :  { %s14825_s11 = smov 123   ;;  %v8306_v17 = vld [vmem:[%s14849_s0 + $0x68] sm:$0xff]  ;;  %v8307_v18 = vld [vmem:[%s14849_s0 + $0x70] sm:$0xff]  ;;  %v8308_v20 = vld [vmem:[%s14849_s0 + $0x78] sm:$0xff]  ;;  %s14850_s2 = sld [smem:[#allocation7_spill]]  ;;  %vm6502_vm3 = vcmask 408576  }
  0x1a   :  { %v91_v21 = vld [vmem:[%s14849_s0] sm:$0xff]  ;;  %v92_v24 = vld [vmem:[%s14849_s0 + $0x8] sm:$0xff]  ;;  %v93_v25 = vld [vmem:[%s14849_s0 + $0x10] sm:$0xff]  ;;  %s14824_s3 = smov 87   ;;  %s14823_s7 = smov 88   ;;  %vm6471_vm4 = vcmask 261120  }
  0x1b   :  { %v94_v27 = vld [vmem:[%s14849_s0 + $0x18] sm:$0xff]  ;;  %v95_v28 = vld [vmem:[%s14849_s0 + $0x20] sm:$0xff]  ;;  %v96_v29 = vld [vmem:[%s14849_s0 + $0x28] sm:$0xff]  ;;  %s14822_s4 = smov 86   ;;  %s14821_s30 = smov 85   ;;  %vm6474_vm5 = vcmask 392192  }
  0x1c   :  { %11672 = vrot.lane.b32.xlu0 %v12519_v3, %s14830_s1  ;;  %11682 = vrot.lane.b32.xlu1 %v12519_v3, %s14826_s6  ;;  %v97_v30 = vld [vmem:[%s14849_s0 + $0x30] sm:$0xff]  ;;  %v98_v32 = vld [vmem:[%s14849_s0 + $0x38] sm:$0xff]  ;;  %s14820_s9 = smov 84   ;;  %s14819_s5 = smov 83   ;;  %vm6479_vm6 = vcmask 654336   ;;  %vm6482_vm7 = vcmask 785408  }
  0x1d   :  { %v8325_v33 = vld [vmem:[%s14849_s0 + $0x80] sm:$0xff]  ;;  %v8326_v36 = vld [vmem:[%s14849_s0 + $0x88] sm:$0xff]  ;;  %v8327_v37 = vld [vmem:[%s14849_s0 + $0x90] sm:$0xff]  ;;  %s14860_s28 = smov 85   ;;  %vm6485_vm8 = vcmask 916480   ;;  %vm6864_vm9 = vcmask 1043456  }
  0x1e   :  { %v8328_v39 = vld [vmem:[%s14849_s0 + $0x98] sm:$0xff]  ;;  %v8329_v40 = vld [vmem:[%s14849_s0 + $0xa0] sm:$0xff]  ;;  %v8330_v41 = vld [vmem:[%s14849_s0 + $0xa8] sm:$0xff]  ;;  %vm6843_vm10 = vcmask 80896   ;;  %vm6851_vm11 = vcmask 162816   ;;  %vm12366_vm12 = vmmov 1  }
  0x1f   :  { %v8331_v42 = vld [vmem:[%s14849_s0 + $0xb0] sm:$0xff]  ;;  %v8332_v44 = vld [vmem:[%s14849_s0 + $0xb8] sm:$0xff]  ;;  %v8341_v45 = vld [vmem:[%s14849_s0 + $0xc0] sm:$0xff]  ;;  %vm8280_vm14 = vcmask 285696  }
  0x20   :  { %11687 = vrot.lane.b32.xlu0 %v12519_v3, %s14825_s11  ;;  %v8342_v48 = vld [vmem:[%s14849_s0 + $0xc8] sm:$0xff]  ;;  %v8343_v49 = vld [vmem:[%s14849_s0 + $0xd0] sm:$0xff]  ;;  %v8344_v51 = vld [vmem:[%s14849_s0 + $0xd8] sm:$0xff]  ;;  %s14857_s11 = smov 87  }
  0x21   :  { %v8345_v52 = vld [vmem:[%s14849_s0 + $0xe0] sm:$0xff]  ;;  %v8346_v53 = vld [vmem:[%s14849_s0 + $0xe8] sm:$0xff]  ;;  %v8347_v54 = vld [vmem:[%s14849_s0 + $0xf0] sm:$0xff] }
  0x22   :  { %v8348_v55 = vld [vmem:[%s14849_s0 + $0xf8] sm:$0xff]  ;;  %v8357_v56 = vld [vmem:[%s14849_s0 + $0x100] sm:$0xff]  ;;  %v8358_v57 = vld [vmem:[%s14849_s0 + $0x108] sm:$0xff] }
  0x23   :  { %v8359_v58 = vld [vmem:[%s14849_s0 + $0x110] sm:$0xff]  ;;  %v8360_v59 = vld [vmem:[%s14849_s0 + $0x118] sm:$0xff]  ;;  %v8361_v60 = vld [vmem:[%s14849_s0 + $0x120] sm:$0xff] }
  0x24   :  { %v8362_v61 = vld [vmem:[%s14849_s0 + $0x128] sm:$0xff]  ;;  %v8363_v62 = vld [vmem:[%s14849_s0 + $0x130] sm:$0xff]  ;;  %v8364_v63 = vld [vmem:[%s14849_s0 + $0x138] sm:$0xff] }
  0x25   :  { %v8373_v0 = vld [vmem:[%s14849_s0 + $0x140] sm:$0xff]  ;;  %v8374_v1 = vld [vmem:[%s14849_s0 + $0x148] sm:$0xff]  ;;  %v8375_v2 = vld [vmem:[%s14849_s0 + $0x150] sm:$0xff] }
  0x26   :  { %vm11347_vm13 = vmpackc.low %vm6511_vm2, %vm12366_vm12 }
  0x8a   :  { %v11668_v4 = vpop.permute.xlu0 %11667  ;;  %v11678_v19 = vpop.permute.xlu1 %11677 }
  0x8b   :  { %v11670_v5 = vunpack.i.h.bf16 %v11668_v4  ;;  %v11669_v6 = vunpack.i.l.bf16 %v11668_v4  ;;  %v11680_v22 = vunpack.i.h.bf16 %v11678_v19  ;;  %v11679_v23 = vunpack.i.l.bf16 %v11678_v19  ;;  %v8376_v4 = vld [vmem:[%s14849_s0 + $0x158] sm:$0xff] }
  0x8d   :  { %v10744_v7 = vpack.c.bf16 %v11670_v5, %v11669_v6  ;;  %v10756_v26 = vpack.c.bf16 %v11680_v22, %v11679_v23  ;;  %v8377_v5 = vld [vmem:[%s14849_s0 + $0x160] sm:$0xff]  ;;  %v8378_v6 = vld [vmem:[%s14849_s0 + $0x168] sm:$0xff] }
  0x8e   :  { %v11673_v9 = vpop.permute.xlu0 %11672  ;;  %v11683_v31 = vpop.permute.xlu1 %11682 }
  0x8f   :  { %10745 = vmatprep.subr.bf16.mxu0 %v10744_v7  ;;  %v11675_v10 = vunpack.i.h.bf16 %v11673_v9  ;;  %v11674_v11 = vunpack.i.l.bf16 %v11673_v9  ;;  %v11685_v34 = vunpack.i.h.bf16 %v11683_v31  ;;  %v11684_v35 = vunpack.i.l.bf16 %v11683_v31 }
  0x90   :  { %10747 = vmatpush3.bf16.msra.mxu0 %v10744_v7  ;;  %v8379_v7 = vld [vmem:[%s14849_s0 + $0x170] sm:$0xff] }
  0x91   :  { %10749 = vmatprep.subr.bf16.mxu0 %v10748_v8  ;;  %v10752_v14 = vpack.c.bf16 %v11675_v10, %v11674_v11  ;;  %v10760_v38 = vpack.c.bf16 %v11685_v34, %v11684_v35 }
  0x92   :  { %v11688_v43 = vpop.permute.xlu0 %11687 }
  0x93   :  { %9569 = vmatmul.mubr.msk.f32.vlgmr.msra.gmra.mrb[0].mxu0 %vm116_vm0, %v8302_v12  ;;  %v11690_v46 = vunpack.i.h.bf16 %v11688_v43  ;;  %v11689_v47 = vunpack.i.l.bf16 %v11688_v43 }
  0x94   :  { %9571 = vmatprep.mubr.msk.f32.mxu0 %vm116_vm0, %v8303_v13  ;;  %10751 = vmatpush3.bf16.msra.mxu0 %v10748_v8  ;;  %v8380_v8 = vld [vmem:[%s14849_s0 + $0x178] sm:$0xff] }
  0x95   :  { %10753 = vmatprep.subr.bf16.mxu0 %v10752_v14  ;;  %v10764_v50 = vpack.c.bf16 %v11690_v46, %v11689_v47 }
  0x97   :  { %9572 = vmatmul.mubr.msk.f32.gmra.mrb[2].mxu0 %vm116_vm0, %v8304_v15 }
  0x98   :  { %9574 = vmatprep.mubr.msk.f32.mxu0 %vm116_vm0, %v8305_v16 }
  0x9b   :  { %9575 = vmatmul.mubr.msk.f32.gmra.mrb[4].mxu0 %vm116_vm0, %v8306_v17 }
  0x9c   :  { %9577 = vmatprep.mubr.msk.f32.mxu0 %vm116_vm0, %v8307_v18 }
  0x9f   :  { %9578 = vmatmul.mubr.msk.f32.gmra.mrb[6].mxu0 %vm116_vm0, %v8308_v20 }
  0xa0   :  { %9584 = vmatprep.mubr.msk.f32.mxu0 %vm116_vm0, %v91_v21 }
  0xa3   :  { %9585 = vmatmul.mubr.msk.f32.vlgmr.msra.gmra.mrb[0].mxu0 %vm116_vm0, %v92_v24 }
  0xa4   :  { %9587 = vmatprep.mubr.msk.f32.mxu0 %vm116_vm0, %v93_v25  ;;  %10755 = vmatpush3.bf16.msra.mxu0 %v10752_v14  ;;  %v12729_v25 = vld [vmem:[%s14850_s2 + $0x40] sm:$0xff] }
  0xa5   :  { %10757 = vmatprep.subr.bf16.mxu0 %v10756_v26  ;;  %9676 = vmatprep.mubr.msk.f32.mxu1 %vm1040_vm1, %v12729_v25 }
  0xa7   :  { %9588 = vmatmul.mubr.msk.f32.gmra.mrb[2].mxu0 %vm116_vm0, %v94_v27 }
  0xa8   :  { %9590 = vmatprep.mubr.msk.f32.mxu0 %vm116_vm0, %v95_v28 }
  0xab   :  { %9591 = vmatmul.mubr.msk.f32.gmra.mrb[4].mxu0 %vm116_vm0, %v96_v29 }
  0xac   :  { %9593 = vmatprep.mubr.msk.f32.mxu0 %vm116_vm0, %v97_v30 }
  0xaf   :  { %9594 = vmatmul.mubr.msk.f32.gmra.mrb[6].mxu0 %vm116_vm0, %v98_v32 }
  0xb0   :  { %9600 = vmatprep.mubr.msk.f32.mxu0 %vm116_vm0, %v8325_v33 }
  0xb3   :  { %9601 = vmatmul.mubr.msk.f32.vlgmr.msra.gmra.mrb[0].mxu0 %vm116_vm0, %v8326_v36 }
  0xb4   :  { %9603 = vmatprep.mubr.msk.f32.mxu0 %vm116_vm0, %v8327_v37  ;;  %10759 = vmatpush3.bf16.msra.mxu0 %v10756_v26 }
  0xb5   :  { %10761 = vmatprep.subr.bf16.mxu0 %v10760_v38 }
  0xb7   :  { %9604 = vmatmul.mubr.msk.f32.gmra.mrb[2].mxu0 %vm116_vm0, %v8328_v39 }
  0xb8   :  { %9606 = vmatprep.mubr.msk.f32.mxu0 %vm116_vm0, %v8329_v40 }
  0xbb   :  { %9607 = vmatmul.mubr.msk.f32.gmra.mrb[4].mxu0 %vm116_vm0, %v8330_v41 }
  0xbc   :  { %9609 = vmatprep.mubr.msk.f32.mxu0 %vm116_vm0, %v8331_v42 }
  0xbf   :  { %9610 = vmatmul.mubr.msk.f32.gmra.mrb[6].mxu0 %vm116_vm0, %v8332_v44 }
  0xc0   :  { %9616 = vmatprep.mubr.msk.f32.mxu0 %vm116_vm0, %v8341_v45 }
  0xc3   :  { %9617 = vmatmul.mubr.msk.f32.vlgmr.msra.gmra.mrb[0].mxu0 %vm116_vm0, %v8342_v48 }
  0xc4   :  { %9619 = vmatprep.mubr.msk.f32.mxu0 %vm116_vm0, %v8343_v49  ;;  %10763 = vmatpush3.bf16.msra.mxu0 %v10760_v38  ;;  %v8390_v49 = vld [vmem:[%s14850_s2 + $0x48] sm:$0xff] }
  0xc5   :  { %10765 = vmatprep.subr.bf16.mxu0 %v10764_v50 }
  0xc7   :  { %9620 = vmatmul.mubr.msk.f32.gmra.mrb[2].mxu0 %vm116_vm0, %v8344_v51  ;;  %v8392_v51 = vld [vmem:[%s14850_s2 + $0x58] sm:$0xff] }
  0xc8   :  { %9622 = vmatprep.mubr.msk.f32.mxu0 %vm116_vm0, %v8345_v52  ;;  %v8393_v52 = vld [vmem:[%s14850_s2 + $0x60] sm:$0xff] }
  0xcb   :  { %9623 = vmatmul.mubr.msk.f32.gmra.mrb[4].mxu0 %vm116_vm0, %v8346_v53 }
  0xcc   :  { %9625 = vmatprep.mubr.msk.f32.mxu0 %vm116_vm0, %v8347_v54  ;;  %v8394_v54 = vld [vmem:[%s14850_s2 + $0x68] sm:$0xff] }
  0xcf   :  { %9626 = vmatmul.mubr.msk.f32.gmra.mrb[6].mxu0 %vm116_vm0, %v8348_v55  ;;  %v8395_v55 = vld [vmem:[%s14850_s2 + $0x70] sm:$0xff] }
  0xd0   :  { %9632 = vmatprep.mubr.msk.f32.mxu0 %vm116_vm0, %v8357_v56 }
  0xd3   :  { %9633 = vmatmul.mubr.msk.f32.vlgmr.msra.gmra.mrb[0].mxu0 %vm116_vm0, %v8358_v57 }
  0xd4   :  { %9635 = vmatprep.mubr.msk.f32.mxu0 %vm116_vm0, %v8359_v58  ;;  %10767 = vmatpush3.bf16.msra.mxu0 %v10764_v50  ;;  %v8391_v50 = vld [vmem:[%s14850_s2 + $0x50] sm:$0xff] }
  0xd7   :  { %9636 = vmatmul.mubr.msk.f32.gmra.mrb[2].mxu0 %vm116_vm0, %v8360_v59  ;;  %v8396_v59 = vld [vmem:[%s14850_s2 + $0x78] sm:$0xff] }
  0xd8   :  { %9638 = vmatprep.mubr.msk.f32.mxu0 %vm116_vm0, %v8361_v60  ;;  %v991_v60 = vld [vmem:[%s14850_s2] sm:$0xff] }
  0xdb   :  { %9639 = vmatmul.mubr.msk.f32.gmra.mrb[4].mxu0 %vm116_vm0, %v8362_v61 }
  0xdc   :  { %9641 = vmatprep.mubr.msk.f32.mxu0 %vm116_vm0, %v8363_v62 }
  0xdf   :  { %9642 = vmatmul.mubr.msk.f32.gmra.mrb[6].mxu0 %vm116_vm0, %v8364_v63 }
  0xe0   :  { %9648 = vmatprep.mubr.msk.f32.mxu0 %vm116_vm0, %v8373_v0 }
  0xe3   :  { %9649 = vmatmul.mubr.msk.f32.vlgmr.msra.gmra.mrb[0].mxu0 %vm116_vm0, %v8374_v1  ;;  %v992_v1 = vld [vmem:[%s14850_s2 + $0x8] sm:$0xff] }
  0xe4   :  { %9651 = vmatprep.mubr.msk.f32.mxu0 %vm116_vm0, %v8375_v2  ;;  %v993_v2 = vld [vmem:[%s14850_s2 + $0x10] sm:$0xff] }
  0xe7   :  { %9652 = vmatmul.mubr.msk.f32.gmra.mrb[2].mxu0 %vm116_vm0, %v8376_v4 }
  0xe8   :  { %9654 = vmatprep.mubr.msk.f32.mxu0 %vm116_vm0, %v8377_v5 }
  0xeb   :  { %9655 = vmatmul.mubr.msk.f32.gmra.mrb[4].mxu0 %vm116_vm0, %v8378_v6 }
  0xec   :  { %9657 = vmatprep.mubr.msk.f32.mxu0 %vm116_vm0, %v8379_v7 }
  0xef   :  { %9658 = vmatmul.mubr.msk.f32.gmra.mrb[6].mxu0 %vm116_vm0, %v8380_v8  ;;  %v994_v8 = vld [vmem:[%s14850_s2 + $0x18] sm:$0xff] }
 0x1b6   :  { %v9650_v9 = vpop.f32.mrb[0].mxu0 }
 0x1b7   :  { %v984_v10 = vmax.f32 %v9650_v9, 0.0  ;;  %v936_v11 = vpop.f32.mrb[1].mxu0  ;;  %v995_v9 = vld [vmem:[%s14850_s2 + $0x20] sm:$0xff] }
 0x1b8   :  { %v983_v12 = vmax.f32 %v936_v11, 0.0 }
 0x1ba   :  { %v9653_v13 = vpop.f32.mrb[2].mxu0  ;;  %v11691_v14 = vpack.i.bf16 %v984_v10, %v983_v12  ;;  %v12720_v17 = vpack.c.bf16 %v984_v10, %v983_v12 }
 0x1bb   :  { %v986_v15 = vmax.f32 %v9653_v13, 0.0  ;;  %v946_v16 = vpop.f32.mrb[3].mxu0 }
 0x1bc   :  { %v985_v18 = vmax.f32 %v946_v16, 0.0  ;;  %11692 = vrot.lane.b32.xlu1 %v11691_v14, %s14832_s10 }
 0x1be   :  { %v9656_v19 = vpop.f32.mrb[4].mxu0  ;;  %v11696_v20 = vpack.i.bf16 %v986_v15, %v985_v18  ;;  %v12723_v23 = vpack.c.bf16 %v986_v15, %v985_v18  ;;  %v997_v15 = vld [vmem:[%s14850_s2 + $0x30] sm:$0xff] }
 0x1bf   :  { %v988_v21 = vmax.f32 %v9656_v19, 0.0  ;;  %v956_v22 = vpop.f32.mrb[5].mxu0 }
 0x1c0   :  { %v987_v24 = vmax.f32 %v956_v22, 0.0  ;;  %11697 = vrot.lane.b32.xlu0 %v11696_v20, %s14832_s10 }
 0x1c2   :  { %v9659_v26 = vpop.f32.mrb[6].mxu0  ;;  %v11701_v27 = vpack.i.bf16 %v988_v21, %v987_v24  ;;  %v12733_v30 = vpack.c.bf16 %v988_v21, %v987_v24  ;;  %v8413_v21 = vld [vmem:[%s14850_s2 + $0x80] sm:$0xff] }
 0x1c3   :  { %v990_v28 = vmax.f32 %v9659_v26, 0.0  ;;  %v966_v29 = vpop.f32.mrb[7].mxu0 }
 0x1c4   :  { %v989_v31 = vmax.f32 %v966_v29, 0.0  ;;  %11702 = vrot.lane.b32.xlu1 %v11701_v27, %s14832_s10 }
 0x1c6   :  { %v11706_v32 = vpack.i.bf16 %v990_v28, %v989_v31  ;;  %v12736_v33 = vpack.c.bf16 %v990_v28, %v989_v31  ;;  %v8415_v28 = vld [vmem:[%s14850_s2 + $0x90] sm:$0xff] }
 0x1c8   :  { %11712 = vrot.lane.b32.xlu1 %v11691_v14, %s14830_s1  ;;  %11707 = vrot.lane.b32.xlu0 %v11706_v32, %s14832_s10 }
 0x1cc   :  { %11722 = vrot.lane.b32.xlu1 %v11701_v27, %s14830_s1  ;;  %11717 = vrot.lane.b32.xlu0 %v11696_v20, %s14830_s1 }
 0x1d0   :  { %11732 = vrot.lane.b32.xlu1 %v11691_v14, %s14828_s29  ;;  %11727 = vrot.lane.b32.xlu0 %v11706_v32, %s14830_s1 }
 0x1d4   :  { %11742 = vrot.lane.b32.xlu1 %v11701_v27, %s14828_s29  ;;  %11737 = vrot.lane.b32.xlu0 %v11696_v20, %s14828_s29 }
 0x1d8   :  { %11752 = vrot.lane.b32.xlu1 %v11691_v14, %s14826_s6  ;;  %11747 = vrot.lane.b32.xlu0 %v11706_v32, %s14828_s29  ;;  %v996_v14 = vld [vmem:[%s14850_s2 + $0x28] sm:$0xff] }
 0x1dc   :  { %11762 = vrot.lane.b32.xlu1 %v11701_v27, %s14826_s6  ;;  %11757 = vrot.lane.b32.xlu0 %v11696_v20, %s14826_s6  ;;  %v998_v20 = vld [vmem:[%s14850_s2 + $0x38] sm:$0xff]  ;;  %v8414_v27 = vld [vmem:[%s14850_s2 + $0x88] sm:$0xff] }
 0x1e0   :  { %11767 = vrot.lane.b32.xlu0 %v11706_v32, %s14826_s6  ;;  %11772 = vrot.lane.b32.xlu1 %v12519_v3, %s14824_s3  ;;  %s14851_s6 = sld [smem:[#allocation8_spill]]  ;;  %s14852_s3 = sld [smem:[#allocation9_spill]] }
 0x1e4   :  { %11777 = vrot.lane.b32.xlu0 %v12519_v3, %s14823_s7  ;;  %11782 = vrot.lane.b32.xlu1 %v12519_v3, %s14822_s4  ;;  %s14853_s7 = smov 124   ;;  %s12358_s4 = smov 32  }
 0x1e8   :  { %11787 = vrot.lane.b32.xlu0 %v12519_v3, %s14821_s30  ;;  %11792 = vrot.lane.b32.xlu1 %v12519_v3, %s14820_s9  ;;  %s14854_s30 = smov 123   ;;  %s14862_s9 = smov 83  }
 0x1ec   :  { %11797 = vrot.lane.b32.xlu0 %v12519_v3, %s14819_s5  ;;  %s14856_s5 = smov 125  }
 0x22e   :  { %v11693_v34 = vpop.permute.xlu1 %11692 }
 0x22f   :  { %v11695_v35 = vunpack.i.h.bf16 %v11693_v34  ;;  %v11694_v36 = vunpack.i.l.bf16 %v11693_v34  ;;  %v8417_v34 = vld [vmem:[%s14850_s2 + $0xa0] sm:$0xff] }
 0x231   :  { %v10768_v37 = vpack.c.bf16 %v11695_v35, %v11694_v36 }
 0x232   :  { %v11698_v38 = vpop.permute.xlu0 %11697 }
 0x233   :  { %v11700_v39 = vunpack.i.h.bf16 %v11698_v38  ;;  %v11699_v40 = vunpack.i.l.bf16 %v11698_v38  ;;  %10769 = vmatprep.subr.bf16.mxu1 %v10768_v37 }
 0x234   :  { %10771 = vmatpush3.bf16.msra.mxu1 %v10768_v37 }
 0x235   :  { %v10772_v41 = vpack.c.bf16 %v11700_v39, %v11699_v40  ;;  %v8418_v39 = vld [vmem:[%s14850_s2 + $0xa8] sm:$0xff]  ;;  %v8419_v40 = vld [vmem:[%s14850_s2 + $0xb0] sm:$0xff] }
 0x236   :  { %v11703_v42 = vpop.permute.xlu1 %11702 }
 0x237   :  { %v11705_v43 = vunpack.i.h.bf16 %v11703_v42  ;;  %v11704_v44 = vunpack.i.l.bf16 %v11703_v42  ;;  %10773 = vmatprep.subr.bf16.mxu1 %v10772_v41 }
 0x238   :  { %10775 = vmatpush3.bf16.msra.mxu1 %v10772_v41 }
 0x239   :  { %v10776_v45 = vpack.c.bf16 %v11705_v43, %v11704_v44 }
 0x23a   :  { %v11708_v46 = vpop.permute.xlu0 %11707  ;;  %v11713_v53 = vpop.permute.xlu1 %11712 }
 0x23b   :  { %v11710_v47 = vunpack.i.h.bf16 %v11708_v46  ;;  %v11709_v48 = vunpack.i.l.bf16 %v11708_v46  ;;  %10777 = vmatprep.subr.bf16.mxu1 %v10776_v45  ;;  %v11715_v56 = vunpack.i.h.bf16 %v11713_v53  ;;  %v11714_v57 = vunpack.i.l.bf16 %v11713_v53  ;;  %v8429_v46 = vld [vmem:[%s14850_s2 + $0xc0] sm:$0xff] }
 0x23c   :  { %10779 = vmatpush3.bf16.msra.mxu1 %v10776_v45  ;;  %v8420_v45 = vld [vmem:[%s14850_s2 + $0xb8] sm:$0xff] }
 0x23d   :  { %v10780_v3 = vpack.c.bf16 %v11710_v47, %v11709_v48  ;;  %v10800_v63 = vpack.c.bf16 %v11715_v56, %v11714_v57  ;;  %v8432_v56 = vld [vmem:[%s14850_s2 + $0xd8] sm:$0xff]  ;;  %v8433_v57 = vld [vmem:[%s14850_s2 + $0xe0] sm:$0xff] }
 0x23e   :  { %v11718_v58 = vpop.permute.xlu0 %11717  ;;  %v11723_v0 = vpop.permute.xlu1 %11722 }
 0x23f   :  { %10781 = vmatprep.subr.bf16.mxu1 %v10780_v3  ;;  %v11720_v61 = vunpack.i.h.bf16 %v11718_v58  ;;  %v11719_v62 = vunpack.i.l.bf16 %v11718_v58  ;;  %v11725_v4 = vunpack.i.h.bf16 %v11723_v0  ;;  %v11724_v5 = vunpack.i.l.bf16 %v11723_v0 }
 0x240   :  { %10783 = vmatpush3.bf16.msra.mxu1 %v10780_v3 }
 0x241   :  { %10785 = vmatprep.subr.bf16.mxu1 %v12720_v17  ;;  %v10804_v6 = vpack.c.bf16 %v11720_v61, %v11719_v62  ;;  %v10808_v12 = vpack.c.bf16 %v11725_v4, %v11724_v5  ;;  %v8434_v62 = vld [vmem:[%s14850_s2 + $0xe8] sm:$0xff]  ;;  %v8436_v5 = vld [vmem:[%s14850_s2 + $0xf8] sm:$0xff] }
 0x242   :  { %v11728_v7 = vpop.permute.xlu0 %11727  ;;  %v11733_v13 = vpop.permute.xlu1 %11732 }
 0x243   :  { %9677 = vmatmul.mubr.msk.f32.vlgmr.msra.gmra.mrb[0].mxu1 %vm1040_vm1, %v8390_v49  ;;  %v11730_v10 = vunpack.i.h.bf16 %v11728_v7  ;;  %v11729_v11 = vunpack.i.l.bf16 %v11728_v7  ;;  %v11735_v16 = vunpack.i.h.bf16 %v11733_v13 }
 0x244   :  { %10787 = vmatpush3.bf16.msra.mxu1 %v12720_v17  ;;  %9679 = vmatprep.mubr.msk.f32.mxu1 %vm1040_vm1, %v8391_v50  ;;  %v11734_v17 = vunpack.i.l.bf16 %v11733_v13  ;;  %v8430_v50 = vld [vmem:[%s14850_s2 + $0xc8] sm:$0xff]  ;;  %v8448_v13 = vld [vmem:[%s14850_s2 + $0x118] sm:$0xff] }
 0x245   :  { %10789 = vmatprep.subr.bf16.mxu1 %v12723_v23  ;;  %v10812_v18 = vpack.c.bf16 %v11730_v10, %v11729_v11  ;;  %v8446_v10 = vld [vmem:[%s14850_s2 + $0x108] sm:$0xff]  ;;  %v8447_v11 = vld [vmem:[%s14850_s2 + $0x110] sm:$0xff] }
 0x246   :  { %v11738_v19 = vpop.permute.xlu0 %11737  ;;  %v10816_v24 = vpack.c.bf16 %v11735_v16, %v11734_v17  ;;  %v11743_v26 = vpop.permute.xlu1 %11742  ;;  %v8451_v16 = vld [vmem:[%s14850_s2 + $0x130] sm:$0xff] }
 0x247   :  { %9680 = vmatmul.mubr.msk.f32.gmra.mrb[2].mxu1 %vm1040_vm1, %v8392_v51  ;;  %v11740_v22 = vunpack.i.h.bf16 %v11738_v19  ;;  %v11745_v29 = vunpack.i.h.bf16 %v11743_v26  ;;  %v8431_v51 = vld [vmem:[%s14850_s2 + $0xd0] sm:$0xff] }
 0x248   :  { %10791 = vmatpush3.bf16.msra.mxu1 %v12723_v23  ;;  %9682 = vmatprep.mubr.msk.f32.mxu1 %vm1040_vm1, %v8393_v52  ;;  %v11739_v23 = vunpack.i.l.bf16 %v11738_v19  ;;  %v8461_v19 = vld [vmem:[%s14851_s6 + $0x40] sm:$0xff] }
 0x249   :  { %10793 = vmatprep.subr.bf16.mxu1 %v12733_v30 }
 0x24a   :  { %v10820_v31 = vpack.c.bf16 %v11740_v22, %v11739_v23  ;;  %v11748_v32 = vpop.permute.xlu0 %11747  ;;  %v11753_v38 = vpop.permute.xlu1 %11752  ;;  %v8462_v22 = vld [vmem:[%s14851_s6 + $0x48] sm:$0xff]  ;;  %v8463_v23 = vld [vmem:[%s14851_s6 + $0x50] sm:$0xff] }
 0x24b   :  { %9683 = vmatmul.mubr.msk.f32.gmra.mrb[4].mxu1 %vm1040_vm1, %v8394_v54  ;;  %v11750_v35 = vunpack.i.h.bf16 %v11748_v32  ;;  %v11749_v36 = vunpack.i.l.bf16 %v11748_v32  ;;  %v11755_v41 = vunpack.i.h.bf16 %v11753_v38  ;;  %v11754_v42 = vunpack.i.l.bf16 %v11753_v38  ;;  %v1817_v32 = vld [vmem:[%s14851_s6] sm:$0xff]  ;;  %v1820_v38 = vld [vmem:[%s14851_s6 + $0x18] sm:$0xff] }
 0x24c   :  { %10795 = vmatpush3.bf16.msra.mxu1 %v12733_v30  ;;  %9685 = vmatprep.mubr.msk.f32.mxu1 %vm1040_vm1, %v8395_v55  ;;  %v11744_v30 = vunpack.i.l.bf16 %v11743_v26  ;;  %v8464_v26 = vld [vmem:[%s14851_s6 + $0x58] sm:$0xff] }
 0x24d   :  { %10797 = vmatprep.subr.bf16.mxu1 %v12736_v33  ;;  %v10828_v43 = vpack.c.bf16 %v11750_v35, %v11749_v36  ;;  %v10832_v3 = vpack.c.bf16 %v11755_v41, %v11754_v42  ;;  %v1818_v35 = vld [vmem:[%s14851_s6 + $0x8] sm:$0xff]  ;;  %v1819_v36 = vld [vmem:[%s14851_s6 + $0x10] sm:$0xff] }
 0x24e   :  { %v10824_v37 = vpack.c.bf16 %v11745_v29, %v11744_v30  ;;  %v11758_v44 = vpop.permute.xlu0 %11757  ;;  %v11763_v49 = vpop.permute.xlu1 %11762  ;;  %v8467_v29 = vld [vmem:[%s14851_s6 + $0x70] sm:$0xff] }
 0x24f   :  { %9686 = vmatmul.mubr.msk.f32.gmra.mrb[6].mxu1 %vm1040_vm1, %v8396_v59  ;;  %v11760_v47 = vunpack.i.h.bf16 %v11758_v44  ;;  %v11759_v48 = vunpack.i.l.bf16 %v11758_v44  ;;  %v11765_v52 = vunpack.i.h.bf16 %v11763_v49  ;;  %v11764_v53 = vunpack.i.l.bf16 %v11763_v49  ;;  %v1823_v41 = vld [vmem:[%s14851_s6 + $0x30] sm:$0xff]  ;;  %v8485_v44 = vld [vmem:[%s14851_s6 + $0x80] sm:$0xff]  ;;  %v8488_v49 = vld [vmem:[%s14851_s6 + $0x98] sm:$0xff] }
 0x250   :  { %10799 = vmatpush3.bf16.msra.mxu1 %v12736_v33  ;;  %9704 = vmatprep.mubr.msk.f32.mxu1 %vm1040_vm1, %v991_v60  ;;  %v8416_v33 = vld [vmem:[%s14850_s2 + $0x98] sm:$0xff] }
 0x251   :  { %10801 = vmatprep.subr.bf16.mxu1 %v10800_v63  ;;  %v10836_v54 = vpack.c.bf16 %v11760_v47, %v11759_v48  ;;  %v10840_v61 = vpack.c.bf16 %v11765_v52, %v11764_v53  ;;  %v8486_v47 = vld [vmem:[%s14851_s6 + $0x88] sm:$0xff]  ;;  %v8487_v48 = vld [vmem:[%s14851_s6 + $0x90] sm:$0xff] }
 0x252   :  { %v11768_v55 = vpop.permute.xlu0 %11767  ;;  %v11773_v58 = vpop.permute.xlu1 %11772  ;;  %v8491_v52 = vld [vmem:[%s14851_s6 + $0xb0] sm:$0xff] }
 0x253   :  { %9705 = vmatmul.mubr.msk.f32.vlgmr.msra.gmra.mrb[0].mxu1 %vm1040_vm1, %v992_v1  ;;  %v11770_v59 = vunpack.i.h.bf16 %v11768_v55  ;;  %v11769_v60 = vunpack.i.l.bf16 %v11768_v55  ;;  %v11775_v0 = vunpack.i.h.bf16 %v11773_v58  ;;  %v11774_v1 = vunpack.i.l.bf16 %v11773_v58  ;;  %v8501_v55 = vld [vmem:[%s14851_s6 + $0xc0] sm:$0xff]  ;;  %v8502_v58 = vld [vmem:[%s14851_s6 + $0xc8] sm:$0xff] }
 0x254   :  { %10803 = vmatpush3.bf16.msra.mxu1 %v10800_v63  ;;  %9707 = vmatprep.mubr.msk.f32.mxu1 %vm1040_vm1, %v993_v2  ;;  %v8435_v63 = vld [vmem:[%s14850_s2 + $0xf0] sm:$0xff] }
 0x255   :  { %10805 = vmatprep.subr.bf16.mxu1 %v10804_v6  ;;  %v10844_v4 = vpack.c.bf16 %v11770_v59, %v11769_v60  ;;  %v10848_v7 = vpack.c.bf16 %v11775_v0, %v11774_v1  ;;  %v8503_v59 = vld [vmem:[%s14851_s6 + $0xd0] sm:$0xff]  ;;  %v8508_v1 = vld [vmem:[%s14851_s6 + $0xf8] sm:$0xff] }
 0x256   :  { %v11778_v2 = vpop.permute.xlu0 %11777  ;;  %v11783_v17 = vpop.permute.xlu1 %11782  ;;  %v8507_v0 = vld [vmem:[%s14851_s6 + $0xf0] sm:$0xff] }
 0x257   :  { %9708 = vmatmul.mubr.msk.f32.gmra.mrb[2].mxu1 %vm1040_vm1, %v994_v8  ;;  %v11780_v8 = vunpack.i.h.bf16 %v11778_v2 }
 0x258   :  { %10807 = vmatpush3.bf16.msra.mxu1 %v10804_v6  ;;  %9710 = vmatprep.mubr.msk.f32.mxu1 %vm1040_vm1, %v995_v9  ;;  %v8445_v6 = vld [vmem:[%s14850_s2 + $0x100] sm:$0xff]  ;;  %v11779_v9 = vunpack.i.l.bf16 %v11778_v2 }
 0x259   :  { %10809 = vmatprep.subr.bf16.mxu1 %v10808_v12  ;;  %v8517_v2 = vld [vmem:[%s14851_s6 + $0x100] sm:$0xff] }
 0x25a   :  { %v11788_v30 = vpop.permute.xlu0 %11787  ;;  %v11793_v42 = vpop.permute.xlu1 %11792 }
 0x25b   :  { %9711 = vmatmul.mubr.msk.f32.gmra.mrb[4].mxu1 %vm1040_vm1, %v996_v14  ;;  %v8449_v14 = vld [vmem:[%s14850_s2 + $0x120] sm:$0xff] }
 0x25c   :  { %10811 = vmatpush3.bf16.msra.mxu1 %v10808_v12  ;;  %9713 = vmatprep.mubr.msk.f32.mxu1 %vm1040_vm1, %v997_v15  ;;  %v10852_v12 = vpack.c.bf16 %v11780_v8, %v11779_v9  ;;  %v8450_v15 = vld [vmem:[%s14850_s2 + $0x128] sm:$0xff]  ;;  %v8523_v9 = vld [vmem:[%s14851_s6 + $0x130] sm:$0xff] }
 0x25d   :  { %10813 = vmatprep.subr.bf16.mxu1 %v10812_v18  ;;  %v8522_v8 = vld [vmem:[%s14851_s6 + $0x128] sm:$0xff] }
 0x25e   :  { %v11798_v53 = vpop.permute.xlu0 %11797 }
 0x25f   :  { %9714 = vmatmul.mubr.msk.f32.gmra.mrb[6].mxu1 %vm1040_vm1, %v998_v20  ;;  %v11785_v20 = vunpack.i.h.bf16 %v11783_v17 }
 0x260   :  { %10815 = vmatpush3.bf16.msra.mxu1 %v10812_v18  ;;  %9732 = vmatprep.mubr.msk.f32.mxu1 %vm1040_vm1, %v8413_v21  ;;  %v8452_v18 = vld [vmem:[%s14850_s2 + $0x138] sm:$0xff]  ;;  %v11784_v21 = vunpack.i.l.bf16 %v11783_v17  ;;  %v8539_v17 = vld [vmem:[%s14851_s6 + $0x170] sm:$0xff] }
 0x261   :  { %10817 = vmatprep.subr.bf16.mxu1 %v10816_v24 }
 0x263   :  { %9733 = vmatmul.mubr.msk.f32.vlgmr.msra.gmra.mrb[0].mxu1 %vm1040_vm1, %v8414_v27  ;;  %v8465_v27 = vld [vmem:[%s14851_s6 + $0x60] sm:$0xff] }
 0x264   :  { %10819 = vmatpush3.bf16.msra.mxu1 %v10816_v24  ;;  %9735 = vmatprep.mubr.msk.f32.mxu1 %vm1040_vm1, %v8415_v28  ;;  %v10856_v24 = vpack.c.bf16 %v11785_v20, %v11784_v21  ;;  %v8466_v28 = vld [vmem:[%s14851_s6 + $0x68] sm:$0xff] }
 0x265   :  { %10821 = vmatprep.subr.bf16.mxu1 %v10820_v31 }
 0x267   :  { %9736 = vmatmul.mubr.msk.f32.gmra.mrb[2].mxu1 %vm1040_vm1, %v8416_v33  ;;  %v11790_v33 = vunpack.i.h.bf16 %v11788_v30 }
 0x268   :  { %10823 = vmatpush3.bf16.msra.mxu1 %v10820_v31  ;;  %9738 = vmatprep.mubr.msk.f32.mxu1 %vm1040_vm1, %v8417_v34  ;;  %v8468_v31 = vld [vmem:[%s14851_s6 + $0x78] sm:$0xff]  ;;  %v11789_v34 = vunpack.i.l.bf16 %v11788_v30 }
 0x269   :  { %10825 = vmatprep.subr.bf16.mxu1 %v10824_v37 }
 0x26b   :  { %9739 = vmatmul.mubr.msk.f32.gmra.mrb[4].mxu1 %vm1040_vm1, %v8418_v39  ;;  %v1821_v39 = vld [vmem:[%s14851_s6 + $0x20] sm:$0xff] }
 0x26c   :  { %10827 = vmatpush3.bf16.msra.mxu1 %v10824_v37  ;;  %9741 = vmatprep.mubr.msk.f32.mxu1 %vm1040_vm1, %v8419_v40  ;;  %v10860_v37 = vpack.c.bf16 %v11790_v33, %v11789_v34  ;;  %v1822_v40 = vld [vmem:[%s14851_s6 + $0x28] sm:$0xff] }
 0x26d   :  { %10829 = vmatprep.subr.bf16.mxu1 %v10828_v43 }
 0x26f   :  { %9742 = vmatmul.mubr.msk.f32.gmra.mrb[6].mxu1 %vm1040_vm1, %v8420_v45  ;;  %v11795_v45 = vunpack.i.h.bf16 %v11793_v42 }
 0x270   :  { %10831 = vmatpush3.bf16.msra.mxu1 %v10828_v43  ;;  %9760 = vmatprep.mubr.msk.f32.mxu1 %vm1040_vm1, %v8429_v46  ;;  %v1824_v43 = vld [vmem:[%s14851_s6 + $0x38] sm:$0xff]  ;;  %v11794_v46 = vunpack.i.l.bf16 %v11793_v42 }
 0x271   :  { %10833 = vmatprep.subr.bf16.mxu1 %v10832_v3 }
 0x273   :  { %9761 = vmatmul.mubr.msk.f32.vlgmr.msra.gmra.mrb[0].mxu1 %vm1040_vm1, %v8430_v50  ;;  %v8489_v50 = vld [vmem:[%s14851_s6 + $0xa0] sm:$0xff] }
 0x274   :  { %10835 = vmatpush3.bf16.msra.mxu1 %v10832_v3  ;;  %9763 = vmatprep.mubr.msk.f32.mxu1 %vm1040_vm1, %v8431_v51  ;;  %v10864_v3 = vpack.c.bf16 %v11795_v45, %v11794_v46  ;;  %v8490_v51 = vld [vmem:[%s14851_s6 + $0xa8] sm:$0xff] }
 0x275   :  { %10837 = vmatprep.subr.bf16.mxu1 %v10836_v54 }
 0x277   :  { %9764 = vmatmul.mubr.msk.f32.gmra.mrb[2].mxu1 %vm1040_vm1, %v8432_v56  ;;  %v11800_v56 = vunpack.i.h.bf16 %v11798_v53 }
 0x278   :  { %10839 = vmatpush3.bf16.msra.mxu1 %v10836_v54  ;;  %9766 = vmatprep.mubr.msk.f32.mxu1 %vm1040_vm1, %v8433_v57  ;;  %v8492_v54 = vld [vmem:[%s14851_s6 + $0xb8] sm:$0xff]  ;;  %v11799_v57 = vunpack.i.l.bf16 %v11798_v53 }
 0x279   :  { %10841 = vmatprep.subr.bf16.mxu1 %v10840_v61 }
 0x27a   :  { %v10868_v60 = vpack.c.bf16 %v11800_v56, %v11799_v57 }
 0x27b   :  { %9767 = vmatmul.mubr.msk.f32.gmra.mrb[4].mxu1 %vm1040_vm1, %v8434_v62  ;;  %v8505_v62 = vld [vmem:[%s14851_s6 + $0xe0] sm:$0xff] }
 0x27c   :  { %10843 = vmatpush3.bf16.msra.mxu1 %v10840_v61  ;;  %9769 = vmatprep.mubr.msk.f32.mxu1 %vm1040_vm1, %v8435_v63  ;;  %v8504_v61 = vld [vmem:[%s14851_s6 + $0xd8] sm:$0xff]  ;;  %v8506_v63 = vld [vmem:[%s14851_s6 + $0xe8] sm:$0xff] }
 0x27d   :  { %10845 = vmatprep.subr.bf16.mxu1 %v10844_v4 }
 0x27f   :  { %9770 = vmatmul.mubr.msk.f32.gmra.mrb[6].mxu1 %vm1040_vm1, %v8436_v5  ;;  %v8519_v5 = vld [vmem:[%s14851_s6 + $0x110] sm:$0xff] }
 0x280   :  { %10847 = vmatpush3.bf16.msra.mxu1 %v10844_v4  ;;  %9788 = vmatprep.mubr.msk.f32.mxu1 %vm1040_vm1, %v8445_v6  ;;  %v8518_v4 = vld [vmem:[%s14851_s6 + $0x108] sm:$0xff]  ;;  %v8520_v6 = vld [vmem:[%s14851_s6 + $0x118] sm:$0xff] }
 0x281   :  { %10849 = vmatprep.subr.bf16.mxu1 %v10848_v7 }
 0x283   :  { %9789 = vmatmul.mubr.msk.f32.vlgmr.msra.gmra.mrb[0].mxu1 %vm1040_vm1, %v8446_v10  ;;  %v8524_v10 = vld [vmem:[%s14851_s6 + $0x138] sm:$0xff] }
 0x284   :  { %9791 = vmatprep.mubr.msk.f32.mxu1 %vm1040_vm1, %v8447_v11  ;;  %10851 = vmatpush3.bf16.msra.mxu1 %v10848_v7  ;;  %v8521_v7 = vld [vmem:[%s14851_s6 + $0x120] sm:$0xff] }
 0x285   :  { %10853 = vmatprep.subr.bf16.mxu1 %v10852_v12  ;;  %v8533_v11 = vld [vmem:[%s14851_s6 + $0x140] sm:$0xff] }
 0x287   :  { %9792 = vmatmul.mubr.msk.f32.gmra.mrb[2].mxu1 %vm1040_vm1, %v8448_v13  ;;  %v8535_v13 = vld [vmem:[%s14851_s6 + $0x150] sm:$0xff] }
 0x288   :  { %9794 = vmatprep.mubr.msk.f32.mxu1 %vm1040_vm1, %v8449_v14  ;;  %v8536_v14 = vld [vmem:[%s14851_s6 + $0x158] sm:$0xff] }
 0x28b   :  { %9795 = vmatmul.mubr.msk.f32.gmra.mrb[4].mxu1 %vm1040_vm1, %v8450_v15  ;;  %v8537_v15 = vld [vmem:[%s14851_s6 + $0x160] sm:$0xff] }
 0x28c   :  { %9797 = vmatprep.mubr.msk.f32.mxu1 %vm1040_vm1, %v8451_v16  ;;  %v8538_v16 = vld [vmem:[%s14851_s6 + $0x168] sm:$0xff] }
 0x28f   :  { %9798 = vmatmul.mubr.msk.f32.gmra.mrb[6].mxu1 %vm1040_vm1, %v8452_v18  ;;  %v8540_v18 = vld [vmem:[%s14851_s6 + $0x178] sm:$0xff] }
 0x290   :  { %9804 = vmatprep.mubr.msk.f32.mxu1 %vm116_vm0, %v8461_v19 }
 0x293   :  { %9805 = vmatmul.mubr.msk.f32.vlgmr.msra.gmra.mrb[8].mxu1 %vm116_vm0, %v8462_v22 }
 0x294   :  { %9807 = vmatprep.mubr.msk.f32.mxu1 %vm116_vm0, %v8463_v23  ;;  %10855 = vmatpush3.bf16.msra.mxu1 %v10852_v12  ;;  %v8534_v12 = vld [vmem:[%s14851_s6 + $0x148] sm:$0xff] }
 0x295   :  { %10857 = vmatprep.subr.bf16.mxu1 %v10856_v24 }
 0x297   :  { %9808 = vmatmul.mubr.msk.f32.gmra.mrb[10].mxu1 %vm116_vm0, %v8464_v26 }
 0x298   :  { %9810 = vmatprep.mubr.msk.f32.mxu1 %vm116_vm0, %v8465_v27 }
 0x29b   :  { %9811 = vmatmul.mubr.msk.f32.gmra.mrb[12].mxu1 %vm116_vm0, %v8466_v28 }
 0x29c   :  { %9813 = vmatprep.mubr.msk.f32.mxu1 %vm116_vm0, %v8467_v29 }
 0x29f   :  { %9814 = vmatmul.mubr.msk.f32.gmra.mrb[14].mxu1 %vm116_vm0, %v8468_v31 }
 0x2a0   :  { %9820 = vmatprep.mubr.msk.f32.mxu1 %vm116_vm0, %v1817_v32 }
 0x2a3   :  { %9821 = vmatmul.mubr.msk.f32.vlgmr.msra.gmra.mrb[8].mxu1 %vm116_vm0, %v1818_v35 }
 0x2a4   :  { %9823 = vmatprep.mubr.msk.f32.mxu1 %vm116_vm0, %v1819_v36  ;;  %10859 = vmatpush3.bf16.msra.mxu1 %v10856_v24 }
 0x2a5   :  { %10861 = vmatprep.subr.bf16.mxu1 %v10860_v37 }
 0x2a7   :  { %9824 = vmatmul.mubr.msk.f32.gmra.mrb[10].mxu1 %vm116_vm0, %v1820_v38 }
 0x2a8   :  { %9826 = vmatprep.mubr.msk.f32.mxu1 %vm116_vm0, %v1821_v39 }
 0x2ab   :  { %9827 = vmatmul.mubr.msk.f32.gmra.mrb[12].mxu1 %vm116_vm0, %v1822_v40 }
 0x2ac   :  { %9829 = vmatprep.mubr.msk.f32.mxu1 %vm116_vm0, %v1823_v41 }
 0x2af   :  { %9830 = vmatmul.mubr.msk.f32.gmra.mrb[14].mxu1 %vm116_vm0, %v1824_v43  ;;  %v13146_v43 = vld [vmem:[%s14852_s3 + $0x40] sm:$0xff] }
 0x2b0   :  { %9836 = vmatprep.mubr.msk.f32.mxu1 %vm116_vm0, %v8485_v44  ;;  %9912 = vmatprep.mubr.msk.f32.mxu0 %vm1040_vm1, %v13146_v43 }
 0x2b3   :  { %9837 = vmatmul.mubr.msk.f32.vlgmr.msra.gmra.mrb[8].mxu1 %vm116_vm0, %v8486_v47 }
 0x2b4   :  { %9839 = vmatprep.mubr.msk.f32.mxu1 %vm116_vm0, %v8487_v48  ;;  %10863 = vmatpush3.bf16.msra.mxu1 %v10860_v37 }
 0x2b5   :  { %10865 = vmatprep.subr.bf16.mxu1 %v10864_v3 }
 0x2b7   :  { %9840 = vmatmul.mubr.msk.f32.gmra.mrb[10].mxu1 %vm116_vm0, %v8488_v49 }
 0x2b8   :  { %9842 = vmatprep.mubr.msk.f32.mxu1 %vm116_vm0, %v8489_v50 }
 0x2bb   :  { %9843 = vmatmul.mubr.msk.f32.gmra.mrb[12].mxu1 %vm116_vm0, %v8490_v51  ;;  %v13168_v51 = vld [vmem:[%s14848_s8 + $0x10] sm:$0xff] }
 0x2bc   :  { %9845 = vmatprep.mubr.msk.f32.mxu1 %vm116_vm0, %v8491_v52  ;;  %v13173_v52 = vld [vmem:[%s14848_s8 + $0x18] sm:$0xff] }
 0x2bd   :  { %v13179_v53 = vpack.i.bf16 %v13173_v52, %v13168_v51 }
 0x2bf   :  { %9846 = vmatmul.mubr.msk.f32.gmra.mrb[14].mxu1 %vm116_vm0, %v8492_v54 }
 0x2c0   :  { %9852 = vmatprep.mubr.msk.f32.mxu1 %vm116_vm0, %v8501_v55 }
 0x2c3   :  { %9853 = vmatmul.mubr.msk.f32.vlgmr.msra.gmra.mrb[8].mxu1 %vm116_vm0, %v8502_v58 }
 0x2c4   :  { %9855 = vmatprep.mubr.msk.f32.mxu1 %vm116_vm0, %v8503_v59  ;;  %10867 = vmatpush3.bf16.msra.mxu1 %v10864_v3 }
 0x2c5   :  { %10869 = vmatprep.subr.bf16.mxu1 %v10868_v60 }
 0x2c7   :  { %9856 = vmatmul.mubr.msk.f32.gmra.mrb[10].mxu1 %vm116_vm0, %v8504_v61 }
 0x2c8   :  { %9858 = vmatprep.mubr.msk.f32.mxu1 %vm116_vm0, %v8505_v62 }
 0x2cb   :  { %9859 = vmatmul.mubr.msk.f32.gmra.mrb[12].mxu1 %vm116_vm0, %v8506_v63 }
 0x2cc   :  { %9861 = vmatprep.mubr.msk.f32.mxu1 %vm116_vm0, %v8507_v0 }
 0x2cf   :  { %9862 = vmatmul.mubr.msk.f32.gmra.mrb[14].mxu1 %vm116_vm0, %v8508_v1 }
 0x2d0   :  { %9868 = vmatprep.mubr.msk.f32.mxu1 %vm116_vm0, %v8517_v2 }
 0x2d3   :  { %9869 = vmatmul.mubr.msk.f32.vlgmr.msra.gmra.mrb[8].mxu1 %vm116_vm0, %v8518_v4 }
 0x2d4   :  { %9871 = vmatprep.mubr.msk.f32.mxu1 %vm116_vm0, %v8519_v5  ;;  %10871 = vmatpush3.bf16.msra.mxu1 %v10868_v60 }
 0x2d7   :  { %9872 = vmatmul.mubr.msk.f32.gmra.mrb[10].mxu1 %vm116_vm0, %v8520_v6 }
 0x2d8   :  { %9874 = vmatprep.mubr.msk.f32.mxu1 %vm116_vm0, %v8521_v7  ;;  %v8550_v7 = vld [vmem:[%s14852_s3 + $0x48] sm:$0xff] }
 0x2db   :  { %9875 = vmatmul.mubr.msk.f32.gmra.mrb[12].mxu1 %vm116_vm0, %v8522_v8  ;;  %v8551_v8 = vld [vmem:[%s14852_s3 + $0x50] sm:$0xff] }
 0x2dc   :  { %9877 = vmatprep.mubr.msk.f32.mxu1 %vm116_vm0, %v8523_v9  ;;  %v8552_v9 = vld [vmem:[%s14852_s3 + $0x58] sm:$0xff] }
 0x2df   :  { %9878 = vmatmul.mubr.msk.f32.gmra.mrb[14].mxu1 %vm116_vm0, %v8524_v10  ;;  %v8553_v10 = vld [vmem:[%s14852_s3 + $0x60] sm:$0xff] }
 0x2e0   :  { %9884 = vmatprep.mubr.msk.f32.mxu1 %vm116_vm0, %v8533_v11 }
 0x2e3   :  { %9885 = vmatmul.mubr.msk.f32.vlgmr.msra.gmra.mrb[8].mxu1 %vm116_vm0, %v8534_v12  ;;  %v8554_v12 = vld [vmem:[%s14852_s3 + $0x68] sm:$0xff] }
 0x2e4   :  { %9887 = vmatprep.mubr.msk.f32.mxu1 %vm116_vm0, %v8535_v13  ;;  %v8555_v13 = vld [vmem:[%s14852_s3 + $0x70] sm:$0xff] }
 0x2e7   :  { %9888 = vmatmul.mubr.msk.f32.gmra.mrb[10].mxu1 %vm116_vm0, %v8536_v14 }
 0x2e8   :  { %9890 = vmatprep.mubr.msk.f32.mxu1 %vm116_vm0, %v8537_v15 }
 0x2eb   :  { %9891 = vmatmul.mubr.msk.f32.gmra.mrb[12].mxu1 %vm116_vm0, %v8538_v16 }
 0x2ec   :  { %9893 = vmatprep.mubr.msk.f32.mxu1 %vm116_vm0, %v8539_v17  ;;  %v8556_v17 = vld [vmem:[%s14852_s3 + $0x78] sm:$0xff] }
 0x2ef   :  { %9894 = vmatmul.mubr.msk.f32.gmra.mrb[14].mxu1 %vm116_vm0, %v8540_v18  ;;  %v2720_v18 = vld [vmem:[%s14852_s3] sm:$0xff] }
 0x2f0   :  { %10148 = vmatprep.mubr.msk.f32.mxu1 %vm1040_vm1, %v12729_v25 }
 0x356   :  { %v13121_v19 = vpop.f32.mrb[0].mxu1 }
 0x357   :  { %v13123_v20 = vpop.f32.mrb[1].mxu1 }
 0x35a   :  { %v13125_v21 = vpop.f32.mrb[2].mxu1 }
 0x35b   :  { %v13127_v22 = vpop.f32.mrb[3].mxu1 }
 0x35e   :  { %v13129_v23 = vpop.f32.mrb[4].mxu1 }
 0x35f   :  { %v13131_v24 = vpop.f32.mrb[5].mxu1 }
 0x362   :  { %v13133_v26 = vpop.f32.mrb[6].mxu1 }
 0x363   :  { %v13135_v27 = vpop.f32.mrb[7].mxu1 }
 0x3b6   :  { %v9886_v28 = vpop.f32.mrb[8].mxu1 }
 0x3b7   :  { %v2713_v29 = vmax.f32 %v9886_v28, 0.0  ;;  %v2665_v30 = vpop.f32.mrb[9].mxu1 }
 0x3b8   :  { %v2712_v25 = vmax.f32 %v2665_v30, 0.0 }
 0x3ba   :  { %v9889_v31 = vpop.f32.mrb[10].mxu1  ;;  %v11801_v32 = vpack.i.bf16 %v2713_v29, %v2712_v25  ;;  %v13137_v35 = vpack.c.bf16 %v2713_v29, %v2712_v25 }
 0x3bb   :  { %v2715_v33 = vmax.f32 %v9889_v31, 0.0  ;;  %v2675_v34 = vpop.f32.mrb[11].mxu1  ;;  %v2721_v31 = vld [vmem:[%s14852_s3 + $0x8] sm:$0xff] }
 0x3bc   :  { %v2714_v36 = vmax.f32 %v2675_v34, 0.0  ;;  %11802 = vrot.lane.b32.xlu1 %v11801_v32, %s14832_s10 }
 0x3be   :  { %v9892_v37 = vpop.f32.mrb[12].mxu1  ;;  %v11806_v38 = vpack.i.bf16 %v2715_v33, %v2714_v36  ;;  %v13140_v41 = vpack.c.bf16 %v2715_v33, %v2714_v36 }
 0x3bf   :  { %v2717_v39 = vmax.f32 %v9892_v37, 0.0  ;;  %v2685_v40 = vpop.f32.mrb[13].mxu1  ;;  %v2723_v37 = vld [vmem:[%s14852_s3 + $0x18] sm:$0xff] }
 0x3c0   :  { %v2716_v42 = vmax.f32 %v2685_v40, 0.0  ;;  %11807 = vrot.lane.b32.xlu0 %v11806_v38, %s14832_s10 }
 0x3c2   :  { %v9895_v44 = vpop.f32.mrb[14].mxu1  ;;  %v11811_v45 = vpack.i.bf16 %v2717_v39, %v2716_v42  ;;  %v13150_v48 = vpack.c.bf16 %v2717_v39, %v2716_v42 }
 0x3c3   :  { %v2719_v46 = vmax.f32 %v9895_v44, 0.0  ;;  %v2695_v47 = vpop.f32.mrb[15].mxu1  ;;  %v2725_v44 = vld [vmem:[%s14852_s3 + $0x28] sm:$0xff] }
 0x3c4   :  { %v2718_v3 = vmax.f32 %v2695_v47, 0.0  ;;  %11812 = vrot.lane.b32.xlu1 %v11811_v45, %s14832_s10 }
 0x3c6   :  { %v11816_v49 = vpack.i.bf16 %v2719_v46, %v2718_v3  ;;  %v13153_v50 = vpack.c.bf16 %v2719_v46, %v2718_v3 }
 0x3c8   :  { %11822 = vrot.lane.b32.xlu1 %v11801_v32, %s14830_s1  ;;  %11817 = vrot.lane.b32.xlu0 %v11816_v49, %s14832_s10 }
 0x3cc   :  { %11832 = vrot.lane.b32.xlu1 %v11811_v45, %s14830_s1  ;;  %11827 = vrot.lane.b32.xlu0 %v11806_v38, %s14830_s1 }
 0x3d0   :  { %11842 = vrot.lane.b32.xlu1 %v11801_v32, %s14828_s29  ;;  %11837 = vrot.lane.b32.xlu0 %v11816_v49, %s14830_s1 }
 0x3d4   :  { %11852 = vrot.lane.b32.xlu1 %v11811_v45, %s14828_s29  ;;  %11847 = vrot.lane.b32.xlu0 %v11806_v38, %s14828_s29 }
 0x3d8   :  { %11862 = vrot.lane.b32.xlu1 %v11801_v32, %s14853_s7  ;;  %11857 = vrot.lane.b32.xlu0 %v11816_v49, %s14828_s29  ;;  %v2722_v32 = vld [vmem:[%s14852_s3 + $0x10] sm:$0xff] }
 0x3dc   :  { %11872 = vrot.lane.b32.xlu1 %v11811_v45, %s14853_s7  ;;  %11867 = vrot.lane.b32.xlu0 %v11806_v38, %s14853_s7  ;;  %v2724_v38 = vld [vmem:[%s14852_s3 + $0x20] sm:$0xff]  ;;  %v2726_v45 = vld [vmem:[%s14852_s3 + $0x30] sm:$0xff] }
 0x3e0   :  { %11877 = vrot.lane.b32.xlu0 %v11816_v49, %s14853_s7  ;;  %11882 = vrot.lane.b32.xlu1 %v13179_v53, %s14832_s10  ;;  %v2727_v49 = vld [vmem:[%s14852_s3 + $0x38] sm:$0xff] }
 0x3e4   :  { %11887 = vrot.lane.b32.xlu0 %v13179_v53, %s14830_s1  ;;  %11892 = vrot.lane.b32.xlu1 %v13179_v53, %s14828_s29  ;;  %s14858_s29 = smov 88   ;;  %s14859_s1 = smov 86  }
 0x3e8   :  { %11897 = vrot.lane.b32.xlu0 %v13179_v53, %s14853_s7  ;;  %11902 = vrot.lane.b32.xlu1 %v13179_v53, %s14854_s30  ;;  %s14861_s30 = smov 84  }
 0x42e   :  { %v11803_v54 = vpop.permute.xlu1 %11802 }
 0x42f   :  { %v11805_v55 = vunpack.i.h.bf16 %v11803_v54  ;;  %v11804_v56 = vunpack.i.l.bf16 %v11803_v54 }
 0x431   :  { %v10872_v57 = vpack.c.bf16 %v11805_v55, %v11804_v56 }
 0x432   :  { %v11808_v58 = vpop.permute.xlu0 %11807 }
 0x433   :  { %v11810_v59 = vunpack.i.h.bf16 %v11808_v58  ;;  %v11809_v60 = vunpack.i.l.bf16 %v11808_v58  ;;  %10873 = vmatprep.subr.bf16.mxu0 %v10872_v57  ;;  %v8574_v58 = vld [vmem:[%s14852_s3 + $0x88] sm:$0xff] }
 0x434   :  { %10875 = vmatpush3.bf16.msra.mxu0 %v10872_v57 }
 0x435   :  { %v10876_v61 = vpack.c.bf16 %v11810_v59, %v11809_v60  ;;  %v8575_v59 = vld [vmem:[%s14852_s3 + $0x90] sm:$0xff] }
 0x436   :  { %v11813_v62 = vpop.permute.xlu1 %11812 }
 0x437   :  { %v11815_v63 = vunpack.i.h.bf16 %v11813_v62  ;;  %v11814_v0 = vunpack.i.l.bf16 %v11813_v62  ;;  %10877 = vmatprep.subr.bf16.mxu0 %v10876_v61 }
 0x438   :  { %10879 = vmatpush3.bf16.msra.mxu0 %v10876_v61 }
 0x439   :  { %v10880_v1 = vpack.c.bf16 %v11815_v63, %v11814_v0  ;;  %v8576_v0 = vld [vmem:[%s14852_s3 + $0x98] sm:$0xff] }
 0x43a   :  { %v11818_v2 = vpop.permute.xlu0 %11817  ;;  %v11823_v11 = vpop.permute.xlu1 %11822 }
 0x43b   :  { %v11820_v4 = vunpack.i.h.bf16 %v11818_v2  ;;  %v11819_v5 = vunpack.i.l.bf16 %v11818_v2  ;;  %10881 = vmatprep.subr.bf16.mxu0 %v10880_v1  ;;  %v11825_v14 = vunpack.i.h.bf16 %v11823_v11  ;;  %v11824_v15 = vunpack.i.l.bf16 %v11823_v11 }
 0x43c   :  { %10883 = vmatpush3.bf16.msra.mxu0 %v10880_v1  ;;  %v8577_v1 = vld [vmem:[%s14852_s3 + $0xa0] sm:$0xff] }
 0x43d   :  { %v10884_v6 = vpack.c.bf16 %v11820_v4, %v11819_v5  ;;  %v10904_v28 = vpack.c.bf16 %v11825_v14, %v11824_v15  ;;  %v8589_v14 = vld [vmem:[%s14852_s3 + $0xc0] sm:$0xff] }
 0x43e   :  { %v11828_v16 = vpop.permute.xlu0 %11827  ;;  %v11833_v25 = vpop.permute.xlu1 %11832 }
 0x43f   :  { %10885 = vmatprep.subr.bf16.mxu0 %v10884_v6  ;;  %v11830_v29 = vunpack.i.h.bf16 %v11828_v16  ;;  %v11829_v30 = vunpack.i.l.bf16 %v11828_v16  ;;  %v11835_v33 = vunpack.i.h.bf16 %v11833_v25  ;;  %v11834_v34 = vunpack.i.l.bf16 %v11833_v25 }
 0x440   :  { %10887 = vmatpush3.bf16.msra.mxu0 %v10884_v6 }
 0x441   :  { %10889 = vmatprep.subr.bf16.mxu0 %v13137_v35  ;;  %v10912_v39 = vpack.c.bf16 %v11835_v33, %v11834_v34  ;;  %v8592_v33 = vld [vmem:[%s14852_s3 + $0xd8] sm:$0xff]  ;;  %v8593_v34 = vld [vmem:[%s14852_s3 + $0xe0] sm:$0xff] }
 0x442   :  { %v11838_v36 = vpop.permute.xlu0 %11837  ;;  %v11843_v42 = vpop.permute.xlu1 %11842 }
 0x443   :  { %9913 = vmatmul.mubr.msk.f32.vlgmr.msra.gmra.mrb[8].mxu0 %vm1040_vm1, %v8550_v7  ;;  %v11840_v40 = vunpack.i.h.bf16 %v11838_v36  ;;  %v11845_v46 = vunpack.i.h.bf16 %v11843_v42  ;;  %v11844_v47 = vunpack.i.l.bf16 %v11843_v42  ;;  %v8578_v7 = vld [vmem:[%s14852_s3 + $0xa8] sm:$0xff] }
 0x444   :  { %10891 = vmatpush3.bf16.msra.mxu0 %v13137_v35  ;;  %9915 = vmatprep.mubr.msk.f32.mxu0 %vm1040_vm1, %v8551_v8  ;;  %v10908_v35 = vpack.c.bf16 %v11830_v29, %v11829_v30  ;;  %v8579_v8 = vld [vmem:[%s14852_s3 + $0xb0] sm:$0xff] }
 0x445   :  { %10893 = vmatprep.subr.bf16.mxu0 %v13140_v41  ;;  %v10920_v54 = vpack.c.bf16 %v11845_v46, %v11844_v47  ;;  %v8591_v29 = vld [vmem:[%s14852_s3 + $0xd0] sm:$0xff]  ;;  %v8605_v46 = vld [vmem:[%s14852_s3 + $0x100] sm:$0xff] }
 0x446   :  { %v11848_v3 = vpop.permute.xlu0 %11847  ;;  %v11853_v57 = vpop.permute.xlu1 %11852 }
 0x447   :  { %9916 = vmatmul.mubr.msk.f32.gmra.mrb[10].mxu0 %vm1040_vm1, %v8552_v9  ;;  %v11850_v55 = vunpack.i.h.bf16 %v11848_v3  ;;  %v11849_v56 = vunpack.i.l.bf16 %v11848_v3  ;;  %v11855_v60 = vunpack.i.h.bf16 %v11853_v57  ;;  %v11854_v61 = vunpack.i.l.bf16 %v11853_v57  ;;  %v8607_v3 = vld [vmem:[%s14852_s3 + $0x110] sm:$0xff] }
 0x448   :  { %10895 = vmatpush3.bf16.msra.mxu0 %v13140_v41  ;;  %9918 = vmatprep.mubr.msk.f32.mxu0 %vm1040_vm1, %v8553_v10  ;;  %v11839_v41 = vunpack.i.l.bf16 %v11838_v36 }
 0x449   :  { %10897 = vmatprep.subr.bf16.mxu0 %v13150_v48  ;;  %v10924_v62 = vpack.c.bf16 %v11850_v55, %v11849_v56  ;;  %v10928_v2 = vpack.c.bf16 %v11855_v60, %v11854_v61  ;;  %v8612_v56 = vld [vmem:[%s14852_s3 + $0x138] sm:$0xff]  ;;  %v12143_v61 = vld [vmem:[%s14849_s0 + $0x48] sm:$0xff] }
 0x44a   :  { %v11858_v63 = vpop.permute.xlu0 %11857  ;;  %v11863_v6 = vpop.permute.xlu1 %11862 }
 0x44b   :  { %9919 = vmatmul.mubr.msk.f32.gmra.mrb[12].mxu0 %vm1040_vm1, %v8554_v12  ;;  %v11860_v4 = vunpack.i.h.bf16 %v11858_v63  ;;  %v11859_v5 = vunpack.i.l.bf16 %v11858_v63  ;;  %v11865_v9 = vunpack.i.h.bf16 %v11863_v6  ;;  %v11864_v10 = vunpack.i.l.bf16 %v11863_v6  ;;  %v12145_v63 = vld [vmem:[%s14849_s0 + $0x58] sm:$0xff] }
 0x44c   :  { %10899 = vmatpush3.bf16.msra.mxu0 %v13150_v48  ;;  %9921 = vmatprep.mubr.msk.f32.mxu0 %vm1040_vm1, %v8555_v13  ;;  %v10916_v48 = vpack.c.bf16 %v11840_v40, %v11839_v41  ;;  %v8580_v13 = vld [vmem:[%s14852_s3 + $0xb8] sm:$0xff]  ;;  %v8595_v40 = vld [vmem:[%s14852_s3 + $0xf0] sm:$0xff] }
 0x44d   :  { %10901 = vmatprep.subr.bf16.mxu0 %v13153_v50  ;;  %v10932_v11 = vpack.c.bf16 %v11860_v4, %v11859_v5  ;;  %v10936_v15 = vpack.c.bf16 %v11865_v9, %v11864_v10  ;;  %v12148_v4 = vld [vmem:[%s14849_s0 + $0x70] sm:$0xff]  ;;  %v12151_v10 = vld [vmem:[%s14849_s0 + $0x8] sm:$0xff] }
 0x44e   :  { %v11868_v12 = vpop.permute.xlu0 %11867 }
 0x44f   :  { %9922 = vmatmul.mubr.msk.f32.gmra.mrb[14].mxu0 %vm1040_vm1, %v8556_v17  ;;  %v11870_v16 = vunpack.i.h.bf16 %v11868_v12  ;;  %v11869_v17 = vunpack.i.l.bf16 %v11868_v12  ;;  %v12153_v12 = vld [vmem:[%s14849_s0 + $0x18] sm:$0xff] }
 0x450   :  { %10903 = vmatpush3.bf16.msra.mxu0 %v13153_v50  ;;  %9940 = vmatprep.mubr.msk.f32.mxu0 %vm1040_vm1, %v2720_v18  ;;  %v8573_v50 = vld [vmem:[%s14852_s3 + $0x80] sm:$0xff]  ;;  %v11873_v18 = vpop.permute.xlu1 %11872 }
 0x451   :  { %10905 = vmatprep.subr.bf16.mxu0 %v10904_v28  ;;  %v11875_v30 = vunpack.i.h.bf16 %v11873_v18  ;;  %v11874_v25 = vunpack.i.l.bf16 %v11873_v18 }
 0x453   :  { %9941 = vmatmul.mubr.msk.f32.vlgmr.msra.gmra.mrb[8].mxu0 %vm1040_vm1, %v2721_v31  ;;  %v10940_v31 = vpack.c.bf16 %v11870_v16, %v11869_v17  ;;  %v10944_v36 = vpack.c.bf16 %v11875_v30, %v11874_v25  ;;  %v12156_v16 = vld [vmem:[%s14849_s0 + $0x30] sm:$0xff]  ;;  %v12159_v25 = vld [vmem:[%s14849_s0 + $0x88] sm:$0xff] }
 0x454   :  { %10907 = vmatpush3.bf16.msra.mxu0 %v10904_v28  ;;  %9943 = vmatprep.mubr.msk.f32.mxu0 %vm1040_vm1, %v2722_v32  ;;  %v8590_v28 = vld [vmem:[%s14852_s3 + $0xc8] sm:$0xff]  ;;  %v11878_v32 = vpop.permute.xlu0 %11877 }
 0x455   :  { %10909 = vmatprep.subr.bf16.mxu0 %v10908_v35 }
 0x457   :  { %9944 = vmatmul.mubr.msk.f32.gmra.mrb[10].mxu0 %vm1040_vm1, %v2723_v37  ;;  %v11880_v37 = vunpack.i.h.bf16 %v11878_v32 }
 0x458   :  { %10911 = vmatpush3.bf16.msra.mxu0 %v10908_v35  ;;  %9946 = vmatprep.mubr.msk.f32.mxu0 %vm1040_vm1, %v2724_v38  ;;  %v11883_v35 = vpop.permute.xlu1 %11882  ;;  %v11879_v38 = vunpack.i.l.bf16 %v11878_v32  ;;  %v11888_v55 = vpop.permute.xlu0 %11887  ;;  %v12161_v32 = vld [vmem:[%s14849_s0 + $0x98] sm:$0xff] }
 0x459   :  { %10913 = vmatprep.subr.bf16.mxu0 %v10912_v39  ;;  %v11885_v41 = vunpack.i.h.bf16 %v11883_v35  ;;  %v11884_v42 = vunpack.i.l.bf16 %v11883_v35  ;;  %v11890_v57 = vunpack.i.h.bf16 %v11888_v55  ;;  %v12163_v35 = vld [vmem:[%s14849_s0 + $0xa8] sm:$0xff] }
 0x45b   :  { %9947 = vmatmul.mubr.msk.f32.gmra.mrb[12].mxu0 %vm1040_vm1, %v2725_v44  ;;  %v10948_v44 = vpack.c.bf16 %v11880_v37, %v11879_v38  ;;  %v10952_v47 = vpack.c.bf16 %v11885_v41, %v11884_v42  ;;  %v12167_v42 = vld [vmem:[%s14849_s0 + $0xc8] sm:$0xff] }
 0x45c   :  { %10915 = vmatpush3.bf16.msra.mxu0 %v10912_v39  ;;  %9949 = vmatprep.mubr.msk.f32.mxu0 %vm1040_vm1, %v2726_v45  ;;  %v8594_v39 = vld [vmem:[%s14852_s3 + $0xe8] sm:$0xff]  ;;  %v8596_v45 = vld [vmem:[%s14852_s3 + $0xf8] sm:$0xff] }
 0x45d   :  { %10917 = vmatprep.subr.bf16.mxu0 %v10916_v48 }
 0x45f   :  { %9950 = vmatmul.mubr.msk.f32.gmra.mrb[14].mxu0 %vm1040_vm1, %v2727_v49  ;;  %v10956_v49 = vpack.c.bf16 %v13173_v52, %v13168_v51  ;;  %v8610_v51 = vld [vmem:[%s14852_s3 + $0x128] sm:$0xff]  ;;  %v8611_v52 = vld [vmem:[%s14852_s3 + $0x130] sm:$0xff] }
 0x460   :  { %10919 = vmatpush3.bf16.msra.mxu0 %v10916_v48  ;;  %9968 = vmatprep.mubr.msk.f32.mxu0 %vm1040_vm1, %v8573_v50  ;;  %v8606_v48 = vld [vmem:[%s14852_s3 + $0x108] sm:$0xff]  ;;  %v8608_v50 = vld [vmem:[%s14852_s3 + $0x118] sm:$0xff] }
 0x461   :  { %10921 = vmatprep.subr.bf16.mxu0 %v10920_v54 }
 0x463   :  { %9969 = vmatmul.mubr.msk.f32.vlgmr.msra.gmra.mrb[8].mxu0 %vm1040_vm1, %v8574_v58  ;;  %v11889_v58 = vunpack.i.l.bf16 %v11888_v55  ;;  %v12179_v55 = vld [vmem:[%s14849_s0 + $0x128] sm:$0xff] }
 0x464   :  { %10923 = vmatpush3.bf16.msra.mxu0 %v10920_v54  ;;  %9971 = vmatprep.mubr.msk.f32.mxu0 %vm1040_vm1, %v8575_v59  ;;  %v8609_v54 = vld [vmem:[%s14852_s3 + $0x120] sm:$0xff] }
 0x465   :  { %10925 = vmatprep.subr.bf16.mxu0 %v10924_v62  ;;  %v12142_v59 = vld [vmem:[%s14849_s0 + $0x40] sm:$0xff]  ;;  %v10960_v60 = vpack.c.bf16 %v11890_v57, %v11889_v58  ;;  %v12181_v57 = vld [vmem:[%s14849_s0 + $0x138] sm:$0xff] }
 0x466   :  { %v12182_v58 = vld [vmem:[%s14849_s0 + $0x140] sm:$0xff] }
 0x467   :  { %9972 = vmatmul.mubr.msk.f32.gmra.mrb[10].mxu0 %vm1040_vm1, %v8576_v0  ;;  %v12146_v0 = vld [vmem:[%s14849_s0 + $0x60] sm:$0xff] }
 0x468   :  { %10927 = vmatpush3.bf16.msra.mxu0 %v10924_v62  ;;  %9974 = vmatprep.mubr.msk.f32.mxu0 %vm1040_vm1, %v8577_v1  ;;  %v12144_v62 = vld [vmem:[%s14849_s0 + $0x50] sm:$0xff]  ;;  %v11893_v1 = vpop.permute.xlu1 %11892 }
 0x469   :  { %10929 = vmatprep.subr.bf16.mxu0 %v10928_v2  ;;  %v11895_v5 = vunpack.i.h.bf16 %v11893_v1  ;;  %v11894_v6 = vunpack.i.l.bf16 %v11893_v1  ;;  %v12189_v1 = vld [vmem:[%s14849_s0 + $0x178] sm:$0xff] }
 0x46b   :  { %9975 = vmatmul.mubr.msk.f32.gmra.mrb[12].mxu0 %vm1040_vm1, %v8578_v7  ;;  %v12149_v7 = vld [vmem:[%s14849_s0 + $0x78] sm:$0xff]  ;;  %v10964_v9 = vpack.c.bf16 %v11895_v5, %v11894_v6 }
 0x46c   :  { %10931 = vmatpush3.bf16.msra.mxu0 %v10928_v2  ;;  %9977 = vmatprep.mubr.msk.f32.mxu0 %vm1040_vm1, %v8579_v8  ;;  %v12147_v2 = vld [vmem:[%s14849_s0 + $0x68] sm:$0xff]  ;;  %v12150_v8 = vld [vmem:[%s14849_s0] sm:$0xff] }
 0x46d   :  { %10933 = vmatprep.subr.bf16.mxu0 %v10932_v11 }
 0x46f   :  { %9978 = vmatmul.mubr.msk.f32.gmra.mrb[14].mxu0 %vm1040_vm1, %v8580_v13  ;;  %v12154_v13 = vld [vmem:[%s14849_s0 + $0x20] sm:$0xff] }
 0x470   :  { %10935 = vmatpush3.bf16.msra.mxu0 %v10932_v11  ;;  %9996 = vmatprep.mubr.msk.f32.mxu0 %vm1040_vm1, %v8589_v14  ;;  %v12152_v11 = vld [vmem:[%s14849_s0 + $0x10] sm:$0xff]  ;;  %v11898_v14 = vpop.permute.xlu0 %11897 }
 0x471   :  { %10937 = vmatprep.subr.bf16.mxu0 %v10936_v15  ;;  %v11900_v17 = vunpack.i.h.bf16 %v11898_v14  ;;  %v11899_v18 = vunpack.i.l.bf16 %v11898_v14 }
 0x473   :  { %9997 = vmatmul.mubr.msk.f32.vlgmr.msra.gmra.mrb[8].mxu0 %vm1040_vm1, %v8590_v28  ;;  %v12157_v28 = vld [vmem:[%s14849_s0 + $0x38] sm:$0xff]  ;;  %v10968_v30 = vpack.c.bf16 %v11900_v17, %v11899_v18 }
 0x474   :  { %10939 = vmatpush3.bf16.msra.mxu0 %v10936_v15  ;;  %9999 = vmatprep.mubr.msk.f32.mxu0 %vm1040_vm1, %v8591_v29  ;;  %v12155_v15 = vld [vmem:[%s14849_s0 + $0x28] sm:$0xff]  ;;  %v12158_v29 = vld [vmem:[%s14849_s0 + $0x80] sm:$0xff] }
 0x475   :  { %10941 = vmatprep.subr.bf16.mxu0 %v10940_v31 }
 0x477   :  { %10000 = vmatmul.mubr.msk.f32.gmra.mrb[10].mxu0 %vm1040_vm1, %v8592_v33  ;;  %v12162_v33 = vld [vmem:[%s14849_s0 + $0xa0] sm:$0xff] }
 0x478   :  { %10943 = vmatpush3.bf16.msra.mxu0 %v10940_v31  ;;  %10002 = vmatprep.mubr.msk.f32.mxu0 %vm1040_vm1, %v8593_v34  ;;  %v12160_v31 = vld [vmem:[%s14849_s0 + $0x90] sm:$0xff]  ;;  %v11903_v34 = vpop.permute.xlu1 %11902 }
 0x479   :  { %10945 = vmatprep.subr.bf16.mxu0 %v10944_v36  ;;  %v11905_v37 = vunpack.i.h.bf16 %v11903_v34  ;;  %v11904_v38 = vunpack.i.l.bf16 %v11903_v34 }
 0x47b   :  { %10003 = vmatmul.mubr.msk.f32.gmra.mrb[12].mxu0 %vm1040_vm1, %v8594_v39  ;;  %v12165_v39 = vld [vmem:[%s14849_s0 + $0xb8] sm:$0xff]  ;;  %v10972_v41 = vpack.c.bf16 %v11905_v37, %v11904_v38 }
 0x47c   :  { %10947 = vmatpush3.bf16.msra.mxu0 %v10944_v36  ;;  %10005 = vmatprep.mubr.msk.f32.mxu0 %vm1040_vm1, %v8595_v40  ;;  %v12164_v36 = vld [vmem:[%s14849_s0 + $0xb0] sm:$0xff]  ;;  %v12166_v40 = vld [vmem:[%s14849_s0 + $0xc0] sm:$0xff] }
 0x47d   :  { %10949 = vmatprep.subr.bf16.mxu0 %v10948_v44 }
 0x47f   :  { %10006 = vmatmul.mubr.msk.f32.gmra.mrb[14].mxu0 %vm1040_vm1, %v8596_v45  ;;  %v12169_v45 = vld [vmem:[%s14849_s0 + $0xd8] sm:$0xff] }
 0x480   :  { %10951 = vmatpush3.bf16.msra.mxu0 %v10948_v44  ;;  %10024 = vmatprep.mubr.msk.f32.mxu0 %vm1040_vm1, %v8605_v46  ;;  %v12168_v44 = vld [vmem:[%s14849_s0 + $0xd0] sm:$0xff]  ;;  %v12170_v46 = vld [vmem:[%s14849_s0 + $0xe0] sm:$0xff] }
 0x481   :  { %10953 = vmatprep.subr.bf16.mxu0 %v10952_v47 }
 0x483   :  { %10025 = vmatmul.mubr.msk.f32.vlgmr.msra.gmra.mrb[8].mxu0 %vm1040_vm1, %v8606_v48  ;;  %v12172_v48 = vld [vmem:[%s14849_s0 + $0xf0] sm:$0xff] }
 0x484   :  { %10027 = vmatprep.mubr.msk.f32.mxu0 %vm1040_vm1, %v8607_v3  ;;  %10955 = vmatpush3.bf16.msra.mxu0 %v10952_v47  ;;  %v12171_v47 = vld [vmem:[%s14849_s0 + $0xe8] sm:$0xff]  ;;  %v12173_v3 = vld [vmem:[%s14849_s0 + $0xf8] sm:$0xff] }
 0x485   :  { %10957 = vmatprep.subr.bf16.mxu0 %v10956_v49 }
 0x487   :  { %10028 = vmatmul.mubr.msk.f32.gmra.mrb[10].mxu0 %vm1040_vm1, %v8608_v50  ;;  %v12175_v50 = vld [vmem:[%s14849_s0 + $0x108] sm:$0xff] }
 0x488   :  { %10030 = vmatprep.mubr.msk.f32.mxu0 %vm1040_vm1, %v8609_v54  ;;  %v12176_v54 = vld [vmem:[%s14849_s0 + $0x110] sm:$0xff] }
 0x48b   :  { %10031 = vmatmul.mubr.msk.f32.gmra.mrb[12].mxu0 %vm1040_vm1, %v8610_v51  ;;  %v12177_v51 = vld [vmem:[%s14849_s0 + $0x118] sm:$0xff] }
 0x48c   :  { %10033 = vmatprep.mubr.msk.f32.mxu0 %vm1040_vm1, %v8611_v52  ;;  %v12178_v52 = vld [vmem:[%s14849_s0 + $0x120] sm:$0xff] }
 0x48f   :  { %10034 = vmatmul.mubr.msk.f32.gmra.mrb[14].mxu0 %vm1040_vm1, %v8612_v56  ;;  %v12180_v56 = vld [vmem:[%s14849_s0 + $0x130] sm:$0xff] }
 0x490   :  { %10040 = vmatprep.mubr.msk.f32.mxu0 %vm116_vm0, %v12142_v59  ;;  %v12183_v59 = vld [vmem:[%s14849_s0 + $0x148] sm:$0xff] }
 0x493   :  { %10041 = vmatmul.mubr.msk.f32.vlgmr.msra.gmra.mrb[16].mxu0 %vm116_vm0, %v12143_v61  ;;  %v12185_v61 = vld [vmem:[%s14849_s0 + $0x158] sm:$0xff] }
 0x494   :  { %10043 = vmatprep.mubr.msk.f32.mxu0 %vm116_vm0, %v12144_v62  ;;  %10959 = vmatpush3.bf16.msra.mxu0 %v10956_v49  ;;  %v12174_v49 = vld [vmem:[%s14849_s0 + $0x100] sm:$0xff] }
 0x495   :  { %10961 = vmatprep.subr.bf16.mxu0 %v10960_v60  ;;  %v12186_v62 = vld [vmem:[%s14849_s0 + $0x160] sm:$0xff] }
 0x497   :  { %10044 = vmatmul.mubr.msk.f32.gmra.mrb[18].mxu0 %vm116_vm0, %v12145_v63  ;;  %v12187_v63 = vld [vmem:[%s14849_s0 + $0x168] sm:$0xff] }
 0x498   :  { %10046 = vmatprep.mubr.msk.f32.mxu0 %vm116_vm0, %v12146_v0  ;;  %v12188_v0 = vld [vmem:[%s14849_s0 + $0x170] sm:$0xff] }
 0x49b   :  { %10047 = vmatmul.mubr.msk.f32.gmra.mrb[20].mxu0 %vm116_vm0, %v12147_v2 }
 0x49c   :  { %10049 = vmatprep.mubr.msk.f32.mxu0 %vm116_vm0, %v12148_v4 }
 0x49f   :  { %10050 = vmatmul.mubr.msk.f32.gmra.mrb[22].mxu0 %vm116_vm0, %v12149_v7 }
 0x4a0   :  { %10056 = vmatprep.mubr.msk.f32.mxu0 %vm116_vm0, %v12150_v8 }
 0x4a3   :  { %10057 = vmatmul.mubr.msk.f32.vlgmr.msra.gmra.mrb[16].mxu0 %vm116_vm0, %v12151_v10 }
 0x4a4   :  { %10059 = vmatprep.mubr.msk.f32.mxu0 %vm116_vm0, %v12152_v11  ;;  %10963 = vmatpush3.bf16.msra.mxu0 %v10960_v60  ;;  %v12184_v60 = vld [vmem:[%s14849_s0 + $0x150] sm:$0xff]  ;;  %s14855_s0 = smov 126  }
 0x4a5   :  { %10965 = vmatprep.subr.bf16.mxu0 %v10964_v9 }
 0x4a7   :  { %10060 = vmatmul.mubr.msk.f32.gmra.mrb[18].mxu0 %vm116_vm0, %v12153_v12 }
 0x4a8   :  { %10062 = vmatprep.mubr.msk.f32.mxu0 %vm116_vm0, %v12154_v13 }
 0x4ab   :  { %10063 = vmatmul.mubr.msk.f32.gmra.mrb[20].mxu0 %vm116_vm0, %v12155_v15 }
 0x4ac   :  { %10065 = vmatprep.mubr.msk.f32.mxu0 %vm116_vm0, %v12156_v16 }
 0x4af   :  { %10066 = vmatmul.mubr.msk.f32.gmra.mrb[22].mxu0 %vm116_vm0, %v12157_v28 }
 0x4b0   :  { %10072 = vmatprep.mubr.msk.f32.mxu0 %vm116_vm0, %v12158_v29 }
 0x4b3   :  { %10073 = vmatmul.mubr.msk.f32.vlgmr.msra.gmra.mrb[16].mxu0 %vm116_vm0, %v12159_v25 }
 0x4b4   :  { %10075 = vmatprep.mubr.msk.f32.mxu0 %vm116_vm0, %v12160_v31  ;;  %10967 = vmatpush3.bf16.msra.mxu0 %v10964_v9 }
 0x4b5   :  { %10969 = vmatprep.subr.bf16.mxu0 %v10968_v30 }
 0x4b7   :  { %10076 = vmatmul.mubr.msk.f32.gmra.mrb[18].mxu0 %vm116_vm0, %v12161_v32 }
 0x4b8   :  { %10078 = vmatprep.mubr.msk.f32.mxu0 %vm116_vm0, %v12162_v33 }
 0x4bb   :  { %10079 = vmatmul.mubr.msk.f32.gmra.mrb[20].mxu0 %vm116_vm0, %v12163_v35 }
 0x4bc   :  { %10081 = vmatprep.mubr.msk.f32.mxu0 %vm116_vm0, %v12164_v36 }
 0x4bf   :  { %10082 = vmatmul.mubr.msk.f32.gmra.mrb[22].mxu0 %vm116_vm0, %v12165_v39 }
 0x4c0   :  { %10088 = vmatprep.mubr.msk.f32.mxu0 %vm116_vm0, %v12166_v40 }
 0x4c3   :  { %10089 = vmatmul.mubr.msk.f32.vlgmr.msra.gmra.mrb[16].mxu0 %vm116_vm0, %v12167_v42 }
 0x4c4   :  { %10091 = vmatprep.mubr.msk.f32.mxu0 %vm116_vm0, %v12168_v44  ;;  %10971 = vmatpush3.bf16.msra.mxu0 %v10968_v30 }
 0x4c5   :  { %10973 = vmatprep.subr.bf16.mxu0 %v10972_v41 }
 0x4c7   :  { %10092 = vmatmul.mubr.msk.f32.gmra.mrb[18].mxu0 %vm116_vm0, %v12169_v45 }
 0x4c8   :  { %10094 = vmatprep.mubr.msk.f32.mxu0 %vm116_vm0, %v12170_v46 }
 0x4cb   :  { %10095 = vmatmul.mubr.msk.f32.gmra.mrb[20].mxu0 %vm116_vm0, %v12171_v47 }
 0x4cc   :  { %10097 = vmatprep.mubr.msk.f32.mxu0 %vm116_vm0, %v12172_v48 }
 0x4cf   :  { %10098 = vmatmul.mubr.msk.f32.gmra.mrb[22].mxu0 %vm116_vm0, %v12173_v3 }
 0x4d0   :  { %10104 = vmatprep.mubr.msk.f32.mxu0 %vm116_vm0, %v12174_v49 }
 0x4d3   :  { %10105 = vmatmul.mubr.msk.f32.vlgmr.msra.gmra.mrb[16].mxu0 %vm116_vm0, %v12175_v50 }
 0x4d4   :  { %10107 = vmatprep.mubr.msk.f32.mxu0 %vm116_vm0, %v12176_v54  ;;  %10975 = vmatpush3.bf16.msra.mxu0 %v10972_v41 }
 0x4d7   :  { %10108 = vmatmul.mubr.msk.f32.gmra.mrb[18].mxu0 %vm116_vm0, %v12177_v51 }
 0x4d8   :  { %10110 = vmatprep.mubr.msk.f32.mxu0 %vm116_vm0, %v12178_v52 }
 0x4db   :  { %10111 = vmatmul.mubr.msk.f32.gmra.mrb[20].mxu0 %vm116_vm0, %v12179_v55 }
 0x4dc   :  { %10113 = vmatprep.mubr.msk.f32.mxu0 %vm116_vm0, %v12180_v56 }
 0x4df   :  { %10114 = vmatmul.mubr.msk.f32.gmra.mrb[22].mxu0 %vm116_vm0, %v12181_v57 }
 0x4e0   :  { %10120 = vmatprep.mubr.msk.f32.mxu0 %vm116_vm0, %v12182_v58  ;;  %v12190_v58 = vld [vmem:[%s14850_s2 + $0x48] sm:$0xff] }
 0x4e3   :  { %10121 = vmatmul.mubr.msk.f32.vlgmr.msra.gmra.mrb[16].mxu0 %vm116_vm0, %v12183_v59  ;;  %v12191_v59 = vld [vmem:[%s14850_s2 + $0x50] sm:$0xff] }
 0x4e4   :  { %10123 = vmatprep.mubr.msk.f32.mxu0 %vm116_vm0, %v12184_v60  ;;  %v12192_v60 = vld [vmem:[%s14850_s2 + $0x58] sm:$0xff] }
 0x4e7   :  { %10124 = vmatmul.mubr.msk.f32.gmra.mrb[18].mxu0 %vm116_vm0, %v12185_v61 }
 0x4e8   :  { %10126 = vmatprep.mubr.msk.f32.mxu0 %vm116_vm0, %v12186_v62  ;;  %v12193_v62 = vld [vmem:[%s14850_s2 + $0x60] sm:$0xff] }
 0x4eb   :  { %10127 = vmatmul.mubr.msk.f32.gmra.mrb[20].mxu0 %vm116_vm0, %v12187_v63 }
 0x4ec   :  { %10129 = vmatprep.mubr.msk.f32.mxu0 %vm116_vm0, %v12188_v0 }
 0x4ef   :  { %10130 = vmatmul.mubr.msk.f32.gmra.mrb[22].mxu0 %vm116_vm0, %v12189_v1  ;;  %v12194_v1 = vld [vmem:[%s14850_s2 + $0x68] sm:$0xff] }
 0x4f0   :  { %10384 = vmatprep.mubr.msk.f32.mxu0 %vm1040_vm1, %v13146_v43 }
 0x556   :  { %v13552_v2 = vpop.f32.mrb[8].mxu0 }
 0x557   :  { %v13554_v4 = vpop.f32.mrb[9].mxu0 }
 0x55a   :  { %v13556_v5 = vpop.f32.mrb[10].mxu0 }
 0x55b   :  { %v13558_v6 = vpop.f32.mrb[11].mxu0 }
 0x55e   :  { %v13560_v7 = vpop.f32.mrb[12].mxu0 }
 0x55f   :  { %v13562_v8 = vpop.f32.mrb[13].mxu0 }
 0x562   :  { %v13564_v9 = vpop.f32.mrb[14].mxu0 }
 0x563   :  { %v13566_v10 = vpop.f32.mrb[15].mxu0 }
 0x5b6   :  { %v10122_v11 = vpop.f32.mrb[16].mxu0 }
 0x5b7   :  { %v4315_v12 = vmax.f32 %v10122_v11, 0.0  ;;  %v4267_v13 = vpop.f32.mrb[17].mxu0 }
 0x5b8   :  { %v4314_v43 = vmax.f32 %v4267_v13, 0.0 }
 0x5ba   :  { %v10125_v14 = vpop.f32.mrb[18].mxu0  ;;  %v11906_v15 = vpack.i.bf16 %v4315_v12, %v4314_v43  ;;  %v13568_v18 = vpack.c.bf16 %v4315_v12, %v4314_v43  ;;  %v12195_v12 = vld [vmem:[%s14850_s2 + $0x70] sm:$0xff] }
 0x5bb   :  { %v4317_v16 = vmax.f32 %v10125_v14, 0.0  ;;  %v4277_v17 = vpop.f32.mrb[19].mxu0 }
 0x5bc   :  { %v4316_v28 = vmax.f32 %v4277_v17, 0.0  ;;  %11907 = vrot.lane.b32.xlu0 %v11906_v15, %s14832_s10  ;;  %v12197_v17 = vld [vmem:[%s14850_s2] sm:$0xff] }
 0x5be   :  { %v10128_v29 = vpop.f32.mrb[20].mxu0  ;;  %v11911_v30 = vpack.i.bf16 %v4317_v16, %v4316_v28  ;;  %v13571_v32 = vpack.c.bf16 %v4317_v16, %v4316_v28 }
 0x5bf   :  { %v4319_v25 = vmax.f32 %v10128_v29, 0.0  ;;  %v4287_v31 = vpop.f32.mrb[21].mxu0 }
 0x5c0   :  { %v4318_v33 = vmax.f32 %v4287_v31, 0.0  ;;  %11912 = vrot.lane.b32.xlu1 %v11911_v30, %s14832_s10  ;;  %v12199_v31 = vld [vmem:[%s14850_s2 + $0x10] sm:$0xff] }
 0x5c2   :  { %v10131_v34 = vpop.f32.mrb[22].mxu0  ;;  %v11916_v35 = vpack.i.bf16 %v4319_v25, %v4318_v33  ;;  %v13574_v38 = vpack.c.bf16 %v4319_v25, %v4318_v33 }
 0x5c3   :  { %v4321_v36 = vmax.f32 %v10131_v34, 0.0  ;;  %v4297_v37 = vpop.f32.mrb[23].mxu0 }
 0x5c4   :  { %v4320_v39 = vmax.f32 %v4297_v37, 0.0  ;;  %11917 = vrot.lane.b32.xlu0 %v11916_v35, %s14832_s10  ;;  %v12201_v37 = vld [vmem:[%s14850_s2 + $0x20] sm:$0xff] }
 0x5c6   :  { %v11921_v40 = vpack.i.bf16 %v4321_v36, %v4320_v39  ;;  %v13577_v41 = vpack.c.bf16 %v4321_v36, %v4320_v39 }
 0x5c8   :  { %11927 = vrot.lane.b32.xlu0 %v11906_v15, %s14855_s0  ;;  %11922 = vrot.lane.b32.xlu1 %v11921_v40, %s14832_s10  ;;  %s12365_s10 = smov 10  }
 0x5cc   :  { %11937 = vrot.lane.b32.xlu0 %v11916_v35, %s14855_s0  ;;  %11932 = vrot.lane.b32.xlu1 %v11911_v30, %s14855_s0 }
 0x5d0   :  { %11947 = vrot.lane.b32.xlu0 %v11906_v15, %s14856_s5  ;;  %11942 = vrot.lane.b32.xlu1 %v11921_v40, %s14855_s0 }
 0x5d4   :  { %11957 = vrot.lane.b32.xlu0 %v11916_v35, %s14856_s5  ;;  %11952 = vrot.lane.b32.xlu1 %v11911_v30, %s14856_s5 }
 0x5d8   :  { %11967 = vrot.lane.b32.xlu0 %v11906_v15, %s14853_s7  ;;  %11962 = vrot.lane.b32.xlu1 %v11921_v40, %s14856_s5  ;;  %v12196_v15 = vld [vmem:[%s14850_s2 + $0x78] sm:$0xff] }
 0x5dc   :  { %11977 = vrot.lane.b32.xlu0 %v11916_v35, %s14853_s7  ;;  %11972 = vrot.lane.b32.xlu1 %v11911_v30, %s14853_s7  ;;  %v12198_v30 = vld [vmem:[%s14850_s2 + $0x8] sm:$0xff]  ;;  %v12200_v35 = vld [vmem:[%s14850_s2 + $0x18] sm:$0xff] }
 0x5e0   :  { %11982 = vrot.lane.b32.xlu1 %v11921_v40, %s14853_s7  ;;  %11987 = vrot.lane.b32.xlu0 %v13179_v53, %s14857_s11  ;;  %s12359_s11 = smov 16  }
 0x5e4   :  { %11992 = vrot.lane.b32.xlu1 %v13179_v53, %s14858_s29  ;;  %11997 = vrot.lane.b32.xlu0 %v13179_v53, %s14859_s1  ;;  %s14865_s1 = sld [smem:[#allocation11_spill]]  ;;  %s12361_s29 = smov 64  }
 0x5e8   :  { %12002 = vrot.lane.b32.xlu1 %v13179_v53, %s14860_s28  ;;  %12007 = vrot.lane.b32.xlu0 %v13179_v53, %s14861_s30  ;;  %s12362_s28 = smov 80  }
 0x5ec   :  { %12012 = vrot.lane.b32.xlu1 %v13179_v53, %s14862_s9 }
 0x62e   :  { %v11908_v42 = vpop.permute.xlu0 %11907 }
 0x62f   :  { %v11910_v44 = vunpack.i.h.bf16 %v11908_v42  ;;  %v11909_v45 = vunpack.i.l.bf16 %v11908_v42 }
 0x631   :  { %v10976_v46 = vpack.c.bf16 %v11910_v44, %v11909_v45  ;;  %v12203_v44 = vld [vmem:[%s14850_s2 + $0x30] sm:$0xff] }
 0x632   :  { %v11913_v47 = vpop.permute.xlu1 %11912 }
 0x633   :  { %v11915_v48 = vunpack.i.h.bf16 %v11913_v47  ;;  %v11914_v3 = vunpack.i.l.bf16 %v11913_v47  ;;  %10977 = vmatprep.subr.bf16.mxu1 %v10976_v46 }
 0x634   :  { %10979 = vmatpush3.bf16.msra.mxu1 %v10976_v46 }
 0x635   :  { %v10980_v49 = vpack.c.bf16 %v11915_v48, %v11914_v3  ;;  %v12204_v48 = vld [vmem:[%s14850_s2 + $0x38] sm:$0xff] }
 0x636   :  { %v11918_v50 = vpop.permute.xlu0 %11917 }
 0x637   :  { %v11920_v54 = vunpack.i.h.bf16 %v11918_v50  ;;  %v11919_v51 = vunpack.i.l.bf16 %v11918_v50  ;;  %10981 = vmatprep.subr.bf16.mxu1 %v10980_v49 }
 0x638   :  { %10983 = vmatpush3.bf16.msra.mxu1 %v10980_v49  ;;  %v12205_v49 = vld [vmem:[%s14850_s2 + $0x80] sm:$0xff] }
 0x639   :  { %v10984_v52 = vpack.c.bf16 %v11920_v54, %v11919_v51 }
 0x63a   :  { %v11923_v55 = vpop.permute.xlu1 %11922  ;;  %v11928_v61 = vpop.permute.xlu0 %11927 }
 0x63b   :  { %v11925_v56 = vunpack.i.h.bf16 %v11923_v55  ;;  %v11924_v57 = vunpack.i.l.bf16 %v11923_v55  ;;  %10985 = vmatprep.subr.bf16.mxu1 %v10984_v52  ;;  %v11930_v63 = vunpack.i.h.bf16 %v11928_v61  ;;  %v11929_v0 = vunpack.i.l.bf16 %v11928_v61  ;;  %v12209_v61 = vld [vmem:[%s14850_s2 + $0xa0] sm:$0xff] }
 0x63c   :  { %10987 = vmatpush3.bf16.msra.mxu1 %v10984_v52  ;;  %v12206_v52 = vld [vmem:[%s14850_s2 + $0x88] sm:$0xff] }
 0x63d   :  { %v10988_v53 = vpack.c.bf16 %v11925_v56, %v11924_v57  ;;  %v11008_v13 = vpack.c.bf16 %v11930_v63, %v11929_v0  ;;  %v12207_v56 = vld [vmem:[%s14850_s2 + $0x90] sm:$0xff] }
 0x63e   :  { %v11933_v11 = vpop.permute.xlu1 %11932  ;;  %v11938_v16 = vpop.permute.xlu0 %11937 }
 0x63f   :  { %10989 = vmatprep.subr.bf16.mxu1 %v10988_v53  ;;  %v11935_v43 = vunpack.i.h.bf16 %v11933_v11  ;;  %v11934_v14 = vunpack.i.l.bf16 %v11933_v11  ;;  %v11939_v28 = vunpack.i.l.bf16 %v11938_v16 }
 0x640   :  { %10991 = vmatpush3.bf16.msra.mxu1 %v10988_v53 }
 0x641   :  { %10993 = vmatprep.subr.bf16.mxu1 %v13568_v18  ;;  %v11012_v29 = vpack.c.bf16 %v11935_v43, %v11934_v14 }
 0x642   :  { %v11943_v25 = vpop.permute.xlu1 %11942  ;;  %v11948_v36 = vpop.permute.xlu0 %11947 }
 0x643   :  { %10149 = vmatmul.mubr.msk.f32.vlgmr.msra.gmra.mrb[16].mxu1 %vm1040_vm1, %v12190_v58  ;;  %v11945_v33 = vunpack.i.h.bf16 %v11943_v25  ;;  %v11944_v34 = vunpack.i.l.bf16 %v11943_v25  ;;  %v11949_v39 = vunpack.i.l.bf16 %v11948_v36 }
 0x644   :  { %10995 = vmatpush3.bf16.msra.mxu1 %v13568_v18  ;;  %10151 = vmatprep.mubr.msk.f32.mxu1 %vm1040_vm1, %v12191_v59  ;;  %v11940_v18 = vunpack.i.h.bf16 %v11938_v16  ;;  %v12208_v59 = vld [vmem:[%s14850_s2 + $0x98] sm:$0xff] }
 0x645   :  { %10997 = vmatprep.subr.bf16.mxu1 %v13571_v32  ;;  %v11020_v40 = vpack.c.bf16 %v11945_v33, %v11944_v34 }
 0x646   :  { %v11953_v42 = vpop.permute.xlu1 %11952  ;;  %v11958_v3 = vpop.permute.xlu0 %11957 }
 0x647   :  { %10152 = vmatmul.mubr.msk.f32.gmra.mrb[18].mxu1 %vm1040_vm1, %v12192_v60  ;;  %v11955_v46 = vunpack.i.h.bf16 %v11953_v42  ;;  %v11954_v47 = vunpack.i.l.bf16 %v11953_v42  ;;  %v11960_v50 = vunpack.i.h.bf16 %v11958_v3  ;;  %v11959_v54 = vunpack.i.l.bf16 %v11958_v3  ;;  %v12218_v42 = vld [vmem:[%s14850_s2 + $0xe8] sm:$0xff]  ;;  %v12221_v3 = vld [vmem:[%s14850_s2 + $0x100] sm:$0xff] }
 0x648   :  { %10999 = vmatpush3.bf16.msra.mxu1 %v13571_v32  ;;  %10154 = vmatprep.mubr.msk.f32.mxu1 %vm1040_vm1, %v12193_v62  ;;  %v11016_v32 = vpack.c.bf16 %v11940_v18, %v11939_v28 }
 0x649   :  { %11001 = vmatprep.subr.bf16.mxu1 %v13574_v38  ;;  %v11028_v51 = vpack.c.bf16 %v11955_v46, %v11954_v47  ;;  %v11032_v57 = vpack.c.bf16 %v11960_v50, %v11959_v54  ;;  %v12222_v50 = vld [vmem:[%s14850_s2 + $0x108] sm:$0xff]  ;;  %v12223_v54 = vld [vmem:[%s14850_s2 + $0x110] sm:$0xff] }
 0x64a   :  { %v11963_v55 = vpop.permute.xlu1 %11962  ;;  %v11968_v60 = vpop.permute.xlu0 %11967 }
 0x64b   :  { %10155 = vmatmul.mubr.msk.f32.gmra.mrb[20].mxu1 %vm1040_vm1, %v12194_v1  ;;  %v11965_v53 = vunpack.i.h.bf16 %v11963_v55  ;;  %v11964_v58 = vunpack.i.l.bf16 %v11963_v55  ;;  %v11970_v62 = vunpack.i.h.bf16 %v11968_v60  ;;  %v11969_v63 = vunpack.i.l.bf16 %v11968_v60  ;;  %v12210_v1 = vld [vmem:[%s14850_s2 + $0xa8] sm:$0xff]  ;;  %v12229_v60 = vld [vmem:[%s14851_s6 + $0x40] sm:$0xff] }
 0x64c   :  { %11003 = vmatpush3.bf16.msra.mxu1 %v13574_v38  ;;  %10157 = vmatprep.mubr.msk.f32.mxu1 %vm1040_vm1, %v12195_v12  ;;  %v11950_v38 = vunpack.i.h.bf16 %v11948_v36  ;;  %v12211_v12 = vld [vmem:[%s14850_s2 + $0xb0] sm:$0xff]  ;;  %v12216_v36 = vld [vmem:[%s14850_s2 + $0xd8] sm:$0xff] }
 0x64d   :  { %11005 = vmatprep.subr.bf16.mxu1 %v13577_v41  ;;  %v11036_v0 = vpack.c.bf16 %v11965_v53, %v11964_v58 }
 0x64e   :  { %v11024_v45 = vpack.c.bf16 %v11950_v38, %v11949_v39  ;;  %v11973_v11 = vpop.permute.xlu1 %11972  ;;  %v11978_v16 = vpop.permute.xlu0 %11977 }
 0x64f   :  { %10158 = vmatmul.mubr.msk.f32.gmra.mrb[22].mxu1 %vm1040_vm1, %v12196_v15  ;;  %v11975_v43 = vunpack.i.h.bf16 %v11973_v11  ;;  %v11974_v14 = vunpack.i.l.bf16 %v11973_v11  ;;  %v12212_v15 = vld [vmem:[%s14850_s2 + $0xb8] sm:$0xff]  ;;  %v11980_v18 = vunpack.i.h.bf16 %v11978_v16  ;;  %v11979_v28 = vunpack.i.l.bf16 %v11978_v16  ;;  %v12237_v16 = vld [vmem:[%s14851_s6] sm:$0xff] }
 0x650   :  { %11007 = vmatpush3.bf16.msra.mxu1 %v13577_v41  ;;  %10176 = vmatprep.mubr.msk.f32.mxu1 %vm1040_vm1, %v12197_v17  ;;  %v12202_v41 = vld [vmem:[%s14850_s2 + $0x28] sm:$0xff]  ;;  %v12213_v17 = vld [vmem:[%s14850_s2 + $0xc0] sm:$0xff] }
 0x651   :  { %11009 = vmatprep.subr.bf16.mxu1 %v11008_v13  ;;  %v11048_v33 = vpack.c.bf16 %v11980_v18, %v11979_v28  ;;  %v12238_v18 = vld [vmem:[%s14851_s6 + $0x8] sm:$0xff]  ;;  %v12239_v28 = vld [vmem:[%s14851_s6 + $0x10] sm:$0xff] }
 0x652   :  { %v11983_v25 = vpop.permute.xlu1 %11982 }
 0x653   :  { %10177 = vmatmul.mubr.msk.f32.vlgmr.msra.gmra.mrb[16].mxu1 %vm1040_vm1, %v12198_v30  ;;  %v12214_v30 = vld [vmem:[%s14850_s2 + $0xc8] sm:$0xff]  ;;  %v11985_v34 = vunpack.i.h.bf16 %v11983_v25 }
 0x654   :  { %11011 = vmatpush3.bf16.msra.mxu1 %v11008_v13  ;;  %10179 = vmatprep.mubr.msk.f32.mxu1 %vm1040_vm1, %v12199_v31  ;;  %v11040_v13 = vpack.c.bf16 %v11970_v62, %v11969_v63  ;;  %v12215_v31 = vld [vmem:[%s14850_s2 + $0xd0] sm:$0xff]  ;;  %v12230_v62 = vld [vmem:[%s14851_s6 + $0x48] sm:$0xff] }
 0x655   :  { %11013 = vmatprep.subr.bf16.mxu1 %v11012_v29  ;;  %v12231_v63 = vld [vmem:[%s14851_s6 + $0x50] sm:$0xff] }
 0x657   :  { %10180 = vmatmul.mubr.msk.f32.gmra.mrb[18].mxu1 %vm1040_vm1, %v12200_v35  ;;  %v11984_v35 = vunpack.i.l.bf16 %v11983_v25 }
 0x658   :  { %11015 = vmatpush3.bf16.msra.mxu1 %v11012_v29  ;;  %10182 = vmatprep.mubr.msk.f32.mxu1 %vm1040_vm1, %v12201_v37  ;;  %v11044_v29 = vpack.c.bf16 %v11975_v43, %v11974_v14  ;;  %v12217_v37 = vld [vmem:[%s14850_s2 + $0xe0] sm:$0xff] }
 0x659   :  { %11017 = vmatprep.subr.bf16.mxu1 %v11016_v32 }
 0x65b   :  { %10183 = vmatmul.mubr.msk.f32.gmra.mrb[20].mxu1 %vm1040_vm1, %v12202_v41  ;;  %v11052_v41 = vpack.c.bf16 %v11985_v34, %v11984_v35  ;;  %v12244_v35 = vld [vmem:[%s14851_s6 + $0x38] sm:$0xff] }
 0x65c   :  { %11019 = vmatpush3.bf16.msra.mxu1 %v11016_v32  ;;  %10185 = vmatprep.mubr.msk.f32.mxu1 %vm1040_vm1, %v12203_v44  ;;  %v11988_v32 = vpop.permute.xlu0 %11987  ;;  %v12219_v44 = vld [vmem:[%s14850_s2 + $0xf0] sm:$0xff] }
 0x65d   :  { %11021 = vmatprep.subr.bf16.mxu1 %v11020_v40  ;;  %v11990_v38 = vunpack.i.h.bf16 %v11988_v32  ;;  %v11989_v39 = vunpack.i.l.bf16 %v11988_v32  ;;  %v12243_v32 = vld [vmem:[%s14851_s6 + $0x30] sm:$0xff] }
 0x65f   :  { %10186 = vmatmul.mubr.msk.f32.gmra.mrb[22].mxu1 %vm1040_vm1, %v12204_v48  ;;  %v12220_v48 = vld [vmem:[%s14850_s2 + $0xf8] sm:$0xff] }
 0x660   :  { %11023 = vmatpush3.bf16.msra.mxu1 %v11020_v40  ;;  %10204 = vmatprep.mubr.msk.f32.mxu1 %vm1040_vm1, %v12205_v49  ;;  %v11993_v40 = vpop.permute.xlu1 %11992  ;;  %v11998_v55 = vpop.permute.xlu0 %11997 }
 0x661   :  { %11025 = vmatprep.subr.bf16.mxu1 %v11024_v45  ;;  %v11995_v46 = vunpack.i.h.bf16 %v11993_v40  ;;  %v11994_v47 = vunpack.i.l.bf16 %v11993_v40  ;;  %v12000_v53 = vunpack.i.h.bf16 %v11998_v55  ;;  %v11999_v58 = vunpack.i.l.bf16 %v11998_v55  ;;  %v12248_v40 = vld [vmem:[%s14851_s6 + $0x98] sm:$0xff]  ;;  %v12258_v55 = vld [vmem:[%s14851_s6 + $0xe8] sm:$0xff] }
 0x663   :  { %10205 = vmatmul.mubr.msk.f32.vlgmr.msra.gmra.mrb[16].mxu1 %vm1040_vm1, %v12206_v52  ;;  %v11060_v49 = vpack.c.bf16 %v11995_v46, %v11994_v47  ;;  %v12225_v52 = vld [vmem:[%s14850_s2 + $0x120] sm:$0xff] }
 0x664   :  { %11027 = vmatpush3.bf16.msra.mxu1 %v11024_v45  ;;  %10207 = vmatprep.mubr.msk.f32.mxu1 %vm1040_vm1, %v12207_v56  ;;  %v11056_v45 = vpack.c.bf16 %v11990_v38, %v11989_v39  ;;  %v12226_v56 = vld [vmem:[%s14850_s2 + $0x128] sm:$0xff]  ;;  %v12003_v11 = vpop.permute.xlu1 %12002  ;;  %v12008_v25 = vpop.permute.xlu0 %12007  ;;  %v12247_v39 = vld [vmem:[%s14851_s6 + $0x90] sm:$0xff] }
 0x665   :  { %11029 = vmatprep.subr.bf16.mxu1 %v11028_v51  ;;  %v12005_v43 = vunpack.i.h.bf16 %v12003_v11  ;;  %v12004_v14 = vunpack.i.l.bf16 %v12003_v11  ;;  %v12009_v34 = vunpack.i.l.bf16 %v12008_v25  ;;  %v12246_v38 = vld [vmem:[%s14851_s6 + $0x88] sm:$0xff] }
 0x666   :  { %v12270_v11 = vld [vmem:[%s14851_s6 + $0x148] sm:$0xff] }
 0x667   :  { %10208 = vmatmul.mubr.msk.f32.gmra.mrb[18].mxu1 %vm1040_vm1, %v12208_v59  ;;  %v12228_v59 = vld [vmem:[%s14850_s2 + $0x138] sm:$0xff] }
 0x668   :  { %11031 = vmatpush3.bf16.msra.mxu1 %v11028_v51  ;;  %10210 = vmatprep.mubr.msk.f32.mxu1 %vm1040_vm1, %v12209_v61  ;;  %v12224_v51 = vld [vmem:[%s14850_s2 + $0x118] sm:$0xff]  ;;  %v11064_v61 = vpack.c.bf16 %v12000_v53, %v11999_v58  ;;  %v12261_v53 = vld [vmem:[%s14851_s6 + $0x100] sm:$0xff]  ;;  %v12262_v58 = vld [vmem:[%s14851_s6 + $0x108] sm:$0xff] }
 0x669   :  { %11033 = vmatprep.subr.bf16.mxu1 %v11032_v57 }
 0x66b   :  { %10211 = vmatmul.mubr.msk.f32.gmra.mrb[20].mxu1 %vm1040_vm1, %v12210_v1  ;;  %v12233_v1 = vld [vmem:[%s14851_s6 + $0x60] sm:$0xff] }
 0x66c   :  { %11035 = vmatpush3.bf16.msra.mxu1 %v11032_v57  ;;  %10213 = vmatprep.mubr.msk.f32.mxu1 %vm1040_vm1, %v12211_v12  ;;  %v12227_v57 = vld [vmem:[%s14850_s2 + $0x130] sm:$0xff]  ;;  %v12234_v12 = vld [vmem:[%s14851_s6 + $0x68] sm:$0xff] }
 0x66d   :  { %11037 = vmatprep.subr.bf16.mxu1 %v11036_v0 }
 0x66f   :  { %10214 = vmatmul.mubr.msk.f32.gmra.mrb[22].mxu1 %vm1040_vm1, %v12212_v15  ;;  %v12236_v15 = vld [vmem:[%s14851_s6 + $0x78] sm:$0xff] }
 0x670   :  { %11039 = vmatpush3.bf16.msra.mxu1 %v11036_v0  ;;  %10232 = vmatprep.mubr.msk.f32.mxu1 %vm1040_vm1, %v12213_v17  ;;  %v12232_v0 = vld [vmem:[%s14851_s6 + $0x58] sm:$0xff]  ;;  %v11068_v17 = vpack.c.bf16 %v12005_v43, %v12004_v14  ;;  %v12273_v43 = vld [vmem:[%s14851_s6 + $0x160] sm:$0xff]  ;;  %v12274_v14 = vld [vmem:[%s14851_s6 + $0x168] sm:$0xff] }
 0x671   :  { %11041 = vmatprep.subr.bf16.mxu1 %v11040_v13 }
 0x673   :  { %10233 = vmatmul.mubr.msk.f32.vlgmr.msra.gmra.mrb[16].mxu1 %vm1040_vm1, %v12214_v30  ;;  %v12241_v30 = vld [vmem:[%s14851_s6 + $0x20] sm:$0xff] }
 0x674   :  { %11043 = vmatpush3.bf16.msra.mxu1 %v11040_v13  ;;  %10235 = vmatprep.mubr.msk.f32.mxu1 %vm1040_vm1, %v12215_v31  ;;  %v12235_v13 = vld [vmem:[%s14851_s6 + $0x70] sm:$0xff]  ;;  %v12242_v31 = vld [vmem:[%s14851_s6 + $0x28] sm:$0xff] }
 0x675   :  { %11045 = vmatprep.subr.bf16.mxu1 %v11044_v29 }
 0x677   :  { %10236 = vmatmul.mubr.msk.f32.gmra.mrb[18].mxu1 %vm1040_vm1, %v12216_v36  ;;  %v12245_v36 = vld [vmem:[%s14851_s6 + $0x80] sm:$0xff] }
 0x678   :  { %11047 = vmatpush3.bf16.msra.mxu1 %v11044_v29  ;;  %10238 = vmatprep.mubr.msk.f32.mxu1 %vm1040_vm1, %v12217_v37  ;;  %v12240_v29 = vld [vmem:[%s14851_s6 + $0x18] sm:$0xff] }
 0x679   :  { %11049 = vmatprep.subr.bf16.mxu1 %v11048_v33 }
 0x67b   :  { %10239 = vmatmul.mubr.msk.f32.gmra.mrb[20].mxu1 %vm1040_vm1, %v12218_v42  ;;  %v12013_v42 = vpop.permute.xlu1 %12012 }
 0x67c   :  { %11051 = vmatpush3.bf16.msra.mxu1 %v11048_v33  ;;  %10241 = vmatprep.mubr.msk.f32.mxu1 %vm1040_vm1, %v12219_v44  ;;  %v12010_v33 = vunpack.i.h.bf16 %v12008_v25  ;;  %v12250_v44 = vld [vmem:[%s14851_s6 + $0xa8] sm:$0xff]  ;;  %v12015_v46 = vunpack.i.h.bf16 %v12013_v42  ;;  %v12014_v47 = vunpack.i.l.bf16 %v12013_v42 }
 0x67d   :  { %11053 = vmatprep.subr.bf16.mxu1 %v11052_v41 }
 0x67e   :  { %v11072_v37 = vpack.c.bf16 %v12010_v33, %v12009_v34 }
 0x67f   :  { %10242 = vmatmul.mubr.msk.f32.gmra.mrb[22].mxu1 %vm1040_vm1, %v12220_v48  ;;  %v12252_v48 = vld [vmem:[%s14851_s6 + $0xb8] sm:$0xff] }
 0x680   :  { %11055 = vmatpush3.bf16.msra.mxu1 %v11052_v41  ;;  %10260 = vmatprep.mubr.msk.f32.mxu1 %vm1040_vm1, %v12221_v3  ;;  %v12249_v41 = vld [vmem:[%s14851_s6 + $0xa0] sm:$0xff] }
 0x681   :  { %11057 = vmatprep.subr.bf16.mxu1 %v11056_v45  ;;  %v12253_v3 = vld [vmem:[%s14851_s6 + $0xc0] sm:$0xff] }
 0x683   :  { %10261 = vmatmul.mubr.msk.f32.vlgmr.msra.gmra.mrb[16].mxu1 %vm1040_vm1, %v12222_v50  ;;  %v12254_v50 = vld [vmem:[%s14851_s6 + $0xc8] sm:$0xff] }
 0x684   :  { %10263 = vmatprep.mubr.msk.f32.mxu1 %vm1040_vm1, %v12223_v54  ;;  %11059 = vmatpush3.bf16.msra.mxu1 %v11056_v45  ;;  %v12251_v45 = vld [vmem:[%s14851_s6 + $0xb0] sm:$0xff] }
 0x685   :  { %11061 = vmatprep.subr.bf16.mxu1 %v11060_v49  ;;  %v12255_v54 = vld [vmem:[%s14851_s6 + $0xd0] sm:$0xff] }
 0x687   :  { %10264 = vmatmul.mubr.msk.f32.gmra.mrb[18].mxu1 %vm1040_vm1, %v12224_v51  ;;  %v12256_v51 = vld [vmem:[%s14851_s6 + $0xd8] sm:$0xff] }
 0x688   :  { %10266 = vmatprep.mubr.msk.f32.mxu1 %vm1040_vm1, %v12225_v52  ;;  %v12257_v52 = vld [vmem:[%s14851_s6 + $0xe0] sm:$0xff] }
 0x68b   :  { %10267 = vmatmul.mubr.msk.f32.gmra.mrb[20].mxu1 %vm1040_vm1, %v12226_v56  ;;  %v12259_v56 = vld [vmem:[%s14851_s6 + $0xf0] sm:$0xff] }
 0x68c   :  { %10269 = vmatprep.mubr.msk.f32.mxu1 %vm1040_vm1, %v12227_v57  ;;  %v12260_v57 = vld [vmem:[%s14851_s6 + $0xf8] sm:$0xff] }
 0x68f   :  { %10270 = vmatmul.mubr.msk.f32.gmra.mrb[22].mxu1 %vm1040_vm1, %v12228_v59  ;;  %v12263_v59 = vld [vmem:[%s14851_s6 + $0x110] sm:$0xff] }
 0x690   :  { %10276 = vmatprep.mubr.msk.f32.mxu1 %vm116_vm0, %v12229_v60  ;;  %v12264_v60 = vld [vmem:[%s14851_s6 + $0x118] sm:$0xff] }
 0x693   :  { %10277 = vmatmul.mubr.msk.f32.vlgmr.msra.gmra.mrb[24].mxu1 %vm116_vm0, %v12230_v62  ;;  %v12266_v62 = vld [vmem:[%s14851_s6 + $0x128] sm:$0xff] }
 0x694   :  { %10279 = vmatprep.mubr.msk.f32.mxu1 %vm116_vm0, %v12231_v63  ;;  %11063 = vmatpush3.bf16.msra.mxu1 %v11060_v49  ;;  %v11076_v49 = vpack.c.bf16 %v12015_v46, %v12014_v47  ;;  %v12267_v63 = vld [vmem:[%s14851_s6 + $0x130] sm:$0xff] }
 0x695   :  { %11065 = vmatprep.subr.bf16.mxu1 %v11064_v61 }
 0x697   :  { %10280 = vmatmul.mubr.msk.f32.gmra.mrb[26].mxu1 %vm116_vm0, %v12232_v0  ;;  %v12268_v0 = vld [vmem:[%s14851_s6 + $0x138] sm:$0xff] }
 0x698   :  { %10282 = vmatprep.mubr.msk.f32.mxu1 %vm116_vm0, %v12233_v1  ;;  %v12269_v1 = vld [vmem:[%s14851_s6 + $0x140] sm:$0xff] }
 0x69b   :  { %10283 = vmatmul.mubr.msk.f32.gmra.mrb[28].mxu1 %vm116_vm0, %v12234_v12  ;;  %v12271_v12 = vld [vmem:[%s14851_s6 + $0x150] sm:$0xff] }
 0x69c   :  { %10285 = vmatprep.mubr.msk.f32.mxu1 %vm116_vm0, %v12235_v13  ;;  %v12272_v13 = vld [vmem:[%s14851_s6 + $0x158] sm:$0xff] }
 0x69f   :  { %10286 = vmatmul.mubr.msk.f32.gmra.mrb[30].mxu1 %vm116_vm0, %v12236_v15  ;;  %v12275_v15 = vld [vmem:[%s14851_s6 + $0x170] sm:$0xff] }
 0x6a0   :  { %10292 = vmatprep.mubr.msk.f32.mxu1 %vm116_vm0, %v12237_v16  ;;  %v12276_v16 = vld [vmem:[%s14851_s6 + $0x178] sm:$0xff] }
 0x6a3   :  { %10293 = vmatmul.mubr.msk.f32.vlgmr.msra.gmra.mrb[24].mxu1 %vm116_vm0, %v12238_v18 }
 0x6a4   :  { %10295 = vmatprep.mubr.msk.f32.mxu1 %vm116_vm0, %v12239_v28  ;;  %11067 = vmatpush3.bf16.msra.mxu1 %v11064_v61  ;;  %v12265_v61 = vld [vmem:[%s14851_s6 + $0x120] sm:$0xff]  ;;  %s14863_s6 = smov 127  }
 0x6a5   :  { %11069 = vmatprep.subr.bf16.mxu1 %v11068_v17 }
 0x6a7   :  { %10296 = vmatmul.mubr.msk.f32.gmra.mrb[26].mxu1 %vm116_vm0, %v12240_v29 }
 0x6a8   :  { %10298 = vmatprep.mubr.msk.f32.mxu1 %vm116_vm0, %v12241_v30  ;;  %v12355_v30 = vmov 0  }
 0x6a9   :  { %12096 = vset.pattern.permute.xlu0 %v12355_v30  ;;  %12097 = vset.pattern.permute.xlu1 %v12355_v30 }
 0x6ab   :  { %10299 = vmatmul.mubr.msk.f32.gmra.mrb[28].mxu1 %vm116_vm0, %v12242_v31 }
 0x6ac   :  { %10301 = vmatprep.mubr.msk.f32.mxu1 %vm116_vm0, %v12243_v32 }
 0x6af   :  { %10302 = vmatmul.mubr.msk.f32.gmra.mrb[30].mxu1 %vm116_vm0, %v12244_v35 }
 0x6b0   :  { %10308 = vmatprep.mubr.msk.f32.mxu1 %vm116_vm0, %v12245_v36 }
 0x6b3   :  { %10309 = vmatmul.mubr.msk.f32.vlgmr.msra.gmra.mrb[24].mxu1 %vm116_vm0, %v12246_v38 }
 0x6b4   :  { %10311 = vmatprep.mubr.msk.f32.mxu1 %vm116_vm0, %v12247_v39  ;;  %11071 = vmatpush3.bf16.msra.mxu1 %v11068_v17 }
 0x6b5   :  { %11073 = vmatprep.subr.bf16.mxu1 %v11072_v37 }
 0x6b7   :  { %10312 = vmatmul.mubr.msk.f32.gmra.mrb[26].mxu1 %vm116_vm0, %v12248_v40 }
 0x6b8   :  { %10314 = vmatprep.mubr.msk.f32.mxu1 %vm116_vm0, %v12249_v41 }
 0x6bb   :  { %10315 = vmatmul.mubr.msk.f32.gmra.mrb[28].mxu1 %vm116_vm0, %v12250_v44 }
 0x6bc   :  { %10317 = vmatprep.mubr.msk.f32.mxu1 %vm116_vm0, %v12251_v45 }
 0x6bf   :  { %10318 = vmatmul.mubr.msk.f32.gmra.mrb[30].mxu1 %vm116_vm0, %v12252_v48 }
 0x6c0   :  { %10324 = vmatprep.mubr.msk.f32.mxu1 %vm116_vm0, %v12253_v3 }
 0x6c3   :  { %10325 = vmatmul.mubr.msk.f32.vlgmr.msra.gmra.mrb[24].mxu1 %vm116_vm0, %v12254_v50 }
 0x6c4   :  { %10327 = vmatprep.mubr.msk.f32.mxu1 %vm116_vm0, %v12255_v54  ;;  %11075 = vmatpush3.bf16.msra.mxu1 %v11072_v37 }
 0x6c5   :  { %11077 = vmatprep.subr.bf16.mxu1 %v11076_v49 }
 0x6c7   :  { %10328 = vmatmul.mubr.msk.f32.gmra.mrb[26].mxu1 %vm116_vm0, %v12256_v51 }
 0x6c8   :  { %10330 = vmatprep.mubr.msk.f32.mxu1 %vm116_vm0, %v12257_v52 }
 0x6cb   :  { %10331 = vmatmul.mubr.msk.f32.gmra.mrb[28].mxu1 %vm116_vm0, %v12258_v55 }
 0x6cc   :  { %10333 = vmatprep.mubr.msk.f32.mxu1 %vm116_vm0, %v12259_v56 }
 0x6cf   :  { %10334 = vmatmul.mubr.msk.f32.gmra.mrb[30].mxu1 %vm116_vm0, %v12260_v57 }
 0x6d0   :  { %10340 = vmatprep.mubr.msk.f32.mxu1 %vm116_vm0, %v12261_v53 }
 0x6d3   :  { %10341 = vmatmul.mubr.msk.f32.vlgmr.msra.gmra.mrb[24].mxu1 %vm116_vm0, %v12262_v58  ;;  %v3537_v58 = vmax.f32 %v13554_v4, 0.0  ;;  %v3543_v4 = vmax.f32 %v13566_v10, 0.0 }
 0x6d4   :  { %10343 = vmatprep.mubr.msk.f32.mxu1 %vm116_vm0, %v12263_v59  ;;  %11079 = vmatpush3.bf16.msra.mxu1 %v11076_v49  ;;  %v3538_v59 = vmax.f32 %v13552_v2, 0.0 }
 0x6d7   :  { %10344 = vmatmul.mubr.msk.f32.gmra.mrb[26].mxu1 %vm116_vm0, %v12264_v60  ;;  %v3540_v60 = vmax.f32 %v13556_v5, 0.0 }
 0x6d8   :  { %10346 = vmatprep.mubr.msk.f32.mxu1 %vm116_vm0, %v12265_v61  ;;  %v3539_v61 = vmax.f32 %v13558_v6, 0.0 }
 0x6db   :  { %10347 = vmatmul.mubr.msk.f32.gmra.mrb[28].mxu1 %vm116_vm0, %v12266_v62  ;;  %v3542_v62 = vmax.f32 %v13560_v7, 0.0 }
 0x6dc   :  { %10349 = vmatprep.mubr.msk.f32.mxu1 %vm116_vm0, %v12267_v63  ;;  %v3541_v63 = vmax.f32 %v13562_v8, 0.0 }
 0x6df   :  { %10350 = vmatmul.mubr.msk.f32.gmra.mrb[30].mxu1 %vm116_vm0, %v12268_v0 }
 0x6e0   :  { %10356 = vmatprep.mubr.msk.f32.mxu1 %vm116_vm0, %v12269_v1 }
 0x6e3   :  { %10357 = vmatmul.mubr.msk.f32.vlgmr.msra.gmra.mrb[24].mxu1 %vm116_vm0, %v12270_v11 }
 0x6e4   :  { %10359 = vmatprep.mubr.msk.f32.mxu1 %vm116_vm0, %v12271_v12 }
 0x6e7   :  { %10360 = vmatmul.mubr.msk.f32.gmra.mrb[26].mxu1 %vm116_vm0, %v12272_v13 }
 0x6e8   :  { %10362 = vmatprep.mubr.msk.f32.mxu1 %vm116_vm0, %v12273_v43 }
 0x6eb   :  { %10363 = vmatmul.mubr.msk.f32.gmra.mrb[28].mxu1 %vm116_vm0, %v12274_v14 }
 0x6ec   :  { %10365 = vmatprep.mubr.msk.f32.mxu1 %vm116_vm0, %v12275_v15 }
 0x6ef   :  { %10366 = vmatmul.mubr.msk.f32.gmra.mrb[30].mxu1 %vm116_vm0, %v12276_v16 }
 0x756   :  { %v13960_v17 = vpop.f32.mrb[16].mxu1 }
 0x757   :  { %v13962_v18 = vpop.f32.mrb[17].mxu1 }
 0x75a   :  { %v13964_v28 = vpop.f32.mrb[18].mxu1 }
 0x75b   :  { %v13966_v29 = vpop.f32.mrb[19].mxu1 }
 0x75e   :  { %v13968_v25 = vpop.f32.mrb[20].mxu1 }
 0x75f   :  { %v13970_v31 = vpop.f32.mrb[21].mxu1 }
 0x762   :  { %v13972_v32 = vpop.f32.mrb[22].mxu1 }
 0x763   :  { %v13974_v33 = vpop.f32.mrb[23].mxu1 }
 0x7b6   :  { %v10358_v34 = vpop.f32.mrb[24].mxu1 }
 0x7b7   :  { %v5682_v35 = vmax.f32 %v10358_v34, 0.0  ;;  %v5634_v36 = vpop.f32.mrb[25].mxu1 }
 0x7b8   :  { %v5681_v37 = vmax.f32 %v5634_v36, 0.0 }
 0x7ba   :  { %v10361_v38 = vpop.f32.mrb[26].mxu1  ;;  %v12016_v39 = vpack.i.bf16 %v5682_v35, %v5681_v37  ;;  %v13976_v42 = vpack.c.bf16 %v5682_v35, %v5681_v37  ;;  %v12277_v37 = vld [vmem:[%s14852_s3 + $0x48] sm:$0xff] }
 0x7bb   :  { %v5684_v40 = vmax.f32 %v10361_v38, 0.0  ;;  %v5644_v41 = vpop.f32.mrb[27].mxu1  ;;  %v12278_v38 = vld [vmem:[%s14852_s3 + $0x50] sm:$0xff] }
 0x7bc   :  { %v5683_v44 = vmax.f32 %v5644_v41, 0.0  ;;  %12017 = vrot.lane.b32.xlu0 %v12016_v39, %s14863_s6  ;;  %v12280_v41 = vld [vmem:[%s14852_s3 + $0x60] sm:$0xff] }
 0x7be   :  { %v10364_v45 = vpop.f32.mrb[28].mxu1  ;;  %v12021_v46 = vpack.i.bf16 %v5684_v40, %v5683_v44  ;;  %v13979_v3 = vpack.c.bf16 %v5684_v40, %v5683_v44  ;;  %v12279_v40 = vld [vmem:[%s14852_s3 + $0x58] sm:$0xff] }
 0x7bf   :  { %v5686_v47 = vmax.f32 %v10364_v45, 0.0  ;;  %v5654_v48 = vpop.f32.mrb[29].mxu1 }
 0x7c0   :  { %v5685_v49 = vmax.f32 %v5654_v48, 0.0  ;;  %12022 = vrot.lane.b32.xlu1 %v12021_v46, %s14863_s6 }
 0x7c2   :  { %v10367_v50 = vpop.f32.mrb[30].mxu1  ;;  %v12026_v54 = vpack.i.bf16 %v5686_v47, %v5685_v49  ;;  %v13982_v55 = vpack.c.bf16 %v5686_v47, %v5685_v49  ;;  %v12282_v47 = vld [vmem:[%s14852_s3 + $0x70] sm:$0xff] }
 0x7c3   :  { %v5688_v51 = vmax.f32 %v10367_v50, 0.0  ;;  %v5664_v52 = vpop.f32.mrb[31].mxu1 }
 0x7c4   :  { %v5687_v56 = vmax.f32 %v5664_v52, 0.0  ;;  %12027 = vrot.lane.b32.xlu0 %v12026_v54, %s14863_s6  ;;  %v12284_v52 = vld [vmem:[%s14852_s3] sm:$0xff] }
 0x7c6   :  { %v12031_v57 = vpack.i.bf16 %v5688_v51, %v5687_v56  ;;  %v13985_v53 = vpack.c.bf16 %v5688_v51, %v5687_v56  ;;  %v12283_v51 = vld [vmem:[%s14852_s3 + $0x78] sm:$0xff] }
 0x7c8   :  { %12037 = vrot.lane.b32.xlu0 %v12016_v39, %s14855_s0  ;;  %12032 = vrot.lane.b32.xlu1 %v12031_v57, %s14863_s6  ;;  %s12364_s6 = smov 112  }
 0x7cc   :  { %12047 = vrot.lane.b32.xlu0 %v12026_v54, %s14855_s0  ;;  %12042 = vrot.lane.b32.xlu1 %v12021_v46, %s14855_s0 }
 0x7d0   :  { %12057 = vrot.lane.b32.xlu0 %v12016_v39, %s14856_s5  ;;  %12052 = vrot.lane.b32.xlu1 %v12031_v57, %s14855_s0  ;;  %s14864_s0 = sld [smem:[#allocation10_spill]] }
 0x7d4   :  { %12067 = vrot.lane.b32.xlu0 %v12026_v54, %s14856_s5  ;;  %12062 = vrot.lane.b32.xlu1 %v12021_v46, %s14856_s5 }
 0x7d8   :  { %12077 = vrot.lane.b32.xlu0 %v12016_v39, %s14853_s7  ;;  %12072 = vrot.lane.b32.xlu1 %v12031_v57, %s14856_s5  ;;  %s14866_s5 = sld [smem:[#allocation12_spill]] }
 0x7dc   :  { %12087 = vrot.lane.b32.xlu0 %v12026_v54, %s14853_s7  ;;  %12082 = vrot.lane.b32.xlu1 %v12021_v46, %s14853_s7  ;;  %v12281_v46 = vld [vmem:[%s14852_s3 + $0x68] sm:$0xff] }
 0x7e0   :  { %3547 = vperm.xlu0 %12096, %v3537_v58   ;;  %12092 = vrot.lane.b32.xlu1 %v12031_v57, %s14853_s7  ;;  %s14869_s7 = sld [smem:[#allocation16_spill]] }
 0x7e4   :  { %3562 = vperm.xlu0 %12096, %v3540_v60   ;;  %3552 = vperm.xlu1 %12097, %v3538_v59   ;;  %v12285_v59 = vld [vmem:[%s14852_s3 + $0x8] sm:$0xff] }
 0x7e8   :  { %3572 = vperm.xlu0 %12096, %v3542_v62   ;;  %3557 = vperm.xlu1 %12097, %v3539_v61  }
 0x7ec   :  { %3567 = vperm.xlu1 %12097, %v3541_v63  }
 0x7f0   :  { %3577 = vperm.xlu1 %12097, %v3543_v4   ;;  %v12287_v4 = vld [vmem:[%s14852_s3 + $0x18] sm:$0xff] }
 0x82e   :  { %v12018_v0 = vpop.permute.xlu0 %12017 }
 0x82f   :  { %v12020_v1 = vunpack.i.h.bf16 %v12018_v0  ;;  %v12019_v11 = vunpack.i.l.bf16 %v12018_v0  ;;  %v12288_v0 = vld [vmem:[%s14852_s3 + $0x20] sm:$0xff] }
 0x831   :  { %v11080_v2 = vpack.c.bf16 %v12020_v1, %v12019_v11 }
 0x832   :  { %v12023_v12 = vpop.permute.xlu1 %12022 }
 0x833   :  { %v12025_v5 = vunpack.i.h.bf16 %v12023_v12  ;;  %v12024_v13 = vunpack.i.l.bf16 %v12023_v12  ;;  %11081 = vmatprep.subr.bf16.mxu0 %v11080_v2 }
 0x834   :  { %11083 = vmatpush3.bf16.msra.mxu0 %v11080_v2 }
 0x835   :  { %v11084_v6 = vpack.c.bf16 %v12025_v5, %v12024_v13  ;;  %v12289_v13 = vld [vmem:[%s14852_s3 + $0x28] sm:$0xff] }
 0x836   :  { %v12028_v43 = vpop.permute.xlu0 %12027 }
 0x837   :  { %v12030_v7 = vunpack.i.h.bf16 %v12028_v43  ;;  %v12029_v14 = vunpack.i.l.bf16 %v12028_v43  ;;  %11085 = vmatprep.subr.bf16.mxu0 %v11084_v6 }
 0x838   :  { %11087 = vmatpush3.bf16.msra.mxu0 %v11084_v6  ;;  %v12290_v6 = vld [vmem:[%s14852_s3 + $0x30] sm:$0xff] }
 0x839   :  { %v11088_v8 = vpack.c.bf16 %v12030_v7, %v12029_v14 }
 0x83a   :  { %v12033_v15 = vpop.permute.xlu1 %12032  ;;  %v12038_v30 = vpop.permute.xlu0 %12037 }
 0x83b   :  { %v12035_v16 = vunpack.i.h.bf16 %v12033_v15  ;;  %v12034_v10 = vunpack.i.l.bf16 %v12033_v15  ;;  %11089 = vmatprep.subr.bf16.mxu0 %v11088_v8  ;;  %v12040_v44 = vunpack.i.h.bf16 %v12038_v30  ;;  %v12039_v45 = vunpack.i.l.bf16 %v12038_v30  ;;  %v12292_v30 = vld [vmem:[%s14852_s3 + $0x80] sm:$0xff] }
 0x83c   :  { %11091 = vmatpush3.bf16.msra.mxu0 %v11088_v8 }
 0x83d   :  { %v11092_v34 = vpack.c.bf16 %v12035_v16, %v12034_v10  ;;  %v12291_v16 = vld [vmem:[%s14852_s3 + $0x38] sm:$0xff]  ;;  %v1809_v10 = vmax.f32 %v13123_v20, 0.0  ;;  %v12293_v20 = vld [vmem:[%s14852_s3 + $0x88] sm:$0xff] }
 0x83e   :  { %v12043_v35 = vpop.permute.xlu1 %12042  ;;  %v12048_v36 = vpop.permute.xlu0 %12047 }
 0x83f   :  { %11093 = vmatprep.subr.bf16.mxu0 %v11092_v34  ;;  %v12045_v49 = vunpack.i.h.bf16 %v12043_v35  ;;  %v12044_v50 = vunpack.i.l.bf16 %v12043_v35  ;;  %v12049_v56 = vunpack.i.l.bf16 %v12048_v36 }
 0x840   :  { %11095 = vmatpush3.bf16.msra.mxu0 %v11092_v34  ;;  %v1810_v34 = vmax.f32 %v13121_v19, 0.0  ;;  %v12294_v19 = vld [vmem:[%s14852_s3 + $0x90] sm:$0xff] }
 0x841   :  { %11097 = vmatprep.subr.bf16.mxu0 %v13976_v42  ;;  %v11116_v57 = vpack.c.bf16 %v12045_v49, %v12044_v50 }
 0x842   :  { %v12053_v39 = vpop.permute.xlu1 %12052 }
 0x843   :  { %10385 = vmatmul.mubr.msk.f32.vlgmr.msra.gmra.mrb[24].mxu0 %vm1040_vm1, %v12277_v37  ;;  %v12055_v62 = vunpack.i.h.bf16 %v12053_v39  ;;  %v12054_v63 = vunpack.i.l.bf16 %v12053_v39 }
 0x844   :  { %11099 = vmatpush3.bf16.msra.mxu0 %v13976_v42  ;;  %10387 = vmatprep.mubr.msk.f32.mxu0 %vm1040_vm1, %v12278_v38  ;;  %v12058_v42 = vpop.permute.xlu0 %12057 }
 0x845   :  { %11101 = vmatprep.subr.bf16.mxu0 %v13979_v3  ;;  %v12060_v11 = vunpack.i.h.bf16 %v12058_v42  ;;  %v12059_v2 = vunpack.i.l.bf16 %v12058_v42  ;;  %v11124_v12 = vpack.c.bf16 %v12055_v62, %v12054_v63  ;;  %v1812_v42 = vmax.f32 %v13125_v21, 0.0  ;;  %v12297_v63 = vld [vmem:[%s14852_s3 + $0xa8] sm:$0xff] }
 0x846   :  { %v12063_v48 = vpop.permute.xlu1 %12062 }
 0x847   :  { %10388 = vmatmul.mubr.msk.f32.gmra.mrb[26].mxu0 %vm1040_vm1, %v12279_v40  ;;  %v11128_v43 = vpack.c.bf16 %v12060_v11, %v12059_v2  ;;  %v12065_v7 = vunpack.i.h.bf16 %v12063_v48  ;;  %v12064_v14 = vunpack.i.l.bf16 %v12063_v48  ;;  %v1815_v11 = vmax.f32 %v13135_v27, 0.0  ;;  %v12300_v27 = vld [vmem:[%s14852_s3 + $0xc0] sm:$0xff] }
 0x848   :  { %11103 = vmatpush3.bf16.msra.mxu0 %v13979_v3  ;;  %10390 = vmatprep.mubr.msk.f32.mxu0 %vm1040_vm1, %v12280_v41  ;;  %v11112_v3 = vpack.c.bf16 %v12040_v44, %v12039_v45  ;;  %v14038_v54 = vpop.permute.xlu0 %12067  ;;  %v1811_v44 = vmax.f32 %v13127_v22, 0.0  ;;  %v12296_v22 = vld [vmem:[%s14852_s3 + $0xa0] sm:$0xff] }
 0x849   :  { %11105 = vmatprep.subr.bf16.mxu0 %v13982_v55  ;;  %v12069_v37 = vunpack.i.l.bf16 %v14038_v54  ;;  %v11132_v38 = vpack.c.bf16 %v12065_v7, %v12064_v14  ;;  %v12299_v7 = vld [vmem:[%s14852_s3 + $0xb8] sm:$0xff] }
 0x84a   :  { %v14049_v58 = vpop.permute.xlu1 %12072 }
 0x84b   :  { %10391 = vmatmul.mubr.msk.f32.gmra.mrb[28].mxu0 %vm1040_vm1, %v12281_v46  ;;  %v12075_v48 = vunpack.i.h.bf16 %v14049_v58 }
 0x84c   :  { %11107 = vmatpush3.bf16.msra.mxu0 %v13982_v55  ;;  %10393 = vmatprep.mubr.msk.f32.mxu0 %vm1040_vm1, %v12282_v47  ;;  %v12050_v55 = vunpack.i.h.bf16 %v12048_v36  ;;  %v14059_v60 = vpop.permute.xlu0 %12077  ;;  %v12070_v36 = vunpack.i.h.bf16 %v14038_v54  ;;  %v12295_v54 = vld [vmem:[%s14852_s3 + $0x98] sm:$0xff] }
 0x84d   :  { %11109 = vmatprep.subr.bf16.mxu0 %v13985_v53 }
 0x84e   :  { %v11120_v61 = vpack.c.bf16 %v12050_v55, %v12049_v56  ;;  %v14069_v1 = vpop.permute.xlu1 %12082  ;;  %v11136_v47 = vpack.c.bf16 %v12070_v36, %v12069_v37  ;;  %v1814_v55 = vmax.f32 %v13129_v23, 0.0  ;;  %v1813_v56 = vmax.f32 %v13131_v24, 0.0  ;;  %v12298_v24 = vld [vmem:[%s14852_s3 + $0xb0] sm:$0xff]  ;;  %v12301_v37 = vld [vmem:[%s14852_s3 + $0xc8] sm:$0xff] }
 0x84f   :  { %10394 = vmatmul.mubr.msk.f32.gmra.mrb[30].mxu0 %vm1040_vm1, %v12283_v51 }
 0x850   :  { %11111 = vmatpush3.bf16.msra.mxu0 %v13985_v53  ;;  %10412 = vmatprep.mubr.msk.f32.mxu0 %vm1040_vm1, %v12284_v52  ;;  %v12286_v53 = vld [vmem:[%s14852_s3 + $0x10] sm:$0xff]  ;;  %v14071_v5 = vpop.permute.xlu0 %12087 }
 0x851   :  { %11113 = vmatprep.subr.bf16.mxu0 %v11112_v3 }
 0x852   :  { %v14081_v8 = vpop.permute.xlu1 %12092 }
 0x853   :  { %10413 = vmatmul.mubr.msk.f32.vlgmr.msra.gmra.mrb[24].mxu0 %vm1040_vm1, %v12285_v59  ;;  %v12079_v59 = vunpack.i.l.bf16 %v14059_v60 }
 0x854   :  { %11115 = vmatpush3.bf16.msra.mxu0 %v11112_v3  ;;  %10415 = vmatprep.mubr.msk.f32.mxu0 %vm1040_vm1, %v12286_v53  ;;  %v12074_v3 = vunpack.i.l.bf16 %v14049_v58  ;;  %v12080_v58 = vunpack.i.h.bf16 %v14059_v60 }
 0x855   :  { %11117 = vmatprep.subr.bf16.mxu0 %v11116_v57 }
 0x856   :  { %v11140_v53 = vpack.c.bf16 %v12075_v48, %v12074_v3  ;;  %v12311_v48 = vld [vmem:[%s14852_s3 + $0x118] sm:$0xff]  ;;  %v12312_v3 = vld [vmem:[%s14852_s3 + $0x120] sm:$0xff] }
 0x857   :  { %10416 = vmatmul.mubr.msk.f32.gmra.mrb[26].mxu0 %vm1040_vm1, %v12287_v4 }
 0x858   :  { %11119 = vmatpush3.bf16.msra.mxu0 %v11116_v57  ;;  %10418 = vmatprep.mubr.msk.f32.mxu0 %vm1040_vm1, %v12288_v0 }
 0x859   :  { %11121 = vmatprep.subr.bf16.mxu0 %v11120_v61 }
 0x85b   :  { %10419 = vmatmul.mubr.msk.f32.gmra.mrb[28].mxu0 %vm1040_vm1, %v12289_v13  ;;  %v12085_v13 = vunpack.i.h.bf16 %v14069_v1 }
 0x85c   :  { %11123 = vmatpush3.bf16.msra.mxu0 %v11120_v61  ;;  %10421 = vmatprep.mubr.msk.f32.mxu0 %vm1040_vm1, %v12290_v6  ;;  %v12084_v6 = vunpack.i.l.bf16 %v14069_v1 }
 0x85d   :  { %11125 = vmatprep.subr.bf16.mxu0 %v11124_v12 }
 0x85f   :  { %v3548_v15 = vpop.permute.xlu0 %3547  ;;  %10422 = vmatmul.mubr.msk.f32.gmra.mrb[30].mxu0 %vm1040_vm1, %v12291_v16 }
 0x860   :  { %11127 = vmatpush3.bf16.msra.mxu0 %v11124_v12  ;;  %10440 = vmatprep.mubr.msk.f32.mxu0 %vm1040_vm1, %v12292_v30  ;;  %v3585_v35 = vmul.f32 %v3548_v15, %v1809_v10  ;;  %v11144_v12 = vpack.c.bf16 %v12080_v58, %v12079_v59  ;;  %v12090_v30 = vunpack.i.h.bf16 %v14071_v5 }
 0x861   :  { %11129 = vmatprep.subr.bf16.mxu0 %v11128_v43 }
 0x862   :  { %v3593_v45 = vsel %vm116_vm0, %v3585_v35, 0.0  ;;  %v11148_v35 = vpack.c.bf16 %v12085_v13, %v12084_v6  ;;  %v6493_v13 = vld [vmem:[%s14864_s0 + $0x28] sm:$0xff]  ;;  %v6495_v6 = vld [vmem:[%s14864_s0 + $0x38] sm:$0xff] }
 0x863   :  { %v3563_v39 = vpop.permute.xlu0 %3562  ;;  %v3553_v40 = vpop.permute.xlu1 %3552  ;;  %10441 = vmatmul.mubr.msk.f32.vlgmr.msra.gmra.mrb[24].mxu0 %vm1040_vm1, %v12293_v20  ;;  %v12303_v20 = vld [vmem:[%s14852_s3 + $0xd8] sm:$0xff] }
 0x864   :  { %v3586_v41 = vmul.f32 %v3553_v40, %v1810_v34  ;;  %11131 = vmatpush3.bf16.msra.mxu0 %v11128_v43  ;;  %10443 = vmatprep.mubr.msk.f32.mxu0 %vm1040_vm1, %v12294_v19  ;;  %v3588_v21 = vmul.f32 %v3563_v39, %v1812_v42  ;;  %v12089_v34 = vunpack.i.l.bf16 %v14071_v5  ;;  %v12095_v5 = vunpack.i.h.bf16 %v14081_v8  ;;  %v12305_v42 = vld [vmem:[%s14852_s3 + $0xe8] sm:$0xff] }
 0x865   :  { %11133 = vmatprep.subr.bf16.mxu0 %v11132_v38  ;;  %v12094_v40 = vunpack.i.l.bf16 %v14081_v8  ;;  %v12306_v8 = vld [vmem:[%s14852_s3 + $0xf0] sm:$0xff] }
 0x866   :  { %v3594_v46 = vsel %vm116_vm0, %v3586_v41, 0.0  ;;  %v3598_v4 = vsel %vm116_vm0, %v3588_v21, 0.0  ;;  %v11152_v39 = vpack.c.bf16 %v12090_v30, %v12089_v34  ;;  %v12304_v41 = vld [vmem:[%s14852_s3 + $0xe0] sm:$0xff] }
 0x867   :  { %v3595_v49 = vadd.f32 %v3594_v46, %v3593_v45  ;;  %v3558_v50 = vpop.permute.xlu1 %3557  ;;  %10444 = vmatmul.mubr.msk.f32.gmra.mrb[26].mxu0 %vm1040_vm1, %v12295_v54  ;;  %v3573_v52 = vpop.permute.xlu0 %3572  ;;  %v11156_v19 = vpack.c.bf16 %v12095_v5, %v12094_v40  ;;  %v12308_v45 = vld [vmem:[%s14852_s3 + $0x100] sm:$0xff]  ;;  %v12309_v46 = vld [vmem:[%s14852_s3 + $0x108] sm:$0xff]  ;;  %v12315_v54 = vld [vmem:[%s14852_s3 + $0x138] sm:$0xff] }
 0x868   :  { %v3587_v51 = vmul.f32 %v3558_v50, %v1811_v44  ;;  %11135 = vmatpush3.bf16.msra.mxu0 %v11132_v38  ;;  %10446 = vmatprep.mubr.msk.f32.mxu0 %vm1040_vm1, %v12296_v22  ;;  %v3590_v23 = vmul.f32 %v3573_v52, %v1814_v55  ;;  %v12302_v38 = vld [vmem:[%s14852_s3 + $0xd0] sm:$0xff]  ;;  %v12307_v44 = vld [vmem:[%s14852_s3 + $0xf8] sm:$0xff]  ;;  %v6496_v34 = vld [vmem:[%s14864_s0 + $0x40] sm:$0xff] }
 0x869   :  { %11137 = vmatprep.subr.bf16.mxu0 %v11136_v47  ;;  %v12314_v50 = vld [vmem:[%s14852_s3 + $0x130] sm:$0xff]  ;;  %v12316_v5 = vld [vmem:[%s14848_s8] sm:$0xff]  ;;  %v14263_v40 = vld [vmem:[%s14848_s8 + $0x8] sm:$0xff] }
 0x86a   :  { %v3596_v57 = vsel %vm116_vm0, %v3587_v51, 0.0  ;;  %v3602_v15 = vsel %vm116_vm0, %v3590_v23, 0.0 }
 0x86b   :  { %v3597_v61 = vadd.f32 %v3596_v57, %v3595_v49  ;;  %v3568_v62 = vpop.permute.xlu1 %3567  ;;  %10447 = vmatmul.mubr.msk.f32.gmra.mrb[28].mxu0 %vm1040_vm1, %v12297_v63  ;;  %v12313_v49 = vld [vmem:[%s14852_s3 + $0x128] sm:$0xff]  ;;  %v3544_v57 = vmax.f32 %v13564_v9, 0.0 }
 0x86c   :  { %v3589_v0 = vmul.f32 %v3568_v62, %v1813_v56  ;;  %11139 = vmatpush3.bf16.msra.mxu0 %v11136_v47  ;;  %10449 = vmatprep.mubr.msk.f32.mxu0 %vm1040_vm1, %v12298_v24  ;;  %v12310_v47 = vld [vmem:[%s14852_s3 + $0x110] sm:$0xff]  ;;  %v6489_v9 = vld [vmem:[%s14864_s0 + $0x8] sm:$0xff] }
 0x86d   :  { %v3599_v60 = vadd.f32 %v3598_v4, %v3597_v61  ;;  %11141 = vmatprep.subr.bf16.mxu0 %v11140_v53 }
 0x86e   :  { %v3600_v2 = vsel %vm116_vm0, %v3589_v0, 0.0 }
 0x86f   :  { %v3601_v43 = vadd.f32 %v3600_v2, %v3599_v60  ;;  %10450 = vmatmul.mubr.msk.f32.gmra.mrb[30].mxu0 %vm1040_vm1, %v12299_v7  ;;  %v3578_v14 = vpop.permute.xlu1 %3577  ;;  %v6491_v60 = vld [vmem:[%s14864_s0 + $0x18] sm:$0xff] }
 0x870   :  { %v3591_v16 = vmul.f32 %v3578_v14, %v1815_v11  ;;  %11143 = vmatpush3.bf16.msra.mxu0 %v11140_v53  ;;  %10468 = vmatprep.mubr.msk.f32.mxu0 %vm1040_vm1, %v12300_v27  ;;  %v6488_v11 = vld [vmem:[%s14864_s0] sm:$0xff]  ;;  %v11160_v2 = vpack.c.bf16 %v6491_v60, %v6489_v9  ;;  %v11164_v14 = vpack.c.bf16 %v6495_v6, %v6493_v13  ;;  %v6497_v27 = vld [vmem:[%s14864_s0 + $0x48] sm:$0xff] }
 0x871   :  { %v3603_v10 = vadd.f32 %v3602_v15, %v3601_v43  ;;  %11145 = vmatprep.subr.bf16.mxu0 %v11144_v12  ;;  %v12356_v43 = vmov 0.0   ;;  %v6492_v15 = vld [vmem:[%s14864_s0 + $0x20] sm:$0xff] }
 0x872   :  { %v3604_v1 = vsel %vm116_vm0, %v3591_v16, 0.0  ;;  %v6494_v16 = vld [vmem:[%s14864_s0 + $0x30] sm:$0xff] }
 0x873   :  { %v14147_v36 = vadd.f32 %v3604_v1, %v3603_v10  ;;  %10469 = vmatmul.mubr.msk.f32.vlgmr.msra.gmra.mrb[24].mxu0 %vm1040_vm1, %v12301_v37  ;;  %v6499_v10 = vld [vmem:[%s14864_s0 + $0x58] sm:$0xff]  ;;  %v11166_v1 = vpack.c.bf16 %v6494_v16, %v6492_v15 }
 0x874   :  { %11147 = vmatpush3.bf16.msra.mxu0 %v11144_v12  ;;  %10471 = vmatprep.mubr.msk.f32.mxu0 %vm1040_vm1, %v12302_v38  ;;  %v6490_v12 = vld [vmem:[%s14864_s0 + $0x10] sm:$0xff]  ;;  %v11168_v30 = vpack.c.bf16 %v6499_v10, %v6497_v27  ;;  %v6501_v38 = vld [vmem:[%s14864_s0 + $0x68] sm:$0x3] }
 0x875   :  { %11149 = vmatprep.subr.bf16.mxu0 %v11148_v35  ;;  %v11162_v7 = vpack.c.bf16 %v6490_v12, %v6488_v11  ;;  %v4982_v11 = vmax.f32 %v13972_v32, 0.0 }
 0x877   :  { %10472 = vmatmul.mubr.msk.f32.gmra.mrb[26].mxu0 %vm1040_vm1, %v12303_v20  ;;  %v14270_v20 = vld [vmem:[%s14848_s8 + $0x10] sm:$0xff] }
 0x878   :  { %11151 = vmatpush3.bf16.msra.mxu0 %v11148_v35  ;;  %10474 = vmatprep.mubr.msk.f32.mxu0 %vm1040_vm1, %v12304_v41  ;;  %v6498_v35 = vld [vmem:[%s14864_s0 + $0x50] sm:$0xff]  ;;  %v14277_v41 = vld [vmem:[%s14848_s8 + $0x18] sm:$0xff]  ;;  %s12360_s8 = smov 48  }
 0x879   :  { %11153 = vmatprep.subr.bf16.mxu0 %v11152_v39  ;;  %v11170_v37 = vpack.c.bf16 %v6498_v35, %v6496_v34 }
 0x87b   :  { %10475 = vmatmul.mubr.msk.f32.gmra.mrb[28].mxu0 %vm1040_vm1, %v12305_v42  ;;  %v4975_v42 = vmax.f32 %v13962_v18, 0.0  ;;  %v4979_v18 = vmax.f32 %v13970_v31, 0.0 }
 0x87c   :  { %11155 = vmatpush3.bf16.msra.mxu0 %v11152_v39  ;;  %10477 = vmatprep.mubr.msk.f32.mxu0 %vm1040_vm1, %v12306_v8  ;;  %v6500_v39 = vld [vmem:[%s14864_s0 + $0x60] sm:$0x3] }
 0x87d   :  { %11157 = vmatprep.subr.bf16.mxu0 %v11156_v19 }
 0x87f   :  { %10478 = vmatmul.mubr.msk.f32.gmra.mrb[30].mxu0 %vm1040_vm1, %v12307_v44 }
 0x880   :  { %11159 = vmatpush3.bf16.msra.mxu0 %v11156_v19  ;;  %10496 = vmatprep.mubr.msk.f32.mxu0 %vm1040_vm1, %v12308_v45  ;;  %v4976_v19 = vmax.f32 %v13960_v17, 0.0  ;;  %v4978_v17 = vmax.f32 %v13964_v28, 0.0 }
 0x881   :  { %11161 = vmatprep.subr.bf16.mxu0 %v11160_v2 }
 0x883   :  { %10497 = vmatmul.mubr.msk.f32.vlgmr.msra.gmra.mrb[24].mxu0 %vm1040_vm1, %v12309_v46 }
 0x884   :  { %10499 = vmatprep.mubr.msk.f32.mxu0 %vm1040_vm1, %v12310_v47  ;;  %11163 = vmatpush1.bf16.msra.mxu0 %v11162_v7 }
 0x885   :  { %11165 = vmatprep.subr.bf16.mxu0 %v11164_v14 }
 0x887   :  { %10500 = vmatmul.mubr.msk.f32.gmra.mrb[26].mxu0 %vm1040_vm1, %v12311_v48  ;;  %v1816_v48 = vmax.f32 %v13133_v26, 0.0 }
 0x888   :  { %10502 = vmatprep.mubr.msk.f32.mxu0 %vm1040_vm1, %v12312_v3  ;;  %11167 = vmatpush1.bf16.msra.mxu0 %v11166_v1  ;;  %v4977_v3 = vmax.f32 %v13966_v29, 0.0 }
 0x889   :  { %11169 = vmatprep.subr.bf16.mxu0 %v11168_v30 }
 0x88b   :  { %10503 = vmatmul.mubr.msk.f32.gmra.mrb[28].mxu0 %vm1040_vm1, %v12313_v49 }
 0x88c   :  { %10505 = vmatprep.mubr.msk.f32.mxu0 %vm1040_vm1, %v12314_v50  ;;  %11171 = vmatpush1.bf16.msra.mxu0 %v11170_v37 }
 0x88d   :  { %8797 = vmatprep.subr.msk.mxu0 %vm6511_vm2, %v6501_v38 }
 0x88f   :  { %10506 = vmatmul.mubr.msk.f32.gmra.mrb[30].mxu0 %vm1040_vm1, %v12315_v54 }
 0x890   :  { %6582 = vmatprep.mubr.f32.mxu0 %v12356_v43  ;;  %8798 = vmatpush1.msk.msra.mxu0 %vm6511_vm2, %v6500_v39 }
 0x893   :  { %8799 = vmatmul.mubr.msk.f32.vlgmr.msra.gmra.mrb[32].mxu0 %vm6502_vm3, %v12316_v5 }
 0x894   :  { %6588 = vmatprep.mubr.f32.mxu0 %v12356_v43 }
 0x897   :  { %8800 = vmatmul.mubr.msk.f32.gmra.mrb[34].mxu0 %vm6502_vm3, %v14263_v40 }
 0x898   :  { %6594 = vmatprep.mubr.f32.mxu0 %v12356_v43 }
 0x89b   :  { %8801 = vmatmul.mubr.msk.f32.gmra.mrb[36].mxu0 %vm6502_vm3, %v14270_v20 }
 0x89c   :  { %6600 = vmatprep.mubr.f32.mxu0 %v12356_v43 }
 0x89f   :  { %8802 = vmatmul.mubr.msk.f32.gmra.mrb[38].mxu0 %vm6502_vm3, %v14277_v41 }
 0x8a0   :  { %10522 = vmatprep.mubr.msk.f32.mxu0 %vm6502_vm3, %v12316_v5  ;;  %v6615_v5 = vld [vmem:[%s14865_s1] sm:$0xff] }
 0x956   :  { %v10498_v21 = vpop.f32.mrb[24].mxu0 }
 0x957   :  { %v6343_v51 = vmax.f32 %v10498_v21, 0.0  ;;  %v6295_v22 = vpop.f32.mrb[25].mxu0 }
 0x958   :  { %v6342_v52 = vmax.f32 %v6295_v22, 0.0 }
 0x959   :  { %6357 = vperm.xlu0 %12096, %v6343_v51  }
 0x95a   :  { %v10501_v55 = vpop.f32.mrb[26].mxu0  ;;  %6352 = vperm.xlu1 %12097, %v6342_v52  }
 0x95b   :  { %v6305_v56 = vpop.f32.mrb[27].mxu0  ;;  %v6345_v61 = vmax.f32 %v10501_v55, 0.0 }
 0x95c   :  { %v6344_v58 = vmax.f32 %v6305_v56, 0.0 }
 0x95e   :  { %6362 = vperm.xlu0 %12096, %v6344_v58   ;;  %v10504_v59 = vpop.f32.mrb[28].mxu0  ;;  %3582 = vperm.xlu1 %12097, %v3544_v57  }
 0x95f   :  { %v6315_v53 = vpop.f32.mrb[29].mxu0  ;;  %v6347_v23 = vmax.f32 %v10504_v59, 0.0 }
 0x960   :  { %v6346_v62 = vmax.f32 %v6315_v53, 0.0 }
 0x962   :  { %6367 = vperm.xlu0 %12096, %v6345_v61   ;;  %v10507_v63 = vpop.f32.mrb[30].mxu0  ;;  %6372 = vperm.xlu1 %12097, %v6346_v62   ;;  %v4980_v61 = vmax.f32 %v13968_v25, 0.0  ;;  %v4981_v62 = vmax.f32 %v13974_v33, 0.0 }
 0x963   :  { %v6325_v4 = vpop.f32.mrb[31].mxu0  ;;  %v6349_v24 = vmax.f32 %v10507_v63, 0.0 }
 0x964   :  { %v6348_v0 = vmax.f32 %v6325_v4, 0.0 }
 0x966   :  { %6377 = vperm.xlu0 %12096, %v6347_v23   ;;  %6382 = vperm.xlu1 %12097, %v6348_v0  }
 0x96a   :  { %6387 = vperm.xlu0 %12096, %v6349_v24  }
 0x9d8   :  { %v6358_v8 = vpop.permute.xlu0 %6357 }
 0x9d9   :  { %v6391_v44 = vmul.f32 %v6358_v8, %v4976_v19  ;;  %v6353_v45 = vpop.permute.xlu1 %6352  ;;  %v6616_v19 = vld [vmem:[%s14865_s1 + $0x8] sm:$0xff]  ;;  %v12357_v8 = vmov 0.0|0.0  }
 0x9da   :  { %v6390_v46 = vmul.f32 %v6353_v45, %v4975_v42  ;;  %v6617_v42 = vld [vmem:[%s14865_s1 + $0x10] sm:$0xff]  ;;  %11172 = vmatprep.subr.bf16.mxu1 %v12357_v8  ;;  %v6618_v45 = vld [vmem:[%s14865_s1 + $0x18] sm:$0xff] }
 0x9db   :  { %v6399_v47 = vsel %vm116_vm0, %v6391_v44, 0.0  ;;  %v11173_v44 = vpack.c.bf16 %v6616_v19, %v6615_v5 }
 0x9dc   :  { %v6398_v49 = vsel %vm116_vm0, %v6390_v46, 0.0  ;;  %v11176_v46 = vpack.c.bf16 %v6618_v45, %v6617_v42 }
 0x9dd   :  { %v6400_v50 = vadd.f32 %v6399_v47, %v6398_v49  ;;  %v6363_v54 = vpop.permute.xlu0 %6362  ;;  %v3583_v21 = vpop.permute.xlu1 %3582  ;;  %11174 = vmatpush1.bf16.msra.mxu1 %v11173_v44  ;;  %v6619_v47 = vld [vmem:[%s14865_s1 + $0x20] sm:$0xff]  ;;  %v6621_v49 = vld [vmem:[%s14865_s1 + $0x30] sm:$0xff] }
 0x9de   :  { %v6392_v51 = vmul.f32 %v6363_v54, %v4977_v3  ;;  %v3592_v22 = vmul.f32 %v3583_v21, %v1816_v48  ;;  %11175 = vmatprep.subr.bf16.mxu1 %v12357_v8  ;;  %v6620_v48 = vld [vmem:[%s14865_s1 + $0x28] sm:$0xff]  ;;  %v6623_v21 = vld [vmem:[%s14865_s1 + $0x40] sm:$0xff] }
 0x9df   :  { %v11179_v3 = vpack.c.bf16 %v6620_v48, %v6619_v47 }
 0x9e0   :  { %v6401_v52 = vsel %vm116_vm0, %v6392_v51, 0.0  ;;  %v3606_v55 = vsel %vm116_vm0, %v3592_v22, 0.0  ;;  %v6624_v51 = vld [vmem:[%s14865_s1 + $0x48] sm:$0xff] }
 0x9e1   :  { %v6402_v56 = vadd.f32 %v6401_v52, %v6400_v50  ;;  %v3607_v26 = vadd.f32 %v3606_v55, %v14147_v36  ;;  %v6368_v57 = vpop.permute.xlu0 %6367  ;;  %v6373_v29 = vpop.permute.xlu1 %6372  ;;  %11177 = vmatpush1.bf16.msra.mxu1 %v11176_v46  ;;  %v6622_v50 = vld [vmem:[%s14865_s1 + $0x38] sm:$0xff]  ;;  %v11185_v22 = vpack.c.bf16 %v6624_v51, %v6623_v21 }
 0x9e2   :  { %v6393_v58 = vmul.f32 %v6368_v57, %v4978_v17  ;;  %v6394_v59 = vmul.f32 %v6373_v29, %v4979_v18  ;;  %11178 = vmatprep.subr.bf16.mxu1 %v12357_v8  ;;  %v11182_v54 = vpack.c.bf16 %v6622_v50, %v6621_v49  ;;  %v6625_v17 = vld [vmem:[%s14865_s1 + $0x50] sm:$0xff]  ;;  %v6626_v18 = vld [vmem:[%s14865_s1 + $0x58] sm:$0xff]  ;;  %v14345_v55 = vpop.f32.mrb[32].mxu0  ;;  %v6627_v57 = vld [vmem:[%s14865_s1 + $0x60] sm:$0xff] }
 0x9e3   :  { %v3608_v53 = vrot.slane %v3607_v26, 4  ;;  %v11188_v52 = vpack.c.bf16 %v6626_v18, %v6625_v17  ;;  %v6628_v29 = vld [vmem:[%s14865_s1 + $0x68] sm:$0xff] }
 0x9e4   :  { %v6403_v28 = vsel %vm116_vm0, %v6393_v58, 0.0  ;;  %v6405_v0 = vsel %vm116_vm0, %v6394_v59, 0.0  ;;  %v11191_v59 = vpack.c.bf16 %v6628_v29, %v6627_v57 }
 0x9e5   :  { %v3609_v63 = vadd.f32 %v3608_v53, %v3607_v26  ;;  %v6404_v31 = vadd.f32 %v6403_v28, %v6402_v56  ;;  %v6378_v4 = vpop.permute.xlu0 %6377  ;;  %v6383_v23 = vpop.permute.xlu1 %6382  ;;  %11180 = vmatpush1.bf16.msra.mxu1 %v11179_v3 }
 0x9e6   :  { %v6395_v24 = vmul.f32 %v6378_v4, %v4980_v61  ;;  %v6396_v9 = vmul.f32 %v6383_v23, %v4981_v62  ;;  %11181 = vmatprep.subr.bf16.mxu1 %v12357_v8  ;;  %v14347_v56 = vpop.f32.mrb[33].mxu0  ;;  %v6629_v61 = vld [vmem:[%s14865_s1 + $0x70] sm:$0xff]  ;;  %v6630_v62 = vld [vmem:[%s14865_s1 + $0x78] sm:$0xff] }
 0x9e7   :  { %v3610_v36 = vrot.slane %v3609_v63, 2  ;;  %v6406_v60 = vadd.f32 %v6405_v0, %v6404_v31  ;;  %v14349_v26 = vpop.f32.mrb[34].mxu0  ;;  %v11194_v28 = vpack.c.bf16 %v6630_v62, %v6629_v61  ;;  %v6632_v31 = vld [vmem:[%s14865_s1 + $0x88] sm:$0xff] }
 0x9e8   :  { %v6407_v2 = vsel %vm116_vm0, %v6395_v24, 0.0  ;;  %v6409_v33 = vsel %vm116_vm0, %v6396_v9, 0.0  ;;  %v14357_v53 = vpop.f32.mrb[35].mxu0  ;;  %v6633_v9 = vld [vmem:[%s14865_s1 + $0x90] sm:$0xff] }
 0x9e9   :  { %v6408_v12 = vadd.f32 %v6407_v2, %v6406_v60  ;;  %v6388_v25 = vpop.permute.xlu0 %6387  ;;  %v3611_v13 = vadd.f32 %v3610_v36, %v3609_v63  ;;  %11183 = vmatpush1.bf16.msra.mxu1 %v11182_v54  ;;  %v6631_v63 = vld [vmem:[%s14865_s1 + $0x80] sm:$0xff]  ;;  %v14371_v23 = vpop.f32.mrb[36].mxu0  ;;  %v6634_v36 = vld [vmem:[%s14865_s1 + $0x98] sm:$0xff]  ;;  %s12363_s1 = smov 96  }
 0x9ea   :  { %v6397_v6 = vmul.f32 %v6388_v25, %v4982_v11  ;;  %11184 = vmatprep.subr.bf16.mxu1 %v12357_v8  ;;  %v11197_v4 = vpack.c.bf16 %v6632_v31, %v6631_v63  ;;  %v14373_v24 = vpop.f32.mrb[37].mxu0 }
 0x9eb   :  { %v6410_v43 = vadd.f32 %v6409_v33, %v6408_v12  ;;  %v3612_v7 = vrot.slane %v3611_v13, 1  ;;  %v14382_v2 = vpop.f32.mrb[38].mxu0  ;;  %v11200_v12 = vpack.c.bf16 %v6634_v36, %v6633_v9 }
 0x9ec   :  { %v6411_v14 = vsel %vm116_vm0, %v6397_v6, 0.0  ;;  %v14384_v25 = vpop.f32.mrb[39].mxu0  ;;  %v6732_v6 = vld [vmem:[%s14866_s5] sm:$0xff] }
 0x9ed   :  { %v6412_v15 = vadd.f32 %v6411_v14, %v6410_v43  ;;  %v3613_v16 = vadd.f32 %v3612_v7, %v3611_v13  ;;  %11186 = vmatpush1.bf16.msra.mxu1 %v11185_v22  ;;  %v6733_v43 = vld [vmem:[%s14866_s5 + $0x8] sm:$0xff]  ;;  %v6734_v7 = vld [vmem:[%s14866_s5 + $0x10] sm:$0xff] }
 0x9ee   :  { %11187 = vmatprep.subr.bf16.mxu1 %v12357_v8  ;;  %v11202_v14 = vpack.c.bf16 %v6733_v43, %v6732_v6 }
 0x9ef   :  { %v6413_v27 = vrot.slane %v6412_v15, 4  ;;  %v14301_v10 = vadd.f32 1e-15, %v3613_v16 }
 0x9f0   :  { %11203 = vmatprep.subr.bf16.mxu0 %v11202_v14 }
 0x9f1   :  { %v6414_v1 = vadd.f32 %v6413_v27, %v6412_v15  ;;  %v3615_v32 = vsel %vm116_vm0, %v14301_v10, 0.0  ;;  %11189 = vmatpush1.bf16.msra.mxu1 %v11188_v52  ;;  %v6735_v15 = vld [vmem:[%s14866_s5 + $0x18] sm:$0xff]  ;;  %v6736_v27 = vld [vmem:[%s14866_s5 + $0x20] sm:$0xff]  ;;  %11205 = vmatpush3.bf16.msra.mxu0 %v11202_v14 }
 0x9f2   :  { %3616 = vadd.xlane.f32.xlu1 %v3615_v32  ;;  %11190 = vmatprep.subr.bf16.mxu1 %v12357_v8  ;;  %v11206_v16 = vpack.c.bf16 %v6735_v15, %v6734_v7  ;;  %v6738_v32 = vld [vmem:[%s14866_s5 + $0x30] sm:$0x3] }
 0x9f3   :  { %v6415_v30 = vrot.slane %v6414_v1, 2 }
 0x9f4   :  { %11207 = vmatprep.subr.bf16.mxu0 %v11206_v16 }
 0x9f5   :  { %v6416_v34 = vadd.f32 %v6415_v30, %v6414_v1  ;;  %11192 = vmatpush1.bf16.msra.mxu1 %v11191_v59  ;;  %11209 = vmatpush3.bf16.msra.mxu0 %v11206_v16 }
 0x9f6   :  { %11193 = vmatprep.subr.bf16.mxu1 %v12357_v8 }
 0x9f7   :  { %v6417_v35 = vrot.slane %v6416_v34, 1 }
 0x9f9   :  { %v6418_v37 = vadd.f32 %v6417_v35, %v6416_v34  ;;  %11195 = vmatpush1.bf16.msra.mxu1 %v11194_v28 }
 0x9fa   :  { %11196 = vmatprep.subr.bf16.mxu1 %v12357_v8 }
 0x9fb   :  { %v14305_v38 = vadd.f32 1e-15, %v6418_v37 }
 0x9fd   :  { %v6420_v39 = vsel %vm116_vm0, %v14305_v38, 0.0  ;;  %11198 = vmatpush1.bf16.msra.mxu1 %v11197_v4 }
 0x9fe   :  { %6421 = vadd.xlane.f32.xlu0 %v6420_v39  ;;  %11199 = vmatprep.subr.bf16.mxu1 %v12357_v8 }
 0xa01   :  { %11201 = vmatpush1.bf16.msra.mxu1 %v11200_v12 }
 0xa7f   :  { %v3617_v58 = vpop.xlane.xlu1 %3616 }
 0xa80   :  { %12098 = vrcp.f32 %v3617_v58 }
 0xa8a   :  { %v12099_v0 = vpop.eup %12098 }
 0xa8b   :  { %v3619_v60 = vmul.f32 %v12099_v0, %v14301_v10  ;;  %v6422_v11 = vpop.xlane.xlu0 %6421  ;;  %v6737_v10 = vld [vmem:[%s14866_s5 + $0x28] sm:$0xff] }
 0xa8c   :  { %12100 = vrcp.f32 %v6422_v11  ;;  %v11210_v1 = vpack.c.bf16 %v6737_v10, %v6736_v27 }
 0xa8d   :  { %6433 = vrot.lane.b32.xlu1 %v3619_v60, %s12358_s4  ;;  %6427 = vrot.lane.b32.xlu0 %v3619_v60, %s12359_s11 }
 0xa8e   :  { %11211 = vmatprep.subr.bf16.mxu0 %v11210_v1 }
 0xa8f   :  { %11213 = vmatpush3.bf16.msra.mxu0 %v11210_v1 }
 0xa90   :  { %10520 = vmatprep.subr.msk.mxu0 %vm6511_vm2, %v6738_v32 }
 0xa91   :  { %6439 = vrot.lane.b32.xlu1 %v3619_v60, %s12360_s8  ;;  %6445 = vrot.lane.b32.xlu0 %v3619_v60, %s12361_s29 }
 0xa93   :  { %10521 = vmatpush3.msk.msra.mxu0 %vm6511_vm2, %v6738_v32 }
 0xa94   :  { %10523 = vmatmul.mubr.msk.f32.vlgmr.msra.gmra.mrb[40].mxu0 %vm6502_vm3, %v14263_v40 }
 0xa95   :  { %6451 = vrot.lane.b32.xlu1 %v3619_v60, %s12362_s28  ;;  %6457 = vrot.lane.b32.xlu0 %v3619_v60, %s12363_s1 }
 0xa96   :  { %v12101_v13 = vpop.eup %12100  ;;  %10525 = vmatprep.mubr.msk.f32.mxu0 %vm6502_vm3, %v14270_v20 }
 0xa97   :  { %v6424_v33 = vmul.f32 %v12101_v13, %v14305_v38 }
 0xa98   :  { %10526 = vmatmul.mubr.msk.f32.gmra.mrb[42].mxu0 %vm6502_vm3, %v14277_v41 }
 0xa99   :  { %6463 = vrot.lane.b32.xlu1 %v3619_v60, %s12364_s6  ;;  %6429 = vrot.lane.b32.xlu0 %v6424_v33, %s12359_s11 }
 0xa9d   :  { %6435 = vrot.lane.b32.xlu1 %v6424_v33, %s12358_s4  ;;  %6441 = vrot.lane.b32.xlu0 %v6424_v33, %s12360_s8  ;;  %s14868_s4 = sld [smem:[#allocation15_spill]] }
 0xaa1   :  { %6447 = vrot.lane.b32.xlu1 %v6424_v33, %s12361_s29  ;;  %6453 = vrot.lane.b32.xlu0 %v6424_v33, %s12362_s28 }
 0xaa3   :  { %v6953_v27 = vld [vmem:[%s14868_s4] sm:$0xff] }
 0xaa5   :  { %6459 = vrot.lane.b32.xlu1 %v6424_v33, %s12363_s1  ;;  %6465 = vrot.lane.b32.xlu0 %v6424_v33, %s12364_s6  ;;  %s14867_s6 = sld [smem:[#allocation14_spill]] }
 0xaab   :  { %v6848_v61 = vld [vmem:[%s14867_s6] sm:$0xff]  ;;  %v6849_v62 = vld [vmem:[%s14867_s6 + $0x8] sm:$0xff]  ;;  %v6850_v4 = vld [vmem:[%s14867_s6 + $0x10] sm:$0xf] }
 0xaac   :  { %v11214_v28 = vpack.c.bf16 %v6849_v62, %v6848_v61 }
 0xaae   :  { %11215 = vmatprep.subr.bf16.mxu0 %v11214_v28 }
 0xaaf   :  { %11217 = vmatpush3.bf16.msra.mxu0 %v11214_v28 }
 0xab0   :  { %10532 = vmatprep.subr.msk.mxu0 %vm6864_vm9, %v6850_v4 }
 0xab3   :  { %10533 = vmatpush3.msk.msra.mxu0 %vm6864_vm9, %v6850_v4 }
 0xaff   :  { %v6434_v30 = vpop.permute.xlu1 %6433  ;;  %v6428_v34 = vpop.permute.xlu0 %6427 }
 0xb00   :  { %v6469_v35 = vsel %vm116_vm0, %v3619_v60, %v6428_v34 }
 0xb01   :  { %v6608_v37 = vmul.f32 %v14347_v56, %v6469_v35  ;;  %v6472_v39 = vsel %vm6471_vm4, %v6469_v35, %v6434_v30  ;;  %v6610_v48 = vmul.f32 %v14357_v53, %v6469_v35 }
 0xb03   :  { %v6440_v38 = vpop.permute.xlu1 %6439  ;;  %8803 = vmatprep.mubr.msk.f32.mxu1 %vm6471_vm4, %v6608_v37  ;;  %v6446_v40 = vpop.permute.xlu0 %6445  ;;  %v6954_v37 = vld [vmem:[%s14868_s4 + $0x8] sm:$0xff] }
 0xb04   :  { %v6475_v5 = vsel %vm6474_vm5, %v6472_v39, %v6440_v38  ;;  %v6955_v38 = vld [vmem:[%s14868_s4 + $0x10] sm:$0xff]  ;;  %v6956_v39 = vld [vmem:[%s14868_s4 + $0x18] sm:$0xff] }
 0xb05   :  { %v6477_v20 = vsel %vm1040_vm1, %v6475_v5, %v6446_v40  ;;  %v7069_v40 = vld [vmem:[%s14792_s12] sm:$0xff]  ;;  %v7070_v5 = vld [vmem:[%s14792_s12 + $0x8] sm:$0xff] }
 0xb07   :  { %v6452_v41 = vpop.permute.xlu1 %6451  ;;  %v6458_v19 = vpop.permute.xlu0 %6457 }
 0xb08   :  { %v6480_v42 = vsel %vm6479_vm6, %v6477_v20, %v6452_v41  ;;  %v11226_v20 = vpack.c.bf16 %v7070_v5, %v7069_v40  ;;  %v7071_v41 = vld [vmem:[%s14792_s12 + $0x10] sm:$0xff] }
 0xb09   :  { %v6483_v8 = vsel %vm6482_vm7, %v6480_v42, %v6458_v19  ;;  %v7072_v19 = vld [vmem:[%s14792_s12 + $0x18] sm:$0xff] }
 0xb0a   :  { %v11230_v42 = vpack.c.bf16 %v7072_v19, %v7071_v41 }
 0xb0b   :  { %v6464_v44 = vpop.permute.xlu1 %6463  ;;  %v6430_v45 = vpop.permute.xlu0 %6429 }
 0xb0c   :  { %v6486_v46 = vsel %vm6485_vm8, %v6483_v8, %v6464_v44  ;;  %v6470_v3 = vsel %vm116_vm0, %v6424_v33, %v6430_v45  ;;  %v7073_v8 = vld [vmem:[%s14792_s12 + $0x20] sm:$0xff]  ;;  %v7074_v44 = vld [vmem:[%s14792_s12 + $0x28] sm:$0xff] }
 0xb0d   :  { %v6607_v47 = vmul.f32 %v14345_v55, %v6486_v46  ;;  %v6609_v21 = vmul.f32 %v14349_v26, %v6486_v46  ;;  %v6612_v51 = vmul.f32 %v14373_v24, %v6470_v3  ;;  %v6614_v59 = vmul.f32 %v14384_v25, %v6470_v3  ;;  %v7075_v46 = vld [vmem:[%s14792_s12 + $0x30] sm:$0xff] }
 0xb0e   :  { %v11234_v45 = vpack.c.bf16 %v7074_v44, %v7073_v8 }
 0xb0f   :  { %v6436_v49 = vpop.permute.xlu1 %6435  ;;  %6712 = vmatmul.mubr.f32.vlgmr.msra.gmra.mrb[32].mxu1 %v6607_v47  ;;  %v6442_v50 = vpop.permute.xlu0 %6441  ;;  %v7076_v47 = vld [vmem:[%s14792_s12 + $0x38] sm:$0xff] }
 0xb10   :  { %v6473_v54 = vsel %vm6471_vm4, %v6470_v3, %v6436_v49  ;;  %8804 = vmatprep.mubr.msk.f32.mxu1 %vm6471_vm4, %v6610_v48  ;;  %v11238_v48 = vpack.c.bf16 %v7076_v47, %v7075_v46  ;;  %v8817_v3 = vld [vmem:[%s14869_s7] ss:$0 sm:$0xff] }
 0xb11   :  { %v6476_v22 = vsel %vm6474_vm5, %v6473_v54, %v6442_v50 }
 0xb13   :  { %v6448_v17 = vpop.permute.xlu1 %6447  ;;  %6717 = vmatmul.mubr.f32.gmra.mrb[34].mxu1 %v6609_v21  ;;  %v6454_v18 = vpop.permute.xlu0 %6453 }
 0xb14   :  { %v6478_v52 = vsel %vm1040_vm1, %v6476_v22, %v6448_v17  ;;  %8805 = vmatprep.mubr.msk.f32.mxu1 %vm6471_vm4, %v6612_v51 }
 0xb15   :  { %v6481_v55 = vsel %vm6479_vm6, %v6478_v52, %v6454_v18 }
 0xb17   :  { %v6460_v56 = vpop.permute.xlu1 %6459  ;;  %v6466_v57 = vpop.permute.xlu0 %6465 }
 0xb18   :  { %v6484_v29 = vsel %vm6482_vm7, %v6481_v55, %v6460_v56 }
 0xb19   :  { %v6487_v58 = vsel %vm6485_vm8, %v6484_v29, %v6466_v57 }
 0xb1a   :  { %v6611_v26 = vmul.f32 %v14371_v23, %v6487_v58  ;;  %v6613_v53 = vmul.f32 %v14382_v2, %v6487_v58 }
 0xb1c   :  { %6722 = vmatmul.mubr.f32.gmra.mrb[36].mxu1 %v6611_v26 }
 0xb1d   :  { %8806 = vmatprep.mubr.msk.f32.mxu1 %vm6471_vm4, %v6614_v59 }
 0xb20   :  { %6727 = vmatmul.mubr.f32.gmra.mrb[38].mxu1 %v6613_v53  ;;  %v7174_v53 = vld [vmem:[%s14793_s13] sm:$0xff] }
 0xb21   :  { %10584 = vmatprep.mubr.msk.f32.mxu1 %vm6471_vm4, %v7174_v53  ;;  %v7520_v53 = vld [vmem:[%s14798_s18 + $0x28] sm:$0xff] }
 0xb67   :  { %v14448_v63 = vpop.f32.mrb[40].mxu0 }
 0xb68   :  { %v14450_v31 = vpop.f32.mrb[41].mxu0 }
 0xb6b   :  { %v14455_v23 = vpop.f32.mrb[42].mxu0 }
 0xb6c   :  { %v14457_v0 = vpop.f32.mrb[43].mxu0 }
 0xbe2   :  { %v6713_v24 = vpop.f32.mrb[32].mxu1 }
 0xbe3   :  { %6831 = vrot.lane.b32.xlu1 %v6713_v24, %s12365_s10  ;;  %v6715_v9 = vpop.f32.mrb[33].mxu1 }
 0xbe6   :  { %v6718_v36 = vpop.f32.mrb[34].mxu1 }
 0xbe7   :  { %6833 = vrot.lane.b32.xlu0 %v6718_v36, %s12365_s10  ;;  %v6720_v60 = vpop.f32.mrb[35].mxu1  ;;  %v7175_v36 = vld [vmem:[%s14793_s13 + $0x8] sm:$0xff] }
 0xbe8   :  { %v7176_v60 = vld [vmem:[%s14793_s13 + $0x10] sm:$0xff] }
 0xbef   :  { %v6723_v11 = vpop.f32.mrb[36].mxu1 }
 0xbf0   :  { %6835 = vrot.lane.b32.xlu1 %v6723_v11, %s12365_s10  ;;  %v6725_v2 = vpop.f32.mrb[37].mxu1  ;;  %v7177_v11 = vld [vmem:[%s14793_s13 + $0x18] sm:$0xff]  ;;  %s14870_s13 = sld [smem:[#allocation13_spill]] }
 0xbf1   :  { %v7290_v2 = vld [vmem:[%s14795_s15] sm:$0xff] }
 0xbf3   :  { %v6728_v12 = vpop.f32.mrb[38].mxu1 }
 0xbf4   :  { %6837 = vrot.lane.b32.xlu0 %v6728_v12, %s12365_s10  ;;  %v6730_v25 = vpop.f32.mrb[39].mxu1  ;;  %v7291_v12 = vld [vmem:[%s14795_s15 + $0x8] sm:$0xff] }
 0xbf5   :  { %v11250_v25 = vpack.c.bf16 %v7291_v12, %v7290_v2 }
 0xc55   :  { %v6832_v13 = vpop.permute.xlu1 %6831 }
 0xc56   :  { %v6844_v33 = vsel %vm6843_vm10, %v14450_v31, %v6832_v13  ;;  %v7292_v13 = vld [vmem:[%s14795_s15 + $0x10] sm:$0xff] }
 0xc57   :  { %10534 = vmatprep.mubr.msk.f32.mxu0 %vm6851_vm11, %v6844_v33  ;;  %v7293_v33 = vld [vmem:[%s14795_s15 + $0x18] sm:$0xff] }
 0xc59   :  { %v6834_v6 = vpop.permute.xlu0 %6833 }
 0xc5a   :  { %v6845_v43 = vsel %vm6843_vm10, %v14448_v63, %v6834_v6  ;;  %v11254_v6 = vpack.c.bf16 %v7293_v33, %v7292_v13 }
 0xc5b   :  { %10535 = vmatmul.mubr.msk.f32.vlgmr.msra.gmra.mrb[44].mxu0 %vm6851_vm11, %v6845_v43  ;;  %v7294_v43 = vld [vmem:[%s14795_s15 + $0x20] sm:$0xff] }
 0xc62   :  { %v6836_v7 = vpop.permute.xlu1 %6835 }
 0xc63   :  { %v6846_v14 = vsel %vm6843_vm10, %v14457_v0, %v6836_v7  ;;  %v7295_v7 = vld [vmem:[%s14795_s15 + $0x28] sm:$0xff] }
 0xc64   :  { %10537 = vmatprep.mubr.msk.f32.mxu0 %vm6851_vm11, %v6846_v14  ;;  %v11258_v14 = vpack.c.bf16 %v7295_v7, %v7294_v43 }
 0xc66   :  { %v6838_v15 = vpop.permute.xlu0 %6837 }
 0xc67   :  { %v6847_v16 = vsel %vm6843_vm10, %v14455_v23, %v6838_v15  ;;  %v7296_v15 = vld [vmem:[%s14795_s15 + $0x30] sm:$0xff] }
 0xc68   :  { %10538 = vmatmul.mubr.msk.f32.gmra.mrb[46].mxu0 %vm6851_vm11, %v6847_v16  ;;  %v7297_v16 = vld [vmem:[%s14795_s15 + $0x38] sm:$0xff] }
 0xc69   :  { %10548 = vmatprep.mubr.msk.f32.mxu0 %vm6471_vm4, %v6953_v27  ;;  %v11262_v27 = vpack.c.bf16 %v7297_v16, %v7296_v15 }
 0xd2e   :  { %v10536_v10 = vpop.f32.mrb[44].mxu0 }
 0xd2f   :  { %v6934_v1 = vpop.f32.mrb[45].mxu0 }
 0xd30   :  { %v11218_v32 = vpack.c.bf16 %v10536_v10, %v6934_v1  ;;  %v8826_v10 = vld [vmem:[%s14794_s14] ss:$0 sm:$0xff] }
 0xd32   :  { %11219 = vmatprep.subr.bf16.mxu0 %v11218_v32 }
 0xd33   :  { %11221 = vmatpush3.bf16.msra.mxu0 %v11218_v32 }
 0xd3b   :  { %v10539_v30 = vpop.f32.mrb[46].mxu0 }
 0xd3c   :  { %v6944_v34 = vpop.f32.mrb[47].mxu0 }
 0xd3d   :  { %v11222_v35 = vpack.c.bf16 %v10539_v30, %v6944_v34 }
 0xd3f   :  { %11223 = vmatprep.subr.bf16.mxu0 %v11222_v35 }
 0xd40   :  { %11225 = vmatpush3.bf16.msra.mxu0 %v11222_v35 }
 0xd41   :  { %11227 = vmatprep.subr.bf16.mxu0 %v11226_v20 }
 0xd43   :  { %10549 = vmatmul.mubr.msk.f32.vlgmr.msra.gmra.mrb[48].mxu0 %vm6471_vm4, %v6954_v37 }
 0xd44   :  { %10551 = vmatprep.mubr.msk.f32.mxu0 %vm6471_vm4, %v6955_v38  ;;  %11229 = vmatpush3.bf16.msra.mxu0 %v11226_v20 }
 0xd45   :  { %11231 = vmatprep.subr.bf16.mxu0 %v11230_v42 }
 0xd47   :  { %10552 = vmatmul.mubr.msk.f32.gmra.mrb[50].mxu0 %vm6471_vm4, %v6956_v39 }
 0xd48   :  { %11233 = vmatpush3.bf16.msra.mxu0 %v11230_v42 }
 0xd49   :  { %11235 = vmatprep.subr.bf16.mxu0 %v11234_v45 }
 0xd4c   :  { %11237 = vmatpush3.bf16.msra.mxu0 %v11234_v45  ;;  %v7395_v45 = vld [vmem:[%s14796_s16] sm:$0xff] }
 0xd4d   :  { %11239 = vmatprep.subr.bf16.mxu0 %v11238_v48 }
 0xd50   :  { %11241 = vmatpush3.bf16.msra.mxu0 %v11238_v48 }
 0xd51   :  { %11251 = vmatprep.subr.bf16.mxu0 %v11250_v25 }
 0xe16   :  { %v10550_v49 = vpop.f32.mrb[48].mxu0 }
 0xe17   :  { %v7048_v50 = vadd.f32 %v10550_v49, %v8817_v3  ;;  %v7042_v54 = vpop.f32.mrb[49].mxu0 }
 0xe18   :  { %v7043_v21 = vadd.f32 %v8817_v3, %v7042_v54  ;;  %v7396_v54 = vld [vmem:[%s14796_s16 + $0x8] sm:$0xff] }
 0xe19   :  { %v7062_v51 = vmul.f32 0.999995, %v7048_v50 }
 0xe1a   :  { %v7061_v22 = vmul.f32 0.999995, %v7043_v21  ;;  %v10553_v17 = vpop.f32.mrb[50].mxu0  ;;  %v7397_v21 = vld [vmem:[%s14796_s16 + $0x10] sm:$0xff] }
 0xe1b   :  { %v7058_v18 = vadd.f32 %v10553_v17, %v8817_v3  ;;  %v7052_v52 = vpop.f32.mrb[51].mxu0  ;;  %v7516_v17 = vld [vmem:[%s14798_s18 + $0x8] sm:$0xff] }
 0xe1c   :  { %12102 = vtanh.f32 %v7061_v22  ;;  %v7053_v55 = vadd.f32 %v8817_v3, %v7052_v52  ;;  %v7515_v22 = vld [vmem:[%s14798_s18] sm:$0xff]  ;;  %v7517_v52 = vld [vmem:[%s14798_s18 + $0x10] sm:$0xff] }
 0xe1d   :  { %12104 = vtanh.f32 %v7062_v51  ;;  %v7064_v56 = vmul.f32 0.999995, %v7058_v18  ;;  %v7398_v51 = vld [vmem:[%s14796_s16 + $0x18] sm:$0xff]  ;;  %v11274_v18 = vpack.c.bf16 %v7516_v17, %v7515_v22 }
 0xe1e   :  { %v7063_v57 = vmul.f32 0.999995, %v7053_v55  ;;  %v7518_v55 = vld [vmem:[%s14798_s18 + $0x18] sm:$0xff] }
 0xe20   :  { %12106 = vtanh.f32 %v7063_v57  ;;  %v7519_v57 = vld [vmem:[%s14798_s18 + $0x20] sm:$0xff] }
 0xe21   :  { %12108 = vtanh.f32 %v7064_v56  ;;  %v11278_v56 = vpack.c.bf16 %v7518_v55, %v7517_v52 }
 0xe26   :  { %v14510_v29 = vpop.eup %12102 }
 0xe27   :  { %v14512_v58 = vpop.eup %12104  ;;  %10570 = vmatprep.mubr.msk.f32.mxu0 %vm1040_vm1, %v14510_v29 }
 0xe28   :  { %10571 = vmatmul.mubr.msk.f32.vlgmr.msra.gmra.mrb[52].mxu0 %vm1040_vm1, %v14512_v58 }
 0xe29   :  { %11253 = vmatpush3.bf16.msra.mxu0 %v11250_v25 }
 0xe2a   :  { %v14518_v26 = vpop.eup %12106  ;;  %11255 = vmatprep.subr.bf16.mxu0 %v11254_v6 }
 0xe2b   :  { %v14520_v59 = vpop.eup %12108  ;;  %10573 = vmatprep.mubr.msk.f32.mxu0 %vm1040_vm1, %v14518_v26 }
 0xe2c   :  { %10574 = vmatmul.mubr.msk.f32.gmra.mrb[54].mxu0 %vm1040_vm1, %v14520_v59 }
 0xe2d   :  { %11257 = vmatpush3.bf16.msra.mxu0 %v11254_v6 }
 0xe2e   :  { %11259 = vmatprep.subr.bf16.mxu0 %v11258_v14 }
 0xe31   :  { %11261 = vmatpush3.bf16.msra.mxu0 %v11258_v14 }
 0xe32   :  { %11263 = vmatprep.subr.bf16.mxu0 %v11262_v27 }
 0xe35   :  { %11265 = vmatpush3.bf16.msra.mxu0 %v11262_v27 }
 0xefb   :  { %v10572_v61 = vpop.f32.mrb[52].mxu0 }
 0xefc   :  { %v7155_v62 = vpop.f32.mrb[53].mxu0 }
 0xefd   :  { %v11242_v28 = vpack.c.bf16 %v10572_v61, %v7155_v62  ;;  %v11282_v61 = vpack.c.bf16 %v7520_v53, %v7519_v57  ;;  %v7521_v62 = vld [vmem:[%s14798_s18 + $0x30] sm:$0xff] }
 0xeff   :  { %v10575_v4 = vpop.f32.mrb[54].mxu0  ;;  %11243 = vmatprep.subr.bf16.mxu1 %v11242_v28 }
 0xf00   :  { %v7165_v24 = vpop.f32.mrb[55].mxu0  ;;  %11245 = vmatpush3.bf16.msra.mxu1 %v11242_v28  ;;  %v7522_v28 = vld [vmem:[%s14798_s18 + $0x38] sm:$0xff] }
 0xf01   :  { %v11246_v9 = vpack.c.bf16 %v10575_v4, %v7165_v24  ;;  %v11286_v4 = vpack.c.bf16 %v7522_v28, %v7521_v62  ;;  %v8835_v24 = vld [vmem:[%s14797_s17] ss:$0 sm:$0xff] }
 0xf03   :  { %11247 = vmatprep.subr.bf16.mxu1 %v11246_v9 }
 0xf04   :  { %11249 = vmatpush3.bf16.msra.mxu1 %v11246_v9 }
 0xf07   :  { %10585 = vmatmul.mubr.msk.f32.vlgmr.msra.gmra.mrb[40].mxu1 %vm6471_vm4, %v7175_v36 }
 0xf08   :  { %10587 = vmatprep.mubr.msk.f32.mxu1 %vm6471_vm4, %v7176_v60 }
 0xf0b   :  { %10588 = vmatmul.mubr.msk.f32.gmra.mrb[42].mxu1 %vm6471_vm4, %v7177_v11 }
 0xf0c   :  { %10620 = vmatprep.mubr.msk.f32.mxu1 %vm6471_vm4, %v7395_v45  ;;  %v7741_v45 = vld [vmem:[%s14801_s21 + $0x28] sm:$0xff] }
 0xfda   :  { %v10586_v1 = vpop.f32.mrb[40].mxu1 }
 0xfdb   :  { %v7269_v32 = vadd.f32 %v10586_v1, %v8826_v10  ;;  %v7263_v30 = vpop.f32.mrb[41].mxu1 }
 0xfdc   :  { %v7264_v34 = vadd.f32 %v8826_v10, %v7263_v30 }
 0xfdd   :  { %v7283_v35 = vmul.f32 0.999995, %v7269_v32 }
 0xfde   :  { %v7282_v37 = vmul.f32 0.999995, %v7264_v34  ;;  %v10589_v38 = vpop.f32.mrb[42].mxu1 }
 0xfdf   :  { %v7279_v39 = vadd.f32 %v10589_v38, %v8826_v10  ;;  %v7273_v40 = vpop.f32.mrb[43].mxu1  ;;  %v7621_v38 = vld [vmem:[%s14799_s19 + $0x8] sm:$0xff] }
 0xfe0   :  { %12110 = vtanh.f32 %v7282_v37  ;;  %v7274_v5 = vadd.f32 %v8826_v10, %v7273_v40  ;;  %v7623_v40 = vld [vmem:[%s14799_s19 + $0x18] sm:$0xff] }
 0xfe1   :  { %12112 = vtanh.f32 %v7283_v35  ;;  %v7285_v20 = vmul.f32 0.999995, %v7279_v39  ;;  %v7622_v39 = vld [vmem:[%s14799_s19 + $0x10] sm:$0xff] }
 0xfe2   :  { %v7284_v41 = vmul.f32 0.999995, %v7274_v5  ;;  %v7736_v5 = vld [vmem:[%s14801_s21] sm:$0xff] }
 0xfe4   :  { %12114 = vtanh.f32 %v7284_v41 }
 0xfe5   :  { %12116 = vtanh.f32 %v7285_v20  ;;  %v7737_v20 = vld [vmem:[%s14801_s21 + $0x8] sm:$0xff] }
 0xfe6   :  { %v11298_v41 = vpack.c.bf16 %v7737_v20, %v7736_v5 }
 0xfea   :  { %v12111_v19 = vpop.eup %12110 }
 0xfeb   :  { %v12113_v42 = vpop.eup %12112  ;;  %10606 = vmatprep.mubr.msk.f32.mxu0 %vm1040_vm1, %v12111_v19  ;;  %v7738_v19 = vld [vmem:[%s14801_s21 + $0x10] sm:$0xff] }
 0xfec   :  { %10607 = vmatmul.mubr.msk.f32.vlgmr.msra.gmra.mrb[56].mxu0 %vm1040_vm1, %v12113_v42  ;;  %v7739_v42 = vld [vmem:[%s14801_s21 + $0x18] sm:$0xff] }
 0xfee   :  { %v12115_v8 = vpop.eup %12114 }
 0xfef   :  { %v12117_v44 = vpop.eup %12116  ;;  %10609 = vmatprep.mubr.msk.f32.mxu0 %vm1040_vm1, %v12115_v8  ;;  %v11302_v8 = vpack.c.bf16 %v7739_v42, %v7738_v19 }
 0xff0   :  { %10610 = vmatmul.mubr.msk.f32.gmra.mrb[58].mxu0 %vm1040_vm1, %v12117_v44  ;;  %v7740_v44 = vld [vmem:[%s14801_s21 + $0x20] sm:$0xff] }
0x10bf   :  { %v10608_v46 = vpop.f32.mrb[56].mxu0 }
0x10c0   :  { %v7376_v47 = vpop.f32.mrb[57].mxu0 }
0x10c1   :  { %v11266_v48 = vpack.c.bf16 %v10608_v46, %v7376_v47  ;;  %v11306_v46 = vpack.c.bf16 %v7741_v45, %v7740_v44  ;;  %v7742_v47 = vld [vmem:[%s14801_s21 + $0x30] sm:$0xff] }
0x10c3   :  { %v10611_v3 = vpop.f32.mrb[58].mxu0  ;;  %11267 = vmatprep.subr.bf16.mxu1 %v11266_v48 }
0x10c4   :  { %v7386_v49 = vpop.f32.mrb[59].mxu0  ;;  %11269 = vmatpush3.bf16.msra.mxu1 %v11266_v48  ;;  %v7743_v48 = vld [vmem:[%s14801_s21 + $0x38] sm:$0xff] }
0x10c5   :  { %v11270_v50 = vpack.c.bf16 %v10611_v3, %v7386_v49  ;;  %v11310_v3 = vpack.c.bf16 %v7743_v48, %v7742_v47  ;;  %v8844_v49 = vld [vmem:[%s14800_s20] ss:$0 sm:$0xff] }
0x10c7   :  { %11271 = vmatprep.subr.bf16.mxu1 %v11270_v50 }
0x10c8   :  { %11273 = vmatpush3.bf16.msra.mxu1 %v11270_v50 }
0x10c9   :  { %11275 = vmatprep.subr.bf16.mxu1 %v11274_v18 }
0x10cb   :  { %10621 = vmatmul.mubr.msk.f32.vlgmr.msra.gmra.mrb[44].mxu1 %vm6471_vm4, %v7396_v54 }
0x10cc   :  { %10623 = vmatprep.mubr.msk.f32.mxu1 %vm6471_vm4, %v7397_v21  ;;  %11277 = vmatpush3.bf16.msra.mxu1 %v11274_v18 }
0x10cd   :  { %11279 = vmatprep.subr.bf16.mxu1 %v11278_v56 }
0x10cf   :  { %10624 = vmatmul.mubr.msk.f32.gmra.mrb[46].mxu1 %vm6471_vm4, %v7398_v51 }
0x10d0   :  { %11281 = vmatpush3.bf16.msra.mxu1 %v11278_v56 }
0x10d1   :  { %11283 = vmatprep.subr.bf16.mxu1 %v11282_v61 }
0x10d4   :  { %11285 = vmatpush3.bf16.msra.mxu1 %v11282_v61 }
0x10d5   :  { %11287 = vmatprep.subr.bf16.mxu1 %v11286_v4 }
0x10d8   :  { %11289 = vmatpush3.bf16.msra.mxu1 %v11286_v4 }
0x119e   :  { %v10622_v9 = vpop.f32.mrb[44].mxu1 }
0x119f   :  { %v7490_v36 = vadd.f32 %v10622_v9, %v8835_v24  ;;  %v7484_v60 = vpop.f32.mrb[45].mxu1 }
0x11a0   :  { %v7485_v11 = vadd.f32 %v8835_v24, %v7484_v60 }
0x11a1   :  { %v7504_v2 = vmul.f32 0.999995, %v7490_v36 }
0x11a2   :  { %v7503_v12 = vmul.f32 0.999995, %v7485_v11  ;;  %v10625_v25 = vpop.f32.mrb[46].mxu1 }
0x11a3   :  { %12118 = vtanh.f32 %v7504_v2  ;;  %v7500_v13 = vadd.f32 %v10625_v25, %v8835_v24  ;;  %v7494_v33 = vpop.f32.mrb[47].mxu1  ;;  %v7842_v25 = vld [vmem:[%s14802_s22 + $0x8] sm:$0xff] }
0x11a4   :  { %12120 = vtanh.f32 %v7503_v12  ;;  %v7495_v6 = vadd.f32 %v8835_v24, %v7494_v33  ;;  %v7841_v24 = vld [vmem:[%s14802_s22] sm:$0xff]  ;;  %v7844_v33 = vld [vmem:[%s14802_s22 + $0x18] sm:$0xff] }
0x11a5   :  { %v7506_v43 = vmul.f32 0.999995, %v7500_v13  ;;  %v7843_v13 = vld [vmem:[%s14802_s22 + $0x10] sm:$0xff] }
0x11a6   :  { %v7505_v7 = vmul.f32 0.999995, %v7495_v6  ;;  %v7961_v6 = vld [vmem:[%s14804_s24] sm:$0xff] }
0x11a7   :  { %12122 = vtanh.f32 %v7506_v43  ;;  %v7962_v43 = vld [vmem:[%s14804_s24 + $0x8] sm:$0xff] }
0x11a8   :  { %12124 = vtanh.f32 %v7505_v7  ;;  %v11322_v7 = vpack.c.bf16 %v7962_v43, %v7961_v6 }
0x11ad   :  { %v12119_v14 = vpop.eup %12118 }
0x11ae   :  { %v12121_v15 = vpop.eup %12120  ;;  %v14620_v27 = vadd.f32 %v12119_v14, %v14512_v58  ;;  %v7963_v14 = vld [vmem:[%s14804_s24 + $0x10] sm:$0xff] }
0x11af   :  { %v14617_v16 = vadd.f32 %v12121_v15, %v14510_v29  ;;  %v7620_v29 = vld [vmem:[%s14799_s19] sm:$0xff]  ;;  %v7964_v15 = vld [vmem:[%s14804_s24 + $0x18] sm:$0xff] }
0x11b0   :  { %10656 = vmatprep.mubr.msk.f32.mxu0 %vm6471_vm4, %v7620_v29  ;;  %v7966_v29 = vld [vmem:[%s14804_s24 + $0x28] sm:$0xff] }
0x11b1   :  { %v12123_v10 = vpop.eup %12122  ;;  %10642 = vmatprep.mubr.msk.f32.mxu1 %vm1040_vm1, %v14617_v16 }
0x11b2   :  { %v12125_v1 = vpop.eup %12124  ;;  %10643 = vmatmul.mubr.msk.f32.vlgmr.msra.gmra.mrb[48].mxu1 %vm1040_vm1, %v14620_v27  ;;  %v14630_v30 = vadd.f32 %v12123_v10, %v14520_v59  ;;  %v11326_v10 = vpack.c.bf16 %v7964_v15, %v7963_v14 }
0x11b3   :  { %v14627_v32 = vadd.f32 %v12125_v1, %v14518_v26  ;;  %v7965_v1 = vld [vmem:[%s14804_s24 + $0x20] sm:$0xff] }
0x11b5   :  { %10645 = vmatprep.mubr.msk.f32.mxu1 %vm1040_vm1, %v14627_v32 }
0x11b6   :  { %10646 = vmatmul.mubr.msk.f32.gmra.mrb[50].mxu1 %vm1040_vm1, %v14630_v30 }
0x11b7   :  { %10692 = vmatprep.mubr.msk.f32.mxu1 %vm6471_vm4, %v7841_v24 }
0x1285   :  { %v10644_v58 = vpop.f32.mrb[48].mxu1 }
0x1286   :  { %v7601_v34 = vpop.f32.mrb[49].mxu1 }
0x1287   :  { %v11290_v35 = vpack.c.bf16 %v10644_v58, %v7601_v34  ;;  %v11330_v58 = vpack.c.bf16 %v7966_v29, %v7965_v1  ;;  %v7967_v34 = vld [vmem:[%s14804_s24 + $0x30] sm:$0xff] }
0x1289   :  { %v10647_v26 = vpop.f32.mrb[50].mxu1  ;;  %11291 = vmatprep.subr.bf16.mxu0 %v11290_v35 }
0x128a   :  { %v7611_v37 = vpop.f32.mrb[51].mxu1  ;;  %11293 = vmatpush3.bf16.msra.mxu0 %v11290_v35  ;;  %v7968_v35 = vld [vmem:[%s14804_s24 + $0x38] sm:$0xff] }
0x128b   :  { %v11294_v59 = vpack.c.bf16 %v10647_v26, %v7611_v37  ;;  %v11334_v26 = vpack.c.bf16 %v7968_v35, %v7967_v34  ;;  %v8853_v37 = vld [vmem:[%s14803_s23] ss:$0 sm:$0xff] }
0x128d   :  { %11295 = vmatprep.subr.bf16.mxu0 %v11294_v59 }
0x128e   :  { %11297 = vmatpush3.bf16.msra.mxu0 %v11294_v59 }
0x128f   :  { %11299 = vmatprep.subr.bf16.mxu0 %v11298_v41 }
0x1291   :  { %10657 = vmatmul.mubr.msk.f32.vlgmr.msra.gmra.mrb[60].mxu0 %vm6471_vm4, %v7621_v38 }
0x1292   :  { %10659 = vmatprep.mubr.msk.f32.mxu0 %vm6471_vm4, %v7622_v39  ;;  %11301 = vmatpush3.bf16.msra.mxu0 %v11298_v41 }
0x1293   :  { %11303 = vmatprep.subr.bf16.mxu0 %v11302_v8 }
0x1295   :  { %10660 = vmatmul.mubr.msk.f32.gmra.mrb[62].mxu0 %vm6471_vm4, %v7623_v40 }
0x1296   :  { %11305 = vmatpush3.bf16.msra.mxu0 %v11302_v8 }
0x1297   :  { %11307 = vmatprep.subr.bf16.mxu0 %v11306_v46 }
0x129a   :  { %11309 = vmatpush3.bf16.msra.mxu0 %v11306_v46 }
0x129b   :  { %11311 = vmatprep.subr.bf16.mxu0 %v11310_v3 }
0x129e   :  { %11313 = vmatpush3.bf16.msra.mxu0 %v11310_v3 }
0x1364   :  { %v10658_v50 = vpop.f32.mrb[60].mxu0 }
0x1365   :  { %v7715_v54 = vadd.f32 %v10658_v50, %v8844_v49  ;;  %v7709_v21 = vpop.f32.mrb[61].mxu0 }
0x1366   :  { %v7710_v51 = vadd.f32 %v8844_v49, %v7709_v21 }
0x1367   :  { %v7729_v22 = vmul.f32 0.999995, %v7715_v54 }
0x1368   :  { %v7728_v17 = vmul.f32 0.999995, %v7710_v51  ;;  %v10661_v18 = vpop.f32.mrb[62].mxu0 }
0x1369   :  { %v7725_v52 = vadd.f32 %v10661_v18, %v8844_v49  ;;  %v7719_v55 = vpop.f32.mrb[63].mxu0 }
0x136a   :  { %12126 = vtanh.f32 %v7728_v17  ;;  %v7720_v56 = vadd.f32 %v8844_v49, %v7719_v55  ;;  %v8069_v55 = vld [vmem:[%s14805_s25 + $0x18] sm:$0xff] }
0x136b   :  { %12128 = vtanh.f32 %v7729_v22  ;;  %v7731_v57 = vmul.f32 0.999995, %v7725_v52  ;;  %v8068_v52 = vld [vmem:[%s14805_s25 + $0x10] sm:$0xff] }
0x136c   :  { %v7730_v53 = vmul.f32 0.999995, %v7720_v56  ;;  %v8178_v56 = vld [vmem:[%s14870_s13] sm:$0xff] }
0x136e   :  { %12130 = vtanh.f32 %v7730_v53 }
0x136f   :  { %12132 = vtanh.f32 %v7731_v57  ;;  %v8179_v57 = vld [vmem:[%s14870_s13 + $0x8] sm:$0x3] }
0x1370   :  { %v11346_v53 = vpack.c.bf16 %v8179_v57, %v8178_v56 }
0x1374   :  { %v12127_v61 = vpop.eup %12126 }
0x1375   :  { %v12129_v62 = vpop.eup %12128  ;;  %10678 = vmatprep.mubr.msk.f32.mxu0 %vm1040_vm1, %v12127_v61  ;;  %v8862_v61 = vld [vmem:[%s14806_s26] ss:$0 sm:$0xff] }
0x1376   :  { %10679 = vmatmul.mubr.msk.f32.vlgmr.msra.gmra.mrb[64].mxu0 %vm1040_vm1, %v12129_v62 }
0x1378   :  { %v12131_v28 = vpop.eup %12130 }
0x1379   :  { %v12133_v4 = vpop.eup %12132  ;;  %10681 = vmatprep.mubr.msk.f32.mxu0 %vm1040_vm1, %v12131_v28 }
0x137a   :  { %10682 = vmatmul.mubr.msk.f32.gmra.mrb[66].mxu0 %vm1040_vm1, %v12133_v4 }
0x1449   :  { %v10680_v9 = vpop.f32.mrb[64].mxu0 }
0x144a   :  { %v7822_v36 = vpop.f32.mrb[65].mxu0 }
0x144b   :  { %v11314_v60 = vpack.c.bf16 %v10680_v9, %v7822_v36 }
0x144d   :  { %v10683_v11 = vpop.f32.mrb[66].mxu0  ;;  %11315 = vmatprep.subr.bf16.mxu1 %v11314_v60 }
0x144e   :  { %v7832_v2 = vpop.f32.mrb[67].mxu0  ;;  %11317 = vmatpush3.bf16.msra.mxu1 %v11314_v60 }
0x144f   :  { %v11318_v12 = vpack.c.bf16 %v10683_v11, %v7832_v2 }
0x1451   :  { %11319 = vmatprep.subr.bf16.mxu1 %v11318_v12 }
0x1452   :  { %11321 = vmatpush3.bf16.msra.mxu1 %v11318_v12 }
0x1453   :  { %11323 = vmatprep.subr.bf16.mxu1 %v11322_v7 }
0x1455   :  { %10693 = vmatmul.mubr.msk.f32.vlgmr.msra.gmra.mrb[52].mxu1 %vm6471_vm4, %v7842_v25 }
0x1456   :  { %10695 = vmatprep.mubr.msk.f32.mxu1 %vm6471_vm4, %v7843_v13  ;;  %11325 = vmatpush3.bf16.msra.mxu1 %v11322_v7 }
0x1457   :  { %11327 = vmatprep.subr.bf16.mxu1 %v11326_v10 }
0x1459   :  { %10696 = vmatmul.mubr.msk.f32.gmra.mrb[54].mxu1 %vm6471_vm4, %v7844_v33 }
0x145a   :  { %11329 = vmatpush3.bf16.msra.mxu1 %v11326_v10 }
0x145b   :  { %11331 = vmatprep.subr.bf16.mxu1 %v11330_v58 }
0x145e   :  { %11333 = vmatpush3.bf16.msra.mxu1 %v11330_v58 }
0x145f   :  { %11335 = vmatprep.subr.bf16.mxu1 %v11334_v26 }
0x1462   :  { %11337 = vmatpush3.bf16.msra.mxu1 %v11334_v26 }
0x1528   :  { %v10694_v59 = vpop.f32.mrb[52].mxu1 }
0x1529   :  { %v7936_v38 = vadd.f32 %v10694_v59, %v8853_v37  ;;  %v7930_v39 = vpop.f32.mrb[53].mxu1 }
0x152a   :  { %v7931_v40 = vadd.f32 %v8853_v37, %v7930_v39 }
0x152b   :  { %v7950_v5 = vmul.f32 0.999995, %v7936_v38 }
0x152c   :  { %v7949_v20 = vmul.f32 0.999995, %v7931_v40  ;;  %v10697_v41 = vpop.f32.mrb[54].mxu1 }
0x152d   :  { %12134 = vtanh.f32 %v7950_v5  ;;  %v7946_v19 = vadd.f32 %v10697_v41, %v8853_v37  ;;  %v7940_v42 = vpop.f32.mrb[55].mxu1 }
0x152e   :  { %12136 = vtanh.f32 %v7949_v20  ;;  %v7941_v8 = vadd.f32 %v8853_v37, %v7940_v42 }
0x152f   :  { %v7952_v44 = vmul.f32 0.999995, %v7946_v19 }
0x1530   :  { %v7951_v45 = vmul.f32 0.999995, %v7941_v8 }
0x1531   :  { %12138 = vtanh.f32 %v7952_v44 }
0x1532   :  { %12140 = vtanh.f32 %v7951_v45 }
0x1537   :  { %v12135_v46 = vpop.eup %12134 }
0x1538   :  { %v12137_v47 = vpop.eup %12136  ;;  %v7958_v3 = vadd.f32 %v12135_v46, %v14620_v27 }
0x1539   :  { %v7957_v48 = vadd.f32 %v12137_v47, %v14617_v16  ;;  %v8066_v16 = vld [vmem:[%s14805_s25] sm:$0xff] }
0x153a   :  { %10728 = vmatprep.mubr.msk.f32.mxu0 %vm6471_vm4, %v8066_v16 }
0x153b   :  { %v12139_v49 = vpop.eup %12138  ;;  %10714 = vmatprep.mubr.msk.f32.mxu1 %vm1040_vm1, %v7957_v48 }
0x153c   :  { %v12141_v50 = vpop.eup %12140  ;;  %10715 = vmatmul.mubr.msk.f32.vlgmr.msra.gmra.mrb[56].mxu1 %vm1040_vm1, %v7958_v3  ;;  %v7960_v21 = vadd.f32 %v12139_v49, %v14630_v30  ;;  %v8067_v30 = vld [vmem:[%s14805_s25 + $0x8] sm:$0xff]  ;;  %s12367_s25 = smov [#allocation2]  }
0x153d   :  { %v7959_v54 = vadd.f32 %v12141_v50, %v14627_v32  ;;  %s8290_s26 = sshll.u32 %s12367_s25, 4  ;;  %s8291_s26 = int_to_ptr.vmem [resolvable:$true] %s8290_s26 }
0x153e   :  { %s12320_s30 = scalar_lea.vmem %s8291_s26, 512  ;;  %p12325_p1 = scmp.lt.s32.totalorder %s8291_s26, %s8291_s26 }
0x153f   :  { %10717 = vmatprep.mubr.msk.f32.mxu1 %vm1040_vm1, %v7959_v54  ;;  %p12321_p0 = scmp.ne.s32.totalorder %s8291_s26, %s12320_s30  ;;  %p12326_p2 = scmp.lt.s32.totalorder %s12320_s30, %s12320_s30 }
0x1540   :  { %10718 = vmatmul.mubr.msk.f32.gmra.mrb[58].mxu1 %vm1040_vm1, %v7960_v21 }
0x1541   :  { %p12327_p3 = por %p12326_p2, %p12325_p1 }
0x1543   :  { %p12328_p4 = pnand %p12327_p3, %p12321_p0 }
0x160f   :  { %v10716_v27 = vpop.f32.mrb[56].mxu1 }
0x1610   :  { %v8047_v51 = vpop.f32.mrb[57].mxu1 }
0x1611   :  { %v11338_v22 = vpack.c.bf16 %v10716_v27, %v8047_v51 }
0x1613   :  { %v10719_v17 = vpop.f32.mrb[58].mxu1  ;;  %11339 = vmatprep.subr.bf16.mxu0 %v11338_v22 }
0x1614   :  { %v8057_v18 = vpop.f32.mrb[59].mxu1  ;;  %11341 = vmatpush3.bf16.msra.mxu0 %v11338_v22 }
0x1615   :  { %v11342_v32 = vpack.c.bf16 %v10719_v17, %v8057_v18 }
0x1617   :  { %11343 = vmatprep.subr.bf16.mxu0 %v11342_v32 }
0x1618   :  { %11345 = vmatpush3.bf16.msra.mxu0 %v11342_v32 }
0x1619   :  { %11348 = vmatprep.subr.msk.bf16.mxu0 %vm11347_vm13, %v11346_v53 }
0x161b   :  { %10729 = vmatmul.mubr.msk.f32.vlgmr.msra.gmra.mrb[68].mxu0 %vm6471_vm4, %v8067_v30 }
0x161c   :  { %10731 = vmatprep.mubr.msk.f32.mxu0 %vm6471_vm4, %v8068_v52  ;;  %11351 = vmatpush3.bf16.msk.msra.mxu0 %vm11347_vm13, %v11346_v53 }
0x161f   :  { %10732 = vmatmul.mubr.msk.f32.gmra.mrb[70].mxu0 %vm6471_vm4, %v8069_v55 }
0x16ee   :  { %v10730_v62 = vpop.f32.mrb[68].mxu0 }
0x16ef   :  { %v8161_v28 = vadd.f32 %v10730_v62, %v8862_v61  ;;  %v8155_v4 = vpop.f32.mrb[69].mxu0 }
0x16f0   :  { %v8156_v24 = vadd.f32 %v8862_v61, %v8155_v4 }
0x16f1   :  { %v8175_v9 = vadd.f32 %v14448_v63, %v8161_v28 }
0x16f2   :  { %v8174_v36 = vadd.f32 %v8156_v24, %v14450_v31  ;;  %v10733_v60 = vpop.f32.mrb[70].mxu0 }
0x16f3   :  { %v8171_v11 = vadd.f32 %v10733_v60, %v8862_v61  ;;  %v8165_v2 = vpop.f32.mrb[71].mxu0 }
0x16f4   :  { %v8166_v12 = vadd.f32 %v8862_v61, %v8165_v2  ;;  %10738 = vmatprep.mubr.msk.f32.mxu0 %vm6843_vm10, %v8174_v36 }
0x16f5   :  { %v8177_v25 = vadd.f32 %v14455_v23, %v8171_v11  ;;  %10739 = vmatmul.mubr.msk.f32.vlgmr.msra.gmra.mrb[72].mxu0 %vm6843_vm10, %v8175_v9 }
0x16f6   :  { %v8176_v13 = vadd.f32 %v8166_v12, %v14457_v0 }
0x16f8   :  { %10741 = vmatprep.mubr.msk.f32.mxu0 %vm6843_vm10, %v8176_v13 }
0x16f9   :  { %10742 = vmatmul.mubr.msk.f32.gmra.mrb[74].mxu0 %vm6843_vm10, %v8177_v25 }
0x17c8   :  { %v10740_v63 = vpop.f32.mrb[72].mxu0 }
0x17c9   :  { %8282 = vst.msk [vmem:[#allocation2 + $0x8] sm:$0xff] %vm8280_vm14, %v10740_v63  ;;  %v8261_v31 = vpop.f32.mrb[73].mxu0 }
0x17ca   :  { %8281 = vst.msk [vmem:[#allocation2] sm:$0xff] %vm8280_vm14, %v8261_v31 }
0x17cc   :  { %v10743_v33 = vpop.f32.mrb[74].mxu0 }
0x17cd   :  { %8284 = vst.msk [vmem:[#allocation2 + $0x18] sm:$0xff] %vm8280_vm14, %v10743_v33  ;;  %v8271_v6 = vpop.f32.mrb[75].mxu0 }
0x17ce   :  { %8283 = vst.msk [vmem:[#allocation2 + $0x10] sm:$0xff] %vm8280_vm14, %v8271_v6 }
0x17cf   :  { %12331 = shalt.err (!%p12328_p4)
}
0x17d0   :  { %s14871_s0 = sld [smem:[#allocation17_spill]] }
0x17d6   :  { %s12332_s22 = scalar_lea.hbm %s14871_s0, 512 }
0x17d7   :  { %p12333_p5 = scmp.ne.s32.totalorder %s14871_s0, %s12332_s22  ;;  %p12336_p6 = scmp.lt.u32.totalorder %s12332_s22, %s14871_s0 }
0x17d9   :  { %p12338_p7 = pnand %p12336_p6, %p12333_p5 }
0x17db   :  { %12341 = shalt.err (!%p12338_p7)
}
0x17dc   :  { %s12368_s15 = smov 128   ;;  %s12369_s11 = smov 8  }
0x17dd   :  { %8296 = dma.vmem_to_hbm [thread:$0]  %s8291_s26, 512, %s14871_s0, [#allocation3], %s12368_s15, %s12368_s15, %s12369_s11  }
0x17de   :  { %12342 = dma.done.wait [#allocation3], 512  }
0x17df   :  { %12343 = vsyncadd [#allocation3], 4294966784 }
0x17e0   :  { %8300 = vsyncpa [#allocation3], 1 }

</bundles_post_ra>
